<compile_context>
chip_gen: v6e
topology: v6e:2x2x1
jax: 0.10.0
libtpu: 0.0.40
codegen_flags: <defaults>
</compile_context>

<pallas_src>
import functools
import numpy as np
import jax
import jax.numpy as jnp
from jax.experimental import pallas as pl
from jax.experimental.pallas import tpu as pltpu

EPS = 1e-5          # torch.nn.LayerNorm default
LANE = 128


def _round_up(n, m):
    return ((n + m - 1) // m) * m


def _vmem_capacity_bytes():
    try:
        return int(pltpu.get_tpu_info().vmem_capacity_bytes)
    except Exception:
        return 64 << 20     # conservative fallback: v7x per-TensorCore VMEM


def _mm(a, b_bf16):
    """MXU matmul: activations cast to bf16, weights already bf16, f32 accumulate."""
    return jnp.dot(a.astype(jnp.bfloat16), b_bf16,
                   preferred_element_type=jnp.float32)


def _masked_layernorm(x, gamma, beta, mask, inv_n):
    """LayerNorm over the REAL channels of a lane-padded (M, Cp) activation.

    Invariant: padded lanes of `x` are zero (zero-padded inputs / weights /
    biases), so the plain lane-sum already equals the sum over real channels;
    `mask` keeps (x - mu) zero on padded lanes and zero-padded gamma/beta keep
    the output zero there as well.
    """
    mu = jnp.sum(x, axis=-1, keepdims=True) * inv_n
    xc = (x - mu) * mask
    var = jnp.sum(xc * xc, axis=-1, keepdims=True) * inv_n
    return xc * jax.lax.rsqrt(var + EPS) * gamma + beta


def dualconv_kernel(kernel_size, dilations, halo, d_real, dh_real,
                    sid_ref,                    # scalar-prefetch stream ids (used by index_maps)
                    x_ref,
                    g1_ref, b1_ref, w1_ref, wb1_ref,
                    g2_ref, b2_ref, wc_ref, bc_ref,
                    g3_ref, b3_ref, w2_ref, wb2_ref,
                    o_ref, halo_ref):
    del sid_ref
    TB, L, Dp = x_ref.shape
    DHp = halo_ref.shape[-1]
    K = kernel_size
    P = halo

    # Channel-validity masks, hoisted out of the layer loop (JAX does not CSE
    # broadcasts inside loops).
    mask_d = (jax.lax.broadcasted_iota(jnp.int32, (1, Dp), 1) < d_real).astype(jnp.float32)
    mask_h = (jax.lax.broadcasted_iota(jnp.int32, (1, DHp), 1) < dh_real).astype(jnp.float32)
    inv_d = 1.0 / d_real
    inv_h = 1.0 / dh_real

    # Zero only the two halo slabs; the interior is fully rewritten each layer
    # (saves vst bundles vs. zeroing the whole scratch every grid step).
    if P > 0:
        halo_ref[:, :P, :] = jnp.zeros((TB, P, DHp), jnp.float32)
        halo_ref[:, P + L:, :] = jnp.zeros((TB, P, DHp), jnp.float32)

    # Flatten to (TB*L, Cp): a large flat M keeps the MXU full; the lane dim is
    # the 128-padded channel dim so every VPU/LN/store below is lane-dense.
    x2 = x_ref[...].reshape(TB * L, Dp)

    # TODO(synk): for large n_layers convert this unrolled Python loop into a
    # lax.fori_loop (or a third grid axis) with an SMEM dilation table to bound
    # live ranges / code size; n_layers is small here so unrolling is fine.
    for layer in range(len(dilations)):
        dil = dilations[layer]
        pad = dil * (K - 1) // 2          # torch "same" padding (odd K only)
        skip = x2

        # sequence1: LN(D) -> ReLU -> 1x1 (D -> d_h) -> LN(d_h) -> ReLU
        h = _masked_layernorm(x2, g1_ref[layer], b1_ref[layer], mask_d, inv_d)
        h = jnp.maximum(h, 0.0)
        h = _mm(h, w1_ref[layer]) + wb1_ref[layer]
        h = _masked_layernorm(h, g2_ref[layer], b2_ref[layer], mask_h, inv_h)
        h = jnp.maximum(h, 0.0)

        # Dilated "same" conv along L via the zero-halo scratch: write the
        # interior once, then K accumulating MXU matmuls against the per-tap
        # (d_hp, d_hp) weight row-blocks (no lane-packing concatenate and no
        # materialized (TB*L, K*d_h) temp).
        halo_ref[:, P:P + L, :] = h.reshape(TB, L, DHp)
        y = None
        for k in range(K):
            off = P - pad + k * dil
            tap = halo_ref[:, off:off + L, :].reshape(TB * L, DHp)
            t = _mm(tap, wc_ref[layer, k * DHp:(k + 1) * DHp, :])
            y = t if y is None else y + t
        y = y + bc_ref[layer]

        # sequence2: LN(d_h) -> ReLU -> 1x1 (d_h -> D), then residual add
        y = _masked_layernorm(y, g3_ref[layer], b3_ref[layer], mask_h, inv_h)
        y = jnp.maximum(y, 0.0)
        y = _mm(y, w2_ref[layer]) + wb2_ref[layer]

        x2 = skip + y

    o_ref[...] = x2.reshape(TB, L, Dp)    # lane-dense (128-wide) store


def dualconv_stack_forward(x_packed, stream_ids, params, *,
                           kernel_size, dilations, d_model, d_h, tb):
    """Run all packed batch tiles (heavy tiles first, then light tiles) through
    all ByteNetBlock layers in one gridded pallas_call."""
    Btot, L, Dp = x_packed.shape
    DHp = params[2].shape[-1]             # w1: (2, n_layers, Dp, DHp)
    K = kernel_size
    halo = max(d * (K - 1) // 2 for d in dilations)
    num_tiles = Btot // tb

    kern = functools.partial(dualconv_kernel, K, dilations, halo, d_model, d_h)

    x_spec = pl.BlockSpec((tb, L, Dp), lambda t, sid: (t, 0, 0))

    def _pspec(p):
        nzeros = p.ndim - 1
        # Per-tile stream id (scalar-prefetched) selects heavy vs light params.
        return pl.BlockSpec((None,) + p.shape[1:],
                            lambda t, sid, _n=nzeros: (sid[t],) + (0,) * _n)

    vmem_limit = min((_vmem_capacity_bytes() * 3) // 4, 100 << 20)

    return pl.pallas_call(
        kern,
        out_shape=jax.ShapeDtypeStruct((Btot, L, Dp), jnp.float32),
        grid_spec=pltpu.PrefetchScalarGridSpec(
            num_scalar_prefetch=1,
            grid=(num_tiles,),
            in_specs=[x_spec] + [_pspec(p) for p in params],
            out_specs=x_spec,
            scratch_shapes=[pltpu.VMEM((tb, L + 2 * halo, DHp), jnp.float32)]),
        compiler_params=pltpu.CompilerParams(
            dimension_semantics=("parallel",),
            vmem_limit_bytes=int(vmem_limit)),
    )(stream_ids, x_packed, *params)


_dualconv_forward_jit = jax.jit(
    dualconv_stack_forward,
    static_argnames=("kernel_size", "dilations", "d_model", "d_h", "tb"))


# ---------------------------------------------------------------------------
# Parameter construction (synthetic ByteNetBlock weights) + padding/stacking.
# ---------------------------------------------------------------------------

_PARAM_ORDER = ("g1", "b1", "w1", "wb1", "g2", "b2", "wc", "bc", "g3", "b3", "w2", "wb2")
_BF16_PARAMS = ("w1", "wc", "w2")


def init_stream_params(key, d_model, d_h, kernel_size, n_layers):
    """Synthetic ByteNetBlock params for one stream at the REAL sizes
    (list of per-layer dicts, f32). Conv weight is stored as (K, in, out)."""
    ks = jax.random.split(key, 3 * n_layers)
    layers = []
    for i in range(n_layers):
        k1, k2, k3 = ks[3 * i], ks[3 * i + 1], ks[3 * i + 2]
        layers.append(dict(
            g1=jnp.ones((1, d_model)), b1=jnp.zeros((1, d_model)),
            w1=0.1 * jax.random.normal(k1, (d_model, d_h)), wb1=jnp.zeros((1, d_h)),
            g2=jnp.ones((1, d_h)), b2=jnp.zeros((1, d_h)),
            wc=0.1 * jax.random.normal(k2, (kernel_size, d_h, d_h)), bc=jnp.zeros((1, d_h)),
            g3=jnp.ones((1, d_h)), b3=jnp.zeros((1, d_h)),
            w2=0.1 * jax.random.normal(k3, (d_h, d_model)), wb2=jnp.zeros((1, d_model)),
        ))
    return layers


def _pad_and_stack(h_layers, l_layers, d_pad, dh_pad):
    """Zero-pad channel dims to lane width, pre-cast matmul weights to bf16 and
    stack to (2 streams, n_layers, ...) arrays in kernel argument order."""
    targets = dict(
        g1=(1, d_pad), b1=(1, d_pad),
        w1=(None, dh_pad), wb1=(1, dh_pad),          # w1 first dim padded below
        g2=(1, dh_pad), b2=(1, dh_pad),
        bc=(1, dh_pad),
        g3=(1, dh_pad), b3=(1, dh_pad),
        w2=(None, d_pad), wb2=(1, d_pad),
    )
    targets["w1"] = (d_pad, dh_pad)
    targets["w2"] = (dh_pad, d_pad)

    def pad_one(name, x):
        if name == "wc":     # (K, d_h, d_h) -> (K*dh_pad, dh_pad) per-tap row blocks
            x = jnp.pad(x, ((0, 0),
                            (0, dh_pad - x.shape[1]),
                            (0, dh_pad - x.shape[2])))
            return x.reshape(-1, dh_pad).astype(jnp.bfloat16)
        tgt = targets[name]
        x = jnp.pad(x, tuple((0, t - s) for s, t in zip(x.shape, tgt)))
        return x.astype(jnp.bfloat16 if name in _BF16_PARAMS else jnp.float32)

    out = []
    for name in _PARAM_ORDER:
        per_stream = []
        for layers in (h_layers, l_layers):
            per_stream.append(jnp.stack([pad_one(name, lay[name]) for lay in layers], axis=0))
        out.append(jnp.stack(per_stream, axis=0))
    return tuple(out)


class DualConvPallas:
    """Pallas equivalent of DualConv(d_model, n_layers, kernel_size, r, slim=True)."""

    def __init__(self, key, d_model, n_layers, kernel_size, r, slim=True):
        assert kernel_size % 2 == 1, "exact 'same' dilated conv requires odd kernel_size"
        log2 = int(np.log2(r)) + 1
        self.dilations = tuple(2 ** (n % log2) for n in range(n_layers))
        self.d_model = d_model
        self.d_h = d_model // 2 if slim else d_model
        self.kernel_size = kernel_size
        # Lane-dense channel padding (HBM bytes unchanged: the narrow minor dim
        # was already padded to 128 lanes by the TPU tiled layout).
        self.d_pad = _round_up(d_model, LANE)
        self.dh_pad = _round_up(self.d_h, LANE)
        kh, kl = jax.random.split(key)
        self.raw_params = (
            init_stream_params(kh, d_model, self.d_h, kernel_size, n_layers),
            init_stream_params(kl, d_model, self.d_h, kernel_size, n_layers),
        )
        self.params = _pad_and_stack(self.raw_params[0], self.raw_params[1],
                                     self.d_pad, self.dh_pad)

    def _pick_tb(self, nh, nl, L):
        Dp, DHp, K = self.d_pad, self.dh_pad, self.kernel_size
        halo = max(d * (K - 1) // 2 for d in self.dilations)
        # f32 bytes actually resident in VMEM per batch row (lane-padded dims):
        per_row = 4 * L * (2 * 2 * Dp            # in + out tiles, double-buffered
                           + 3 * Dp + 4 * DHp)   # live f32 temps in the layer body
        per_row += 4 * (L + 2 * halo) * DHp      # zero-halo conv scratch
        # per-stream parameter block (bf16 weights + f32 LN/bias), double-buffered
        param_bytes = 2 * sum(int(p.nbytes) // p.shape[0] for p in self.params)
        vmem_limit = min((_vmem_capacity_bytes() * 3) // 4, 100 << 20)
        budget = vmem_limit - param_bytes - (4 << 20)          # headroom
        tb = max(8, (budget // per_row) // 8 * 8)              # multiple of 8 rows
        needed = _round_up(max(nh, nl, 1), 8)
        return int(min(tb, needed))

    def __call__(self, s, batch):
        s = jnp.asarray(s, jnp.float32)
        batch = jnp.asarray(batch)
        heavy = batch == 0
        # TODO(synk): the heavy/light split has data-dependent sizes, so one
        # host sync on the counts is unavoidable; the gather itself is a
        # static-shape stable argsort and everything downstream runs jitted.
        nh = int(jnp.sum(heavy))
        nl = int(batch.shape[0]) - nh
        order = jnp.argsort(jnp.where(heavy, 0, 1))     # stable: heavy first
        s_sorted = jnp.take(s, order, axis=0)

        L, D = int(s.shape[1]), int(s.shape[2])
        Dp = self.d_pad
        tb = self._pick_tb(nh, nl, L)
        th = -(-nh // tb)
        tl = -(-nl // tb)
        # Each stream is padded to its OWN tile count and the tiles are packed
        # on one flat "parallel" grid axis (better 2-TC balance on v7x, less
        # padding work everywhere when the heavy/light counts are skewed).
        h_in = jnp.pad(s_sorted[:nh], ((0, th * tb - nh), (0, 0), (0, Dp - D)))
        l_in = jnp.pad(s_sorted[nh:], ((0, tl * tb - nl), (0, 0), (0, Dp - D)))
        x_packed = jnp.concatenate([h_in, l_in], axis=0)
        stream_ids = jnp.concatenate([jnp.zeros((th,), jnp.int32),
                                      jnp.ones((tl,), jnp.int32)])

        out = _dualconv_forward_jit(
            x_packed, stream_ids, self.params,
            kernel_size=self.kernel_size, dilations=self.dilations,
            d_model=self.d_model, d_h=self.d_h, tb=tb)
        h_out = out[:nh, :, :D]
        l_out = out[th * tb:th * tb + nl, :, :D]
        return h_out, l_out


# ---------------------------------------------------------------------------
# Plain-JAX reference (real, unpadded sizes) for a correctness cross-check.
# ---------------------------------------------------------------------------

def _ln_ref(x, gamma, beta):
    mu = jnp.mean(x, axis=-1, keepdims=True)
    xc = x - mu
    var = jnp.mean(xc * xc, axis=-1, keepdims=True)
    return xc * jax.lax.rsqrt(var + EPS) * gamma + beta


def _mm_ref(a, w):
    return jnp.einsum("blc,co->blo", a.astype(jnp.bfloat16), w.astype(jnp.bfloat16),
                      preferred_element_type=jnp.float32)


def _ref_block(x, p, K, dil):
    pad = dil * (K - 1) // 2
    L = x.shape[1]
    skip = x
    h = _ln_ref(x, p["g1"], p["b1"])
    h = jnp.maximum(h, 0.0)
    h = _mm_ref(h, p["w1"]) + p["wb1"]
    h = _ln_ref(h, p["g2"], p["b2"])
    h = jnp.maximum(h, 0.0)
    hp = jnp.pad(h, ((0, 0), (pad, pad), (0, 0)))
    y = None
    for k in range(K):
        t = _mm_ref(hp[:, k * dil:k * dil + L, :], p["wc"][k])
        y = t if y is None else y + t
    y = y + p["bc"]
    y = _ln_ref(y, p["g3"], p["b3"])
    y = jnp.maximum(y, 0.0)
    y = _mm_ref(y, p["w2"]) + p["wb2"]
    return skip + y


def reference_forward(model, s, batch):
    h = s[batch == 0]
    l = s[batch != 0]
    for i, dil in enumerate(model.dilations):
        h = _ref_block(h, model.raw_params[0][i], model.kernel_size, dil)
    for i, dil in enumerate(model.dilations):
        l = _ref_block(l, model.raw_params[1][i], model.kernel_size, dil)
    return h, l


if __name__ == "__main__":
    d_model, n_layers, kernel_size, r = 32, 2, 3, 2     # slim=True -> d_h = 16
    B, L = 4, 16

    key = jax.random.PRNGKey(0)
    kx, kp = jax.random.split(key)
    s = jax.random.normal(kx, (B, L, d_model), dtype=jnp.float32)
    batch = jnp.array([0, 0, 1, 1], dtype=jnp.int32)    # 2 "heavy", 2 "light"

    model = DualConvPallas(kp, d_model, n_layers, kernel_size, r, slim=True)
    h_s, l_s = model(s, batch)
    jax.block_until_ready((h_s, l_s))

    assert h_s.shape == (2, L, d_model) and h_s.dtype == jnp.float32
    assert l_s.shape == (2, L, d_model) and l_s.dtype == jnp.float32
    assert bool(jnp.all(jnp.isfinite(h_s))) and bool(jnp.all(jnp.isfinite(l_s)))

    # Cross-check against a plain-JAX reference (same bf16-matmul precision).
    h_ref, l_ref = reference_forward(model, s, batch)
    assert bool(jnp.allclose(h_s, h_ref, atol=1e-2, rtol=1e-2)), \
        float(jnp.max(jnp.abs(h_s - h_ref)))
    assert bool(jnp.allclose(l_s, l_ref, atol=1e-2, rtol=1e-2)), \
        float(jnp.max(jnp.abs(l_s - l_ref)))

    print("KERNEL_OK")
</pallas_src>

<mosaic_0001>
module attributes {stable_mosaic.version = 11 : i64} {
  func.func @dualconv_kernel(%arg0: i32, %arg1: memref<2xi32, #tpu.memory_space<smem>>, %arg2: memref<8x16x128xf32, #tpu.memory_space<vmem>>, %arg3: memref<1x2x1x128xf32, #tpu.memory_space<vmem>>, %arg4: memref<1x2x1x128xf32, #tpu.memory_space<vmem>>, %arg5: memref<1x2x128x128xbf16, #tpu.memory_space<vmem>>, %arg6: memref<1x2x1x128xf32, #tpu.memory_space<vmem>>, %arg7: memref<1x2x1x128xf32, #tpu.memory_space<vmem>>, %arg8: memref<1x2x1x128xf32, #tpu.memory_space<vmem>>, %arg9: memref<1x2x384x128xbf16, #tpu.memory_space<vmem>>, %arg10: memref<1x2x1x128xf32, #tpu.memory_space<vmem>>, %arg11: memref<1x2x1x128xf32, #tpu.memory_space<vmem>>, %arg12: memref<1x2x1x128xf32, #tpu.memory_space<vmem>>, %arg13: memref<1x2x128x128xbf16, #tpu.memory_space<vmem>>, %arg14: memref<1x2x1x128xf32, #tpu.memory_space<vmem>>, %arg15: memref<8x16x128xf32, #tpu.memory_space<vmem>>, %arg16: memref<8x20x128xf32, #tpu.memory_space<vmem>>) attributes {dimension_semantics = [#tpu.dimension_semantics<parallel>], iteration_bounds = array<i64: 2>, scalar_prefetch = 1 : i64, scratch_operands = 1 : i64, tpu.core_type = #tpu.core_type<tc>, window_params = [{transform_indices = @transform_0, window_bounds = array<i64: 8, 16, 128>}, {transform_indices = @transform_1, window_bounds = array<i64: 1, 2, 1, 128>}, {transform_indices = @transform_2, window_bounds = array<i64: 1, 2, 1, 128>}, {transform_indices = @transform_3, window_bounds = array<i64: 1, 2, 128, 128>}, {transform_indices = @transform_4, window_bounds = array<i64: 1, 2, 1, 128>}, {transform_indices = @transform_5, window_bounds = array<i64: 1, 2, 1, 128>}, {transform_indices = @transform_6, window_bounds = array<i64: 1, 2, 1, 128>}, {transform_indices = @transform_7, window_bounds = array<i64: 1, 2, 384, 128>}, {transform_indices = @transform_8, window_bounds = array<i64: 1, 2, 1, 128>}, {transform_indices = @transform_9, window_bounds = array<i64: 1, 2, 1, 128>}, {transform_indices = @transform_10, window_bounds = array<i64: 1, 2, 1, 128>}, {transform_indices = @transform_11, window_bounds = array<i64: 1, 2, 128, 128>}, {transform_indices = @transform_12, window_bounds = array<i64: 1, 2, 1, 128>}, {transform_indices = @transform_13, window_bounds = array<i64: 8, 16, 128>}]} {
    %0 = tpu.iota {dimensions = array<i32: 1>} : vector<1x128xi32>
    %c32_i32 = arith.constant 32 : i32
    %1 = vector.broadcast %c32_i32 : i32 to vector<1x128xi32>
    %2 = arith.cmpi slt, %0, %1 : vector<1x128xi32>
    %3 = arith.extui %2 : vector<1x128xi1> to vector<1x128xi32>
    %4 = arith.sitofp %3 : vector<1x128xi32> to vector<1x128xf32>
    %5 = tpu.iota {dimensions = array<i32: 1>} : vector<1x128xi32>
    %c16_i32 = arith.constant 16 : i32
    %6 = vector.broadcast %c16_i32 : i32 to vector<1x128xi32>
    %7 = arith.cmpi slt, %5, %6 : vector<1x128xi32>
    %8 = arith.extui %7 : vector<1x128xi1> to vector<1x128xi32>
    %9 = arith.sitofp %8 : vector<1x128xi32> to vector<1x128xf32>
    %cst = arith.constant 0.000000e+00 : f32
    %10 = vector.broadcast %cst : f32 to vector<8x2x128xf32>
    %c0 = arith.constant 0 : index
    %c0_0 = arith.constant 0 : index
    %c0_1 = arith.constant 0 : index
    %11 = vector.load %arg16[%c0, %c0_0, %c0_1] : memref<8x20x128xf32, #tpu.memory_space<vmem>>, vector<8x2x128xf32>
    tpu.vector_store %arg16[%c0, %c0_0, %c0_1], %10 {strides = array<i32>} : memref<8x20x128xf32, #tpu.memory_space<vmem>>, vector<8x2x128xf32>,
    %cst_2 = arith.constant 0.000000e+00 : f32
    %12 = vector.broadcast %cst_2 : f32 to vector<8x2x128xf32>
    %c0_3 = arith.constant 0 : index
    %c18 = arith.constant 18 : index
    %c0_4 = arith.constant 0 : index
    %13 = vector.load %arg16[%c0_3, %c18, %c0_4] : memref<8x20x128xf32, #tpu.memory_space<vmem>>, vector<8x2x128xf32>
    tpu.vector_store %arg16[%c0_3, %c18, %c0_4], %12 {strides = array<i32>} : memref<8x20x128xf32, #tpu.memory_space<vmem>>, vector<8x2x128xf32>,
    %c0_5 = arith.constant 0 : index
    %c0_6 = arith.constant 0 : index
    %c0_7 = arith.constant 0 : index
    %14 = vector.load %arg2[%c0_5, %c0_6, %c0_7] : memref<8x16x128xf32, #tpu.memory_space<vmem>>, vector<8x16x128xf32>
    %15 = vector.shape_cast %14 : vector<8x16x128xf32> to vector<128x128xf32>
    %c0_8 = arith.constant 0 : index
    %c0_9 = arith.constant 0 : index
    %c0_10 = arith.constant 0 : index
    %c0_11 = arith.constant 0 : index
    %16 = vector.load %arg3[%c0_8, %c0_9, %c0_10, %c0_11] : memref<1x2x1x128xf32, #tpu.memory_space<vmem>>, vector<1x1x1x128xf32>
    %17 = vector.shape_cast %16 : vector<1x1x1x128xf32> to vector<1x128xf32>
    %c0_12 = arith.constant 0 : index
    %c0_13 = arith.constant 0 : index
    %c0_14 = arith.constant 0 : index
    %c0_15 = arith.constant 0 : index
    %18 = vector.load %arg4[%c0_12, %c0_13, %c0_14, %c0_15] : memref<1x2x1x128xf32, #tpu.memory_space<vmem>>, vector<1x1x1x128xf32>
    %19 = vector.shape_cast %18 : vector<1x1x1x128xf32> to vector<1x128xf32>
    %cst_16 = arith.constant dense<0.000000e+00> : vector<128xf32>
    %20 = vector.multi_reduction <add>, %15, %cst_16 [1] : vector<128x128xf32> to vector<128xf32>
    %21 = vector.shape_cast %20 : vector<128xf32> to vector<128x1xf32>
    %cst_17 = arith.constant 3.125000e-02 : f32
    %22 = vector.broadcast %cst_17 : f32 to vector<128x1xf32>
    %23 = arith.mulf %21, %22 : vector<128x1xf32>
    %24 = vector.broadcast %23 : vector<128x1xf32> to vector<128x128xf32>
    %25 = arith.subf %15, %24 : vector<128x128xf32>
    %26 = vector.broadcast %4 : vector<1x128xf32> to vector<128x128xf32>
    %27 = arith.mulf %25, %26 : vector<128x128xf32>
    %28 = arith.mulf %27, %27 : vector<128x128xf32>
    %cst_18 = arith.constant dense<0.000000e+00> : vector<128xf32>
    %29 = vector.multi_reduction <add>, %28, %cst_18 [1] : vector<128x128xf32> to vector<128xf32>
    %30 = vector.shape_cast %29 : vector<128xf32> to vector<128x1xf32>
    %cst_19 = arith.constant 3.125000e-02 : f32
    %31 = vector.broadcast %cst_19 : f32 to vector<128x1xf32>
    %32 = arith.mulf %30, %31 : vector<128x1xf32>
    %cst_20 = arith.constant 9.99999974E-6 : f32
    %33 = vector.broadcast %cst_20 : f32 to vector<128x1xf32>
    %34 = arith.addf %32, %33 : vector<128x1xf32>
    %35 = math.rsqrt %34 : vector<128x1xf32>
    %36 = vector.broadcast %35 : vector<128x1xf32> to vector<128x128xf32>
    %37 = arith.mulf %27, %36 : vector<128x128xf32>
    %38 = vector.broadcast %17 : vector<1x128xf32> to vector<128x128xf32>
    %39 = arith.mulf %37, %38 : vector<128x128xf32>
    %40 = vector.broadcast %19 : vector<1x128xf32> to vector<128x128xf32>
    %41 = arith.addf %39, %40 : vector<128x128xf32>
    %cst_21 = arith.constant 0.000000e+00 : f32
    %42 = vector.broadcast %cst_21 : f32 to vector<128x128xf32>
    %43 = arith.maximumf %41, %42 : vector<128x128xf32>
    %c0_22 = arith.constant 0 : index
    %c0_23 = arith.constant 0 : index
    %c0_24 = arith.constant 0 : index
    %c0_25 = arith.constant 0 : index
    %44 = vector.load %arg5[%c0_22, %c0_23, %c0_24, %c0_25] : memref<1x2x128x128xbf16, #tpu.memory_space<vmem>>, vector<1x1x128x128xbf16>
    %45 = vector.shape_cast %44 : vector<1x1x128x128xbf16> to vector<128x128xbf16>
    %46 = arith.truncf %43 : vector<128x128xf32> to vector<128x128xbf16>
    %cst_26 = arith.constant dense<0.000000e+00> : vector<128x128xf32>
    %47 = tpu.matmul %46, %45, %cst_26 {dimension_numbers = #tpu.dot_dimension_numbers<[1], [0], [0], [1], [0, 0, 1, 1], [], []>} : vector<128x128xbf16>, vector<128x128xbf16>, vector<128x128xf32> -> vector<128x128xf32>
    %c0_27 = arith.constant 0 : index
    %c0_28 = arith.constant 0 : index
    %c0_29 = arith.constant 0 : index
    %c0_30 = arith.constant 0 : index
    %48 = vector.load %arg6[%c0_27, %c0_28, %c0_29, %c0_30] : memref<1x2x1x128xf32, #tpu.memory_space<vmem>>, vector<1x1x1x128xf32>
    %49 = vector.shape_cast %48 : vector<1x1x1x128xf32> to vector<1x128xf32>
    %50 = vector.broadcast %49 : vector<1x128xf32> to vector<128x128xf32>
    %51 = arith.addf %47, %50 : vector<128x128xf32>
    %c0_31 = arith.constant 0 : index
    %c0_32 = arith.constant 0 : index
    %c0_33 = arith.constant 0 : index
    %c0_34 = arith.constant 0 : index
    %52 = vector.load %arg7[%c0_31, %c0_32, %c0_33, %c0_34] : memref<1x2x1x128xf32, #tpu.memory_space<vmem>>, vector<1x1x1x128xf32>
    %53 = vector.shape_cast %52 : vector<1x1x1x128xf32> to vector<1x128xf32>
    %c0_35 = arith.constant 0 : index
    %c0_36 = arith.constant 0 : index
    %c0_37 = arith.constant 0 : index
    %c0_38 = arith.constant 0 : index
    %54 = vector.load %arg8[%c0_35, %c0_36, %c0_37, %c0_38] : memref<1x2x1x128xf32, #tpu.memory_space<vmem>>, vector<1x1x1x128xf32>
    %55 = vector.shape_cast %54 : vector<1x1x1x128xf32> to vector<1x128xf32>
    %cst_39 = arith.constant dense<0.000000e+00> : vector<128xf32>
    %56 = vector.multi_reduction <add>, %51, %cst_39 [1] : vector<128x128xf32> to vector<128xf32>
    %57 = vector.shape_cast %56 : vector<128xf32> to vector<128x1xf32>
    %cst_40 = arith.constant 6.250000e-02 : f32
    %58 = vector.broadcast %cst_40 : f32 to vector<128x1xf32>
    %59 = arith.mulf %57, %58 : vector<128x1xf32>
    %60 = vector.broadcast %59 : vector<128x1xf32> to vector<128x128xf32>
    %61 = arith.subf %51, %60 : vector<128x128xf32>
    %62 = vector.broadcast %9 : vector<1x128xf32> to vector<128x128xf32>
    %63 = arith.mulf %61, %62 : vector<128x128xf32>
    %64 = arith.mulf %63, %63 : vector<128x128xf32>
    %cst_41 = arith.constant dense<0.000000e+00> : vector<128xf32>
    %65 = vector.multi_reduction <add>, %64, %cst_41 [1] : vector<128x128xf32> to vector<128xf32>
    %66 = vector.shape_cast %65 : vector<128xf32> to vector<128x1xf32>
    %cst_42 = arith.constant 6.250000e-02 : f32
    %67 = vector.broadcast %cst_42 : f32 to vector<128x1xf32>
    %68 = arith.mulf %66, %67 : vector<128x1xf32>
    %cst_43 = arith.constant 9.99999974E-6 : f32
    %69 = vector.broadcast %cst_43 : f32 to vector<128x1xf32>
    %70 = arith.addf %68, %69 : vector<128x1xf32>
    %71 = math.rsqrt %70 : vector<128x1xf32>
    %72 = vector.broadcast %71 : vector<128x1xf32> to vector<128x128xf32>
    %73 = arith.mulf %63, %72 : vector<128x128xf32>
    %74 = vector.broadcast %53 : vector<1x128xf32> to vector<128x128xf32>
    %75 = arith.mulf %73, %74 : vector<128x128xf32>
    %76 = vector.broadcast %55 : vector<1x128xf32> to vector<128x128xf32>
    %77 = arith.addf %75, %76 : vector<128x128xf32>
    %cst_44 = arith.constant 0.000000e+00 : f32
    %78 = vector.broadcast %cst_44 : f32 to vector<128x128xf32>
    %79 = arith.maximumf %77, %78 : vector<128x128xf32>
    %80 = vector.shape_cast %79 : vector<128x128xf32> to vector<8x16x128xf32>
    %c0_45 = arith.constant 0 : index
    %c2 = arith.constant 2 : index
    %c0_46 = arith.constant 0 : index
    %81 = vector.load %arg16[%c0_45, %c2, %c0_46] : memref<8x20x128xf32, #tpu.memory_space<vmem>>, vector<8x16x128xf32>
    tpu.vector_store %arg16[%c0_45, %c2, %c0_46], %80 {strides = array<i32>} : memref<8x20x128xf32, #tpu.memory_space<vmem>>, vector<8x16x128xf32>,
    %c0_47 = arith.constant 0 : index
    %c1 = arith.constant 1 : index
    %c0_48 = arith.constant 0 : index
    %82 = vector.load %arg16[%c0_47, %c1, %c0_48] : memref<8x20x128xf32, #tpu.memory_space<vmem>>, vector<8x16x128xf32>
    %83 = vector.shape_cast %82 : vector<8x16x128xf32> to vector<128x128xf32>
    %c0_49 = arith.constant 0 : index
    %c0_50 = arith.constant 0 : index
    %c0_51 = arith.constant 0 : index
    %c0_52 = arith.constant 0 : index
    %84 = vector.load %arg9[%c0_49, %c0_50, %c0_51, %c0_52] : memref<1x2x384x128xbf16, #tpu.memory_space<vmem>>, vector<1x1x128x128xbf16>
    %85 = vector.shape_cast %84 : vector<1x1x128x128xbf16> to vector<128x128xbf16>
    %86 = arith.truncf %83 : vector<128x128xf32> to vector<128x128xbf16>
    %cst_53 = arith.constant dense<0.000000e+00> : vector<128x128xf32>
    %87 = tpu.matmul %86, %85, %cst_53 {dimension_numbers = #tpu.dot_dimension_numbers<[1], [0], [0], [1], [0, 0, 1, 1], [], []>} : vector<128x128xbf16>, vector<128x128xbf16>, vector<128x128xf32> -> vector<128x128xf32>
    %c0_54 = arith.constant 0 : index
    %c2_55 = arith.constant 2 : index
    %c0_56 = arith.constant 0 : index
    %88 = vector.load %arg16[%c0_54, %c2_55, %c0_56] : memref<8x20x128xf32, #tpu.memory_space<vmem>>, vector<8x16x128xf32>
    %89 = vector.shape_cast %88 : vector<8x16x128xf32> to vector<128x128xf32>
    %c0_57 = arith.constant 0 : index
    %c0_58 = arith.constant 0 : index
    %c128 = arith.constant 128 : index
    %c0_59 = arith.constant 0 : index
    %90 = vector.load %arg9[%c0_57, %c0_58, %c128, %c0_59] : memref<1x2x384x128xbf16, #tpu.memory_space<vmem>>, vector<1x1x128x128xbf16>
    %91 = vector.shape_cast %90 : vector<1x1x128x128xbf16> to vector<128x128xbf16>
    %92 = arith.truncf %89 : vector<128x128xf32> to vector<128x128xbf16>
    %cst_60 = arith.constant dense<0.000000e+00> : vector<128x128xf32>
    %93 = tpu.matmul %92, %91, %cst_60 {dimension_numbers = #tpu.dot_dimension_numbers<[1], [0], [0], [1], [0, 0, 1, 1], [], []>} : vector<128x128xbf16>, vector<128x128xbf16>, vector<128x128xf32> -> vector<128x128xf32>
    %94 = arith.addf %87, %93 : vector<128x128xf32>
    %c0_61 = arith.constant 0 : index
    %c3 = arith.constant 3 : index
    %c0_62 = arith.constant 0 : index
    %95 = vector.load %arg16[%c0_61, %c3, %c0_62] : memref<8x20x128xf32, #tpu.memory_space<vmem>>, vector<8x16x128xf32>
    %96 = vector.shape_cast %95 : vector<8x16x128xf32> to vector<128x128xf32>
    %c0_63 = arith.constant 0 : index
    %c0_64 = arith.constant 0 : index
    %c256 = arith.constant 256 : index
    %c0_65 = arith.constant 0 : index
    %97 = vector.load %arg9[%c0_63, %c0_64, %c256, %c0_65] : memref<1x2x384x128xbf16, #tpu.memory_space<vmem>>, vector<1x1x128x128xbf16>
    %98 = vector.shape_cast %97 : vector<1x1x128x128xbf16> to vector<128x128xbf16>
    %99 = arith.truncf %96 : vector<128x128xf32> to vector<128x128xbf16>
    %cst_66 = arith.constant dense<0.000000e+00> : vector<128x128xf32>
    %100 = tpu.matmul %99, %98, %cst_66 {dimension_numbers = #tpu.dot_dimension_numbers<[1], [0], [0], [1], [0, 0, 1, 1], [], []>} : vector<128x128xbf16>, vector<128x128xbf16>, vector<128x128xf32> -> vector<128x128xf32>
    %101 = arith.addf %94, %100 : vector<128x128xf32>
    %c0_67 = arith.constant 0 : index
    %c0_68 = arith.constant 0 : index
    %c0_69 = arith.constant 0 : index
    %c0_70 = arith.constant 0 : index
    %102 = vector.load %arg10[%c0_67, %c0_68, %c0_69, %c0_70] : memref<1x2x1x128xf32, #tpu.memory_space<vmem>>, vector<1x1x1x128xf32>
    %103 = vector.shape_cast %102 : vector<1x1x1x128xf32> to vector<1x128xf32>
    %104 = vector.broadcast %103 : vector<1x128xf32> to vector<128x128xf32>
    %105 = arith.addf %101, %104 : vector<128x128xf32>
    %c0_71 = arith.constant 0 : index
    %c0_72 = arith.constant 0 : index
    %c0_73 = arith.constant 0 : index
    %c0_74 = arith.constant 0 : index
    %106 = vector.load %arg11[%c0_71, %c0_72, %c0_73, %c0_74] : memref<1x2x1x128xf32, #tpu.memory_space<vmem>>, vector<1x1x1x128xf32>
    %107 = vector.shape_cast %106 : vector<1x1x1x128xf32> to vector<1x128xf32>
    %c0_75 = arith.constant 0 : index
    %c0_76 = arith.constant 0 : index
    %c0_77 = arith.constant 0 : index
    %c0_78 = arith.constant 0 : index
    %108 = vector.load %arg12[%c0_75, %c0_76, %c0_77, %c0_78] : memref<1x2x1x128xf32, #tpu.memory_space<vmem>>, vector<1x1x1x128xf32>
    %109 = vector.shape_cast %108 : vector<1x1x1x128xf32> to vector<1x128xf32>
    %cst_79 = arith.constant dense<0.000000e+00> : vector<128xf32>
    %110 = vector.multi_reduction <add>, %105, %cst_79 [1] : vector<128x128xf32> to vector<128xf32>
    %111 = vector.shape_cast %110 : vector<128xf32> to vector<128x1xf32>
    %cst_80 = arith.constant 6.250000e-02 : f32
    %112 = vector.broadcast %cst_80 : f32 to vector<128x1xf32>
    %113 = arith.mulf %111, %112 : vector<128x1xf32>
    %114 = vector.broadcast %113 : vector<128x1xf32> to vector<128x128xf32>
    %115 = arith.subf %105, %114 : vector<128x128xf32>
    %116 = vector.broadcast %9 : vector<1x128xf32> to vector<128x128xf32>
    %117 = arith.mulf %115, %116 : vector<128x128xf32>
    %118 = arith.mulf %117, %117 : vector<128x128xf32>
    %cst_81 = arith.constant dense<0.000000e+00> : vector<128xf32>
    %119 = vector.multi_reduction <add>, %118, %cst_81 [1] : vector<128x128xf32> to vector<128xf32>
    %120 = vector.shape_cast %119 : vector<128xf32> to vector<128x1xf32>
    %cst_82 = arith.constant 6.250000e-02 : f32
    %121 = vector.broadcast %cst_82 : f32 to vector<128x1xf32>
    %122 = arith.mulf %120, %121 : vector<128x1xf32>
    %cst_83 = arith.constant 9.99999974E-6 : f32
    %123 = vector.broadcast %cst_83 : f32 to vector<128x1xf32>
    %124 = arith.addf %122, %123 : vector<128x1xf32>
    %125 = math.rsqrt %124 : vector<128x1xf32>
    %126 = vector.broadcast %125 : vector<128x1xf32> to vector<128x128xf32>
    %127 = arith.mulf %117, %126 : vector<128x128xf32>
    %128 = vector.broadcast %107 : vector<1x128xf32> to vector<128x128xf32>
    %129 = arith.mulf %127, %128 : vector<128x128xf32>
    %130 = vector.broadcast %109 : vector<1x128xf32> to vector<128x128xf32>
    %131 = arith.addf %129, %130 : vector<128x128xf32>
    %cst_84 = arith.constant 0.000000e+00 : f32
    %132 = vector.broadcast %cst_84 : f32 to vector<128x128xf32>
    %133 = arith.maximumf %131, %132 : vector<128x128xf32>
    %c0_85 = arith.constant 0 : index
    %c0_86 = arith.constant 0 : index
    %c0_87 = arith.constant 0 : index
    %c0_88 = arith.constant 0 : index
    %134 = vector.load %arg13[%c0_85, %c0_86, %c0_87, %c0_88] : memref<1x2x128x128xbf16, #tpu.memory_space<vmem>>, vector<1x1x128x128xbf16>
    %135 = vector.shape_cast %134 : vector<1x1x128x128xbf16> to vector<128x128xbf16>
    %136 = arith.truncf %133 : vector<128x128xf32> to vector<128x128xbf16>
    %cst_89 = arith.constant dense<0.000000e+00> : vector<128x128xf32>
    %137 = tpu.matmul %136, %135, %cst_89 {dimension_numbers = #tpu.dot_dimension_numbers<[1], [0], [0], [1], [0, 0, 1, 1], [], []>} : vector<128x128xbf16>, vector<128x128xbf16>, vector<128x128xf32> -> vector<128x128xf32>
    %c0_90 = arith.constant 0 : index
    %c0_91 = arith.constant 0 : index
    %c0_92 = arith.constant 0 : index
    %c0_93 = arith.constant 0 : index
    %138 = vector.load %arg14[%c0_90, %c0_91, %c0_92, %c0_93] : memref<1x2x1x128xf32, #tpu.memory_space<vmem>>, vector<1x1x1x128xf32>
    %139 = vector.shape_cast %138 : vector<1x1x1x128xf32> to vector<1x128xf32>
    %140 = vector.broadcast %139 : vector<1x128xf32> to vector<128x128xf32>
    %141 = arith.addf %137, %140 : vector<128x128xf32>
    %142 = arith.addf %15, %141 : vector<128x128xf32>
    %c0_94 = arith.constant 0 : index
    %c1_95 = arith.constant 1 : index
    %c0_96 = arith.constant 0 : index
    %c0_97 = arith.constant 0 : index
    %143 = vector.load %arg3[%c0_94, %c1_95, %c0_96, %c0_97] : memref<1x2x1x128xf32, #tpu.memory_space<vmem>>, vector<1x1x1x128xf32>
    %144 = vector.shape_cast %143 : vector<1x1x1x128xf32> to vector<1x128xf32>
    %c0_98 = arith.constant 0 : index
    %c1_99 = arith.constant 1 : index
    %c0_100 = arith.constant 0 : index
    %c0_101 = arith.constant 0 : index
    %145 = vector.load %arg4[%c0_98, %c1_99, %c0_100, %c0_101] : memref<1x2x1x128xf32, #tpu.memory_space<vmem>>, vector<1x1x1x128xf32>
    %146 = vector.shape_cast %145 : vector<1x1x1x128xf32> to vector<1x128xf32>
    %cst_102 = arith.constant dense<0.000000e+00> : vector<128xf32>
    %147 = vector.multi_reduction <add>, %142, %cst_102 [1] : vector<128x128xf32> to vector<128xf32>
    %148 = vector.shape_cast %147 : vector<128xf32> to vector<128x1xf32>
    %cst_103 = arith.constant 3.125000e-02 : f32
    %149 = vector.broadcast %cst_103 : f32 to vector<128x1xf32>
    %150 = arith.mulf %148, %149 : vector<128x1xf32>
    %151 = vector.broadcast %150 : vector<128x1xf32> to vector<128x128xf32>
    %152 = arith.subf %142, %151 : vector<128x128xf32>
    %153 = vector.broadcast %4 : vector<1x128xf32> to vector<128x128xf32>
    %154 = arith.mulf %152, %153 : vector<128x128xf32>
    %155 = arith.mulf %154, %154 : vector<128x128xf32>
    %cst_104 = arith.constant dense<0.000000e+00> : vector<128xf32>
    %156 = vector.multi_reduction <add>, %155, %cst_104 [1] : vector<128x128xf32> to vector<128xf32>
    %157 = vector.shape_cast %156 : vector<128xf32> to vector<128x1xf32>
    %cst_105 = arith.constant 3.125000e-02 : f32
    %158 = vector.broadcast %cst_105 : f32 to vector<128x1xf32>
    %159 = arith.mulf %157, %158 : vector<128x1xf32>
    %cst_106 = arith.constant 9.99999974E-6 : f32
    %160 = vector.broadcast %cst_106 : f32 to vector<128x1xf32>
    %161 = arith.addf %159, %160 : vector<128x1xf32>
    %162 = math.rsqrt %161 : vector<128x1xf32>
    %163 = vector.broadcast %162 : vector<128x1xf32> to vector<128x128xf32>
    %164 = arith.mulf %154, %163 : vector<128x128xf32>
    %165 = vector.broadcast %144 : vector<1x128xf32> to vector<128x128xf32>
    %166 = arith.mulf %164, %165 : vector<128x128xf32>
    %167 = vector.broadcast %146 : vector<1x128xf32> to vector<128x128xf32>
    %168 = arith.addf %166, %167 : vector<128x128xf32>
    %cst_107 = arith.constant 0.000000e+00 : f32
    %169 = vector.broadcast %cst_107 : f32 to vector<128x128xf32>
    %170 = arith.maximumf %168, %169 : vector<128x128xf32>
    %c0_108 = arith.constant 0 : index
    %c1_109 = arith.constant 1 : index
    %c0_110 = arith.constant 0 : index
    %c0_111 = arith.constant 0 : index
    %171 = vector.load %arg5[%c0_108, %c1_109, %c0_110, %c0_111] : memref<1x2x128x128xbf16, #tpu.memory_space<vmem>>, vector<1x1x128x128xbf16>
    %172 = vector.shape_cast %171 : vector<1x1x128x128xbf16> to vector<128x128xbf16>
    %173 = arith.truncf %170 : vector<128x128xf32> to vector<128x128xbf16>
    %cst_112 = arith.constant dense<0.000000e+00> : vector<128x128xf32>
    %174 = tpu.matmul %173, %172, %cst_112 {dimension_numbers = #tpu.dot_dimension_numbers<[1], [0], [0], [1], [0, 0, 1, 1], [], []>} : vector<128x128xbf16>, vector<128x128xbf16>, vector<128x128xf32> -> vector<128x128xf32>
    %c0_113 = arith.constant 0 : index
    %c1_114 = arith.constant 1 : index
    %c0_115 = arith.constant 0 : index
    %c0_116 = arith.constant 0 : index
    %175 = vector.load %arg6[%c0_113, %c1_114, %c0_115, %c0_116] : memref<1x2x1x128xf32, #tpu.memory_space<vmem>>, vector<1x1x1x128xf32>
    %176 = vector.shape_cast %175 : vector<1x1x1x128xf32> to vector<1x128xf32>
    %177 = vector.broadcast %176 : vector<1x128xf32> to vector<128x128xf32>
    %178 = arith.addf %174, %177 : vector<128x128xf32>
    %c0_117 = arith.constant 0 : index
    %c1_118 = arith.constant 1 : index
    %c0_119 = arith.constant 0 : index
    %c0_120 = arith.constant 0 : index
    %179 = vector.load %arg7[%c0_117, %c1_118, %c0_119, %c0_120] : memref<1x2x1x128xf32, #tpu.memory_space<vmem>>, vector<1x1x1x128xf32>
    %180 = vector.shape_cast %179 : vector<1x1x1x128xf32> to vector<1x128xf32>
    %c0_121 = arith.constant 0 : index
    %c1_122 = arith.constant 1 : index
    %c0_123 = arith.constant 0 : index
    %c0_124 = arith.constant 0 : index
    %181 = vector.load %arg8[%c0_121, %c1_122, %c0_123, %c0_124] : memref<1x2x1x128xf32, #tpu.memory_space<vmem>>, vector<1x1x1x128xf32>
    %182 = vector.shape_cast %181 : vector<1x1x1x128xf32> to vector<1x128xf32>
    %cst_125 = arith.constant dense<0.000000e+00> : vector<128xf32>
    %183 = vector.multi_reduction <add>, %178, %cst_125 [1] : vector<128x128xf32> to vector<128xf32>
    %184 = vector.shape_cast %183 : vector<128xf32> to vector<128x1xf32>
    %cst_126 = arith.constant 6.250000e-02 : f32
    %185 = vector.broadcast %cst_126 : f32 to vector<128x1xf32>
    %186 = arith.mulf %184, %185 : vector<128x1xf32>
    %187 = vector.broadcast %186 : vector<128x1xf32> to vector<128x128xf32>
    %188 = arith.subf %178, %187 : vector<128x128xf32>
    %189 = vector.broadcast %9 : vector<1x128xf32> to vector<128x128xf32>
    %190 = arith.mulf %188, %189 : vector<128x128xf32>
    %191 = arith.mulf %190, %190 : vector<128x128xf32>
    %cst_127 = arith.constant dense<0.000000e+00> : vector<128xf32>
    %192 = vector.multi_reduction <add>, %191, %cst_127 [1] : vector<128x128xf32> to vector<128xf32>
    %193 = vector.shape_cast %192 : vector<128xf32> to vector<128x1xf32>
    %cst_128 = arith.constant 6.250000e-02 : f32
    %194 = vector.broadcast %cst_128 : f32 to vector<128x1xf32>
    %195 = arith.mulf %193, %194 : vector<128x1xf32>
    %cst_129 = arith.constant 9.99999974E-6 : f32
    %196 = vector.broadcast %cst_129 : f32 to vector<128x1xf32>
    %197 = arith.addf %195, %196 : vector<128x1xf32>
    %198 = math.rsqrt %197 : vector<128x1xf32>
    %199 = vector.broadcast %198 : vector<128x1xf32> to vector<128x128xf32>
    %200 = arith.mulf %190, %199 : vector<128x128xf32>
    %201 = vector.broadcast %180 : vector<1x128xf32> to vector<128x128xf32>
    %202 = arith.mulf %200, %201 : vector<128x128xf32>
    %203 = vector.broadcast %182 : vector<1x128xf32> to vector<128x128xf32>
    %204 = arith.addf %202, %203 : vector<128x128xf32>
    %cst_130 = arith.constant 0.000000e+00 : f32
    %205 = vector.broadcast %cst_130 : f32 to vector<128x128xf32>
    %206 = arith.maximumf %204, %205 : vector<128x128xf32>
    %207 = vector.shape_cast %206 : vector<128x128xf32> to vector<8x16x128xf32>
    %c0_131 = arith.constant 0 : index
    %c2_132 = arith.constant 2 : index
    %c0_133 = arith.constant 0 : index
    %208 = vector.load %arg16[%c0_131, %c2_132, %c0_133] : memref<8x20x128xf32, #tpu.memory_space<vmem>>, vector<8x16x128xf32>
    tpu.vector_store %arg16[%c0_131, %c2_132, %c0_133], %207 {strides = array<i32>} : memref<8x20x128xf32, #tpu.memory_space<vmem>>, vector<8x16x128xf32>,
    %c0_134 = arith.constant 0 : index
    %c0_135 = arith.constant 0 : index
    %c0_136 = arith.constant 0 : index
    %209 = vector.load %arg16[%c0_134, %c0_135, %c0_136] : memref<8x20x128xf32, #tpu.memory_space<vmem>>, vector<8x16x128xf32>
    %210 = vector.shape_cast %209 : vector<8x16x128xf32> to vector<128x128xf32>
    %c0_137 = arith.constant 0 : index
    %c1_138 = arith.constant 1 : index
    %c0_139 = arith.constant 0 : index
    %c0_140 = arith.constant 0 : index
    %211 = vector.load %arg9[%c0_137, %c1_138, %c0_139, %c0_140] : memref<1x2x384x128xbf16, #tpu.memory_space<vmem>>, vector<1x1x128x128xbf16>
    %212 = vector.shape_cast %211 : vector<1x1x128x128xbf16> to vector<128x128xbf16>
    %213 = arith.truncf %210 : vector<128x128xf32> to vector<128x128xbf16>
    %cst_141 = arith.constant dense<0.000000e+00> : vector<128x128xf32>
    %214 = tpu.matmul %213, %212, %cst_141 {dimension_numbers = #tpu.dot_dimension_numbers<[1], [0], [0], [1], [0, 0, 1, 1], [], []>} : vector<128x128xbf16>, vector<128x128xbf16>, vector<128x128xf32> -> vector<128x128xf32>
    %c0_142 = arith.constant 0 : index
    %c2_143 = arith.constant 2 : index
    %c0_144 = arith.constant 0 : index
    %215 = vector.load %arg16[%c0_142, %c2_143, %c0_144] : memref<8x20x128xf32, #tpu.memory_space<vmem>>, vector<8x16x128xf32>
    %216 = vector.shape_cast %215 : vector<8x16x128xf32> to vector<128x128xf32>
    %c0_145 = arith.constant 0 : index
    %c1_146 = arith.constant 1 : index
    %c128_147 = arith.constant 128 : index
    %c0_148 = arith.constant 0 : index
    %217 = vector.load %arg9[%c0_145, %c1_146, %c128_147, %c0_148] : memref<1x2x384x128xbf16, #tpu.memory_space<vmem>>, vector<1x1x128x128xbf16>
    %218 = vector.shape_cast %217 : vector<1x1x128x128xbf16> to vector<128x128xbf16>
    %219 = arith.truncf %216 : vector<128x128xf32> to vector<128x128xbf16>
    %cst_149 = arith.constant dense<0.000000e+00> : vector<128x128xf32>
    %220 = tpu.matmul %219, %218, %cst_149 {dimension_numbers = #tpu.dot_dimension_numbers<[1], [0], [0], [1], [0, 0, 1, 1], [], []>} : vector<128x128xbf16>, vector<128x128xbf16>, vector<128x128xf32> -> vector<128x128xf32>
    %221 = arith.addf %214, %220 : vector<128x128xf32>
    %c0_150 = arith.constant 0 : index
    %c4 = arith.constant 4 : index
    %c0_151 = arith.constant 0 : index
    %222 = vector.load %arg16[%c0_150, %c4, %c0_151] : memref<8x20x128xf32, #tpu.memory_space<vmem>>, vector<8x16x128xf32>
    %223 = vector.shape_cast %222 : vector<8x16x128xf32> to vector<128x128xf32>
    %c0_152 = arith.constant 0 : index
    %c1_153 = arith.constant 1 : index
    %c256_154 = arith.constant 256 : index
    %c0_155 = arith.constant 0 : index
    %224 = vector.load %arg9[%c0_152, %c1_153, %c256_154, %c0_155] : memref<1x2x384x128xbf16, #tpu.memory_space<vmem>>, vector<1x1x128x128xbf16>
    %225 = vector.shape_cast %224 : vector<1x1x128x128xbf16> to vector<128x128xbf16>
    %226 = arith.truncf %223 : vector<128x128xf32> to vector<128x128xbf16>
    %cst_156 = arith.constant dense<0.000000e+00> : vector<128x128xf32>
    %227 = tpu.matmul %226, %225, %cst_156 {dimension_numbers = #tpu.dot_dimension_numbers<[1], [0], [0], [1], [0, 0, 1, 1], [], []>} : vector<128x128xbf16>, vector<128x128xbf16>, vector<128x128xf32> -> vector<128x128xf32>
    %228 = arith.addf %221, %227 : vector<128x128xf32>
    %c0_157 = arith.constant 0 : index
    %c1_158 = arith.constant 1 : index
    %c0_159 = arith.constant 0 : index
    %c0_160 = arith.constant 0 : index
    %229 = vector.load %arg10[%c0_157, %c1_158, %c0_159, %c0_160] : memref<1x2x1x128xf32, #tpu.memory_space<vmem>>, vector<1x1x1x128xf32>
    %230 = vector.shape_cast %229 : vector<1x1x1x128xf32> to vector<1x128xf32>
    %231 = vector.broadcast %230 : vector<1x128xf32> to vector<128x128xf32>
    %232 = arith.addf %228, %231 : vector<128x128xf32>
    %c0_161 = arith.constant 0 : index
    %c1_162 = arith.constant 1 : index
    %c0_163 = arith.constant 0 : index
    %c0_164 = arith.constant 0 : index
    %233 = vector.load %arg11[%c0_161, %c1_162, %c0_163, %c0_164] : memref<1x2x1x128xf32, #tpu.memory_space<vmem>>, vector<1x1x1x128xf32>
    %234 = vector.shape_cast %233 : vector<1x1x1x128xf32> to vector<1x128xf32>
    %c0_165 = arith.constant 0 : index
    %c1_166 = arith.constant 1 : index
    %c0_167 = arith.constant 0 : index
    %c0_168 = arith.constant 0 : index
    %235 = vector.load %arg12[%c0_165, %c1_166, %c0_167, %c0_168] : memref<1x2x1x128xf32, #tpu.memory_space<vmem>>, vector<1x1x1x128xf32>
    %236 = vector.shape_cast %235 : vector<1x1x1x128xf32> to vector<1x128xf32>
    %cst_169 = arith.constant dense<0.000000e+00> : vector<128xf32>
    %237 = vector.multi_reduction <add>, %232, %cst_169 [1] : vector<128x128xf32> to vector<128xf32>
    %238 = vector.shape_cast %237 : vector<128xf32> to vector<128x1xf32>
    %cst_170 = arith.constant 6.250000e-02 : f32
    %239 = vector.broadcast %cst_170 : f32 to vector<128x1xf32>
    %240 = arith.mulf %238, %239 : vector<128x1xf32>
    %241 = vector.broadcast %240 : vector<128x1xf32> to vector<128x128xf32>
    %242 = arith.subf %232, %241 : vector<128x128xf32>
    %243 = vector.broadcast %9 : vector<1x128xf32> to vector<128x128xf32>
    %244 = arith.mulf %242, %243 : vector<128x128xf32>
    %245 = arith.mulf %244, %244 : vector<128x128xf32>
    %cst_171 = arith.constant dense<0.000000e+00> : vector<128xf32>
    %246 = vector.multi_reduction <add>, %245, %cst_171 [1] : vector<128x128xf32> to vector<128xf32>
    %247 = vector.shape_cast %246 : vector<128xf32> to vector<128x1xf32>
    %cst_172 = arith.constant 6.250000e-02 : f32
    %248 = vector.broadcast %cst_172 : f32 to vector<128x1xf32>
    %249 = arith.mulf %247, %248 : vector<128x1xf32>
    %cst_173 = arith.constant 9.99999974E-6 : f32
    %250 = vector.broadcast %cst_173 : f32 to vector<128x1xf32>
    %251 = arith.addf %249, %250 : vector<128x1xf32>
    %252 = math.rsqrt %251 : vector<128x1xf32>
    %253 = vector.broadcast %252 : vector<128x1xf32> to vector<128x128xf32>
    %254 = arith.mulf %244, %253 : vector<128x128xf32>
    %255 = vector.broadcast %234 : vector<1x128xf32> to vector<128x128xf32>
    %256 = arith.mulf %254, %255 : vector<128x128xf32>
    %257 = vector.broadcast %236 : vector<1x128xf32> to vector<128x128xf32>
    %258 = arith.addf %256, %257 : vector<128x128xf32>
    %cst_174 = arith.constant 0.000000e+00 : f32
    %259 = vector.broadcast %cst_174 : f32 to vector<128x128xf32>
    %260 = arith.maximumf %258, %259 : vector<128x128xf32>
    %c0_175 = arith.constant 0 : index
    %c1_176 = arith.constant 1 : index
    %c0_177 = arith.constant 0 : index
    %c0_178 = arith.constant 0 : index
    %261 = vector.load %arg13[%c0_175, %c1_176, %c0_177, %c0_178] : memref<1x2x128x128xbf16, #tpu.memory_space<vmem>>, vector<1x1x128x128xbf16>
    %262 = vector.shape_cast %261 : vector<1x1x128x128xbf16> to vector<128x128xbf16>
    %263 = arith.truncf %260 : vector<128x128xf32> to vector<128x128xbf16>
    %cst_179 = arith.constant dense<0.000000e+00> : vector<128x128xf32>
    %264 = tpu.matmul %263, %262, %cst_179 {dimension_numbers = #tpu.dot_dimension_numbers<[1], [0], [0], [1], [0, 0, 1, 1], [], []>} : vector<128x128xbf16>, vector<128x128xbf16>, vector<128x128xf32> -> vector<128x128xf32>
    %c0_180 = arith.constant 0 : index
    %c1_181 = arith.constant 1 : index
    %c0_182 = arith.constant 0 : index
    %c0_183 = arith.constant 0 : index
    %265 = vector.load %arg14[%c0_180, %c1_181, %c0_182, %c0_183] : memref<1x2x1x128xf32, #tpu.memory_space<vmem>>, vector<1x1x1x128xf32>
    %266 = vector.shape_cast %265 : vector<1x1x1x128xf32> to vector<1x128xf32>
    %267 = vector.broadcast %266 : vector<1x128xf32> to vector<128x128xf32>
    %268 = arith.addf %264, %267 : vector<128x128xf32>
    %269 = arith.addf %142, %268 : vector<128x128xf32>
    %270 = vector.shape_cast %269 : vector<128x128xf32> to vector<8x16x128xf32>
    %c0_184 = arith.constant 0 : index
    %c0_185 = arith.constant 0 : index
    %c0_186 = arith.constant 0 : index
    %271 = vector.load %arg15[%c0_184, %c0_185, %c0_186] : memref<8x16x128xf32, #tpu.memory_space<vmem>>, vector<8x16x128xf32>
    tpu.vector_store %arg15[%c0_184, %c0_185, %c0_186], %270 {strides = array<i32>} : memref<8x16x128xf32, #tpu.memory_space<vmem>>, vector<8x16x128xf32>,
    return
  }
  func.func @transform_0(%arg0: i32, %arg1: memref<2xi32, #tpu.memory_space<smem>>) -> (i32, i32, i32) {
    %c0_i32 = arith.constant 0 : i32
    %c0_i32_0 = arith.constant 0 : i32
    %c0_i32_1 = arith.constant 0 : i32
    return %arg0, %c0_i32, %c0_i32_0 : i32, i32, i32
  }
  func.func @transform_1(%arg0: i32, %arg1: memref<2xi32, #tpu.memory_space<smem>>) -> (i32, i32, i32, i32) {
    %0 = arith.index_cast %arg0 : i32 to index
    %1 = memref.load %arg1[%0] : memref<2xi32, #tpu.memory_space<smem>>
    %c0_i32 = arith.constant 0 : i32
    %c0_i32_0 = arith.constant 0 : i32
    %c0_i32_1 = arith.constant 0 : i32
    %c0_i32_2 = arith.constant 0 : i32
    return %1, %c0_i32, %c0_i32_0, %c0_i32_1 : i32, i32, i32, i32
  }
  func.func @transform_2(%arg0: i32, %arg1: memref<2xi32, #tpu.memory_space<smem>>) -> (i32, i32, i32, i32) {
    %0 = arith.index_cast %arg0 : i32 to index
    %1 = memref.load %arg1[%0] : memref<2xi32, #tpu.memory_space<smem>>
    %c0_i32 = arith.constant 0 : i32
    %c0_i32_0 = arith.constant 0 : i32
    %c0_i32_1 = arith.constant 0 : i32
    %c0_i32_2 = arith.constant 0 : i32
    return %1, %c0_i32, %c0_i32_0, %c0_i32_1 : i32, i32, i32, i32
  }
  func.func @transform_3(%arg0: i32, %arg1: memref<2xi32, #tpu.memory_space<smem>>) -> (i32, i32, i32, i32) {
    %0 = arith.index_cast %arg0 : i32 to index
    %1 = memref.load %arg1[%0] : memref<2xi32, #tpu.memory_space<smem>>
    %c0_i32 = arith.constant 0 : i32
    %c0_i32_0 = arith.constant 0 : i32
    %c0_i32_1 = arith.constant 0 : i32
    %c0_i32_2 = arith.constant 0 : i32
    return %1, %c0_i32, %c0_i32_0, %c0_i32_1 : i32, i32, i32, i32
  }
  func.func @transform_4(%arg0: i32, %arg1: memref<2xi32, #tpu.memory_space<smem>>) -> (i32, i32, i32, i32) {
    %0 = arith.index_cast %arg0 : i32 to index
    %1 = memref.load %arg1[%0] : memref<2xi32, #tpu.memory_space<smem>>
    %c0_i32 = arith.constant 0 : i32
    %c0_i32_0 = arith.constant 0 : i32
    %c0_i32_1 = arith.constant 0 : i32
    %c0_i32_2 = arith.constant 0 : i32
    return %1, %c0_i32, %c0_i32_0, %c0_i32_1 : i32, i32, i32, i32
  }
  func.func @transform_5(%arg0: i32, %arg1: memref<2xi32, #tpu.memory_space<smem>>) -> (i32, i32, i32, i32) {
    %0 = arith.index_cast %arg0 : i32 to index
    %1 = memref.load %arg1[%0] : memref<2xi32, #tpu.memory_space<smem>>
    %c0_i32 = arith.constant 0 : i32
    %c0_i32_0 = arith.constant 0 : i32
    %c0_i32_1 = arith.constant 0 : i32
    %c0_i32_2 = arith.constant 0 : i32
    return %1, %c0_i32, %c0_i32_0, %c0_i32_1 : i32, i32, i32, i32
  }
  func.func @transform_6(%arg0: i32, %arg1: memref<2xi32, #tpu.memory_space<smem>>) -> (i32, i32, i32, i32) {
    %0 = arith.index_cast %arg0 : i32 to index
    %1 = memref.load %arg1[%0] : memref<2xi32, #tpu.memory_space<smem>>
    %c0_i32 = arith.constant 0 : i32
    %c0_i32_0 = arith.constant 0 : i32
    %c0_i32_1 = arith.constant 0 : i32
    %c0_i32_2 = arith.constant 0 : i32
    return %1, %c0_i32, %c0_i32_0, %c0_i32_1 : i32, i32, i32, i32
  }
  func.func @transform_7(%arg0: i32, %arg1: memref<2xi32, #tpu.memory_space<smem>>) -> (i32, i32, i32, i32) {
    %0 = arith.index_cast %arg0 : i32 to index
    %1 = memref.load %arg1[%0] : memref<2xi32, #tpu.memory_space<smem>>
    %c0_i32 = arith.constant 0 : i32
    %c0_i32_0 = arith.constant 0 : i32
    %c0_i32_1 = arith.constant 0 : i32
    %c0_i32_2 = arith.constant 0 : i32
    return %1, %c0_i32, %c0_i32_0, %c0_i32_1 : i32, i32, i32, i32
  }
  func.func @transform_8(%arg0: i32, %arg1: memref<2xi32, #tpu.memory_space<smem>>) -> (i32, i32, i32, i32) {
    %0 = arith.index_cast %arg0 : i32 to index
    %1 = memref.load %arg1[%0] : memref<2xi32, #tpu.memory_space<smem>>
    %c0_i32 = arith.constant 0 : i32
    %c0_i32_0 = arith.constant 0 : i32
    %c0_i32_1 = arith.constant 0 : i32
    %c0_i32_2 = arith.constant 0 : i32
    return %1, %c0_i32, %c0_i32_0, %c0_i32_1 : i32, i32, i32, i32
  }
  func.func @transform_9(%arg0: i32, %arg1: memref<2xi32, #tpu.memory_space<smem>>) -> (i32, i32, i32, i32) {
    %0 = arith.index_cast %arg0 : i32 to index
    %1 = memref.load %arg1[%0] : memref<2xi32, #tpu.memory_space<smem>>
    %c0_i32 = arith.constant 0 : i32
    %c0_i32_0 = arith.constant 0 : i32
    %c0_i32_1 = arith.constant 0 : i32
    %c0_i32_2 = arith.constant 0 : i32
    return %1, %c0_i32, %c0_i32_0, %c0_i32_1 : i32, i32, i32, i32
  }
  func.func @transform_10(%arg0: i32, %arg1: memref<2xi32, #tpu.memory_space<smem>>) -> (i32, i32, i32, i32) {
    %0 = arith.index_cast %arg0 : i32 to index
    %1 = memref.load %arg1[%0] : memref<2xi32, #tpu.memory_space<smem>>
    %c0_i32 = arith.constant 0 : i32
    %c0_i32_0 = arith.constant 0 : i32
    %c0_i32_1 = arith.constant 0 : i32
    %c0_i32_2 = arith.constant 0 : i32
    return %1, %c0_i32, %c0_i32_0, %c0_i32_1 : i32, i32, i32, i32
  }
  func.func @transform_11(%arg0: i32, %arg1: memref<2xi32, #tpu.memory_space<smem>>) -> (i32, i32, i32, i32) {
    %0 = arith.index_cast %arg0 : i32 to index
    %1 = memref.load %arg1[%0] : memref<2xi32, #tpu.memory_space<smem>>
    %c0_i32 = arith.constant 0 : i32
    %c0_i32_0 = arith.constant 0 : i32
    %c0_i32_1 = arith.constant 0 : i32
    %c0_i32_2 = arith.constant 0 : i32
    return %1, %c0_i32, %c0_i32_0, %c0_i32_1 : i32, i32, i32, i32
  }
  func.func @transform_12(%arg0: i32, %arg1: memref<2xi32, #tpu.memory_space<smem>>) -> (i32, i32, i32, i32) {
    %0 = arith.index_cast %arg0 : i32 to index
    %1 = memref.load %arg1[%0] : memref<2xi32, #tpu.memory_space<smem>>
    %c0_i32 = arith.constant 0 : i32
    %c0_i32_0 = arith.constant 0 : i32
    %c0_i32_1 = arith.constant 0 : i32
    %c0_i32_2 = arith.constant 0 : i32
    return %1, %c0_i32, %c0_i32_0, %c0_i32_1 : i32, i32, i32, i32
  }
  func.func @transform_13(%arg0: i32, %arg1: memref<2xi32, #tpu.memory_space<smem>>) -> (i32, i32, i32) {
    %c0_i32 = arith.constant 0 : i32
    %c0_i32_0 = arith.constant 0 : i32
    %c0_i32_1 = arith.constant 0 : i32
    return %arg0, %c0_i32, %c0_i32_0 : i32, i32, i32
  }
}

</mosaic_0001>

<bundles_post_ra>
// kernel: dualconv_stack_forward.1
= control target key start
LH: loop header
LB: loop body
LE: loop exit
PB: predicated region body
PF: predicated region fallthrough
CT: control target
= control target key end

     0   :  { %s6534_s29 = smov [#allocation4]   ;;  %s9039_s0 = inlined_call_operand.hbm [shape: s32[2], index: 0, kind: input, shape index: {}]   ;;  %s9040_s1 = inlined_call_operand.hbm [shape: f32[16,16,128], index: 1, kind: input, shape index: {}]   ;;  %s9041_s2 = inlined_call_operand.hbm [shape: f32[2,2,1,128], index: 2, kind: input, shape index: {}]   ;;  %s9042_s3 = inlined_call_operand.vmem [shape: f32[2,2,1,128], index: 3, kind: input, shape index: {}]   ;;  %s9043_s4 = inlined_call_operand.hbm [shape: bf16[2,2,128,128], index: 4, kind: input, shape index: {}]   ;;  %s9044_s5 = inlined_call_operand.vmem [shape: f32[2,2,1,128], index: 5, kind: input, shape index: {}]   ;;  %s9045_s6 = inlined_call_operand.hbm [shape: f32[2,2,1,128], index: 6, kind: input, shape index: {}]   ;;  %s9046_s7 = inlined_call_operand.vmem [shape: f32[2,2,1,128], index: 7, kind: input, shape index: {}]   ;;  %s9047_s8 = inlined_call_operand.hbm [shape: bf16[2,2,384,128], index: 8, kind: input, shape index: {}]   ;;  %s9048_s9 = inlined_call_operand.vmem [shape: f32[2,2,1,128], index: 9, kind: input, shape index: {}]   ;;  %s9049_s10 = inlined_call_operand.hbm [shape: f32[2,2,1,128], index: 10, kind: input, shape index: {}]   ;;  %s9050_s11 = inlined_call_operand.vmem [shape: f32[2,2,1,128], index: 11, kind: input, shape index: {}]   ;;  %s9051_s12 = inlined_call_operand.hbm [shape: bf16[2,2,128,128], index: 12, kind: input, shape index: {}]   ;;  %s9052_s13 = inlined_call_operand.hbm [shape: f32[2,2,1,128], index: 13, kind: input, shape index: {}]   ;;  %s9053_s14 = inlined_call_operand.hbm [shape: f32[16,16,128], index: 14, kind: output, shape index: {}]  }
   0x1   :  { %9115 = sst [smem:[#allocation77_spill]] %s9040_s1 }
   0x2   :  { %9116 = sst [smem:[#allocation78_spill]] %s9041_s2 }
   0x3   :  { %9117 = sst [smem:[#allocation79_spill]] %s9042_s3 }
   0x4   :  { %9118 = sst [smem:[#allocation80_spill]] %s9043_s4 }
   0x5   :  { %9119 = sst [smem:[#allocation81_spill]] %s9044_s5 }
   0x6   :  { %9120 = sst [smem:[#allocation82_spill]] %s9045_s6 }
   0x7   :  { %9121 = sst [smem:[#allocation83_spill]] %s9046_s7 }
   0x8   :  { %9122 = sst [smem:[#allocation84_spill]] %s9047_s8 }
   0x9   :  { %9123 = sst [smem:[#allocation85_spill]] %s9048_s9 }
   0xa   :  { %9124 = sst [smem:[#allocation86_spill]] %s9049_s10 }
   0xb   :  { %9125 = sst [smem:[#allocation87_spill]] %s9050_s11 }
   0xc   :  { %9126 = sst [smem:[#allocation88_spill]] %s9051_s12 }
   0xd   :  { %9127 = sst [smem:[#allocation89_spill]] %s9052_s13 }
   0xe   :  { %9128 = sst [smem:[#allocation90_spill]] %s9053_s14 }
   0xf   :  { %20 = dma.hbm_to_smem %s9039_s0, 16, %s6534_s29, [#allocation3] }
  0x10   :  { %6396 = dma.done.wait [#allocation3], 16 }
  0x11   :  { %6397 = vsyncadd [#allocation3], 4294967280 }
  0x12   :  { %22 = sfence }
  0x13   :  { %23 = vsyncpa [#allocation6], 0 }
  0x14   :  { %25 = vsyncpa [#allocation6 + $0x1], 0 }
  0x15   :  { %26 = vsyncpa [#allocation9], 0 }
  0x16   :  { %28 = vsyncpa [#allocation9 + $0x1], 0 }
  0x17   :  { %29 = vsyncpa [#allocation12], 0 }
  0x18   :  { %31 = vsyncpa [#allocation12 + $0x1], 0 }
  0x19   :  { %32 = vsyncpa [#allocation15], 0 }
  0x1a   :  { %34 = vsyncpa [#allocation15 + $0x1], 0 }
  0x1b   :  { %35 = vsyncpa [#allocation18], 0 }
  0x1c   :  { %37 = vsyncpa [#allocation18 + $0x1], 0 }
  0x1d   :  { %38 = vsyncpa [#allocation7], 0 }
  0x1e   :  { %40 = vsyncpa [#allocation7 + $0x1], 0  ;;  %s6631_s16 = smov 0   ;;  %s6633_s17 = smov 0  }
  0x1f   :  { %s6635_s0 = smov 0   ;;  %s6637_s18 = smov 0  }
  0x20   :  { %s6639_s19 = smov 0   ;;  %s6641_s20 = smov 0  }
  0x21   :  { %s6643_s21 = smov 0   ;;  %s6645_s22 = smov 0  }
  0x22   :  { %s6647_s23 = smov 0   ;;  %s6649_s24 = smov 0  }
  0x23   :  { %s6651_s25 = smov 0   ;;  %s6653_s26 = smov 0  }
  0x24   :  { %s6655_s27 = smov 0   ;;  %s6657_s28 = smov 0  }
  0x25   :  { %s6659_s29 = smov 0   ;;  %s6661_s30 = smov 0  }
  0x26   :  { %s6663_s15 = smov 0   ;;  %s6665_s14 = smov 0  }
  0x27   :  { %s6667_s11 = smov 0   ;;  %s6669_s9 = smov 0  }
  0x28   :  { %s6671_s7 = smov 0   ;;  %s6673_s5 = smov 0  }
  0x29   :  { %s6675_s3 = smov 0   ;;  %s6677_s13 = smov 0  }
  0x2a   :  { %s6679_s12 = smov 0  }
  0x2b LB: > { %9129 = sst [smem:[#allocation44_spill]] %s6436_s16  ;;  %s6755_s16 = sadd.s32 4294967295, %s6532_s12   ;;  %s6532_s12 = sphi %s6679_s12, %s9305_s12   ;;  %s6528_s13 = sphi %s6677_s13, %s9333_s13   ;;  %s6524_s3 = sphi %s6675_s3, %s9332_s3   ;;  %s6520_s5 = sphi %s6673_s5, %s9331_s5   ;;  %s6516_s7 = sphi %s6671_s7, %s9325_s7   ;;  %s6512_s9 = sphi %s6669_s9, %s9324_s9   ;;  %s6508_s11 = sphi %s6667_s11, %s9323_s11   ;;  %s6504_s14 = sphi %s6665_s14, %s9321_s14   ;;  %s6500_s15 = sphi %s6663_s15, %s9320_s15   ;;  %s6496_s30 = sphi %s6661_s30, %s9319_s30   ;;  %s6492_s29 = sphi %s6659_s29, %s9318_s29   ;;  %s6488_s28 = sphi %s6657_s28, %s9330_s28   ;;  %s6484_s27 = sphi %s6655_s27, %s9329_s27   ;;  %s6480_s26 = sphi %s6653_s26, %s9316_s26   ;;  %s6476_s25 = sphi %s6651_s25, %s9315_s25   ;;  %s6472_s24 = sphi %s6649_s24, %s9314_s24   ;;  %s6468_s23 = sphi %s6647_s23, %s9313_s23   ;;  %s6464_s22 = sphi %s6645_s22, %s9312_s22   ;;  %s6460_s21 = sphi %s6643_s21, %s9311_s21   ;;  %s6456_s20 = sphi %s6641_s20, %s9310_s20   ;;  %s6452_s19 = sphi %s6639_s19, %s9309_s19   ;;  %s6448_s18 = sphi %s6637_s18, %s9308_s18   ;;  %s6444_s0 = sphi %s6635_s0, %s9322_s0   ;;  %s6440_s17 = sphi %s6633_s17, %s9307_s17   ;;  %s6436_s16 = sphi %s6631_s16, %s9306_s16  }
  0x2c   : > { %9130 = sst [smem:[#allocation45_spill]] %s6440_s17  ;;  %p9076_p0 = scmp.eq.s32.totalorder %s6532_s12, 0 }
  0x2d   : > { %9131 = sst [smem:[#allocation46_spill]] %s6444_s0  ;;  %s6758_s0 = sadd.s32 1, %s6532_s12  }
  0x2e   : > { %9132 = sst [smem:[#allocation47_spill]] %s6448_s18  ;;  %s9149_s8 = smov %s6758_s0 }
  0x2f   : > { %9133 = sst [smem:[#allocation48_spill]] %s6452_s19  ;;  %p9075_p1 = scmp.eq.s32.totalorder %s6755_s16, 0 }
  0x30   : > { %9134 = sst [smem:[#allocation49_spill]] %s6456_s20  ;;  %s81_s18 = sadd.s32 1, %s6516_s7 }
  0x31   : > { %9135 = sst [smem:[#allocation50_spill]] %s6464_s22  ;;  %p88_p2 = scmp.ne.s32.totalorder %s6516_s7, %s6512_s9 }
  0x32   : > { %9136 = sst [smem:[#allocation51_spill]] %s6468_s23  ;;  %p94_p3 = scmp.ne.s32.totalorder %s6512_s9, %s6508_s11 }
  0x33   : > { %9137 = sst [smem:[#allocation52_spill]] %s6472_s24  ;;  %p6771_p5 = por %p88_p2, %p9076_p0 }
  0x34   : > { %9138 = sst [smem:[#allocation53_spill]] %s6476_s25  ;;  %p9074_p6 = scmp.lt.s32.totalorder %s6532_s12, 2 }
  0x35   : > { %9139 = sst [smem:[#allocation54_spill]] %s6480_s26  ;;  %p6778_p7 = por %p94_p3, %p9075_p1 }
  0x36   : > { %9140 = sst [smem:[#allocation55_spill]] %s6492_s29  ;;  %s6783_s4 = sand.u32 1, %s6532_s12  }
  0x37   : > { %9141 = sst [smem:[#allocation56_spill]] %s6496_s30  ;;  %s476_s11 = sand.u32 1, %s6516_s7  }
  0x38   : > { %9142 = sst [smem:[#allocation57_spill]] %s6500_s15  ;;  %p6790_p8 = pnand %p9074_p6, %p6771_p5 }
  0x39   : > { %9143 = sst [smem:[#allocation58_spill]] %s6504_s14  ;;  %p4761_p10 = scmp.ge.s32.totalorder %s6532_s12, 1 }
  0x3a   : > { %9144 = sst [smem:[#allocation59_spill]] %s6512_s9  ;;  %s4742_s9 = sshll.u32 %s476_s11, 1 }
  0x3b   : > { %9145 = sst [smem:[#allocation60_spill]] %s6516_s7  ;;  %s478_s25 = scalar_lea.vmem [#allocation8], %s4742_s9 }
  0x3c   : > { %9146 = sst [smem:[#allocation61_spill]] %s6520_s5  ;;  %s486_s30 = sshll.u32 %s478_s25, 4  ;;  %s6806_s30 = int_to_ptr.vmem [resolvable:$true] %s486_s30 }
  0x3d   : > { %9147 = sst [smem:[#allocation62_spill]] %s6528_s13  ;;  %p671_p11 = scmp.lt.s32.totalorder %s6532_s12, 3 }
  0x3e   : > { %9148 = sst [smem:[#allocation63_spill]] %s6758_s0  ;;  %p6048_p2 = pneg %p6790_p8 }
  0x3f   : > { %s76_s17 = sld [smem:[#allocation4 + %s6532_s12]]  ;;  %p6810_p12 = pnand %p4761_p10, %p671_p11 }
  0x40   : > { %s77_s20 = sld [smem:[#allocation4 + %s9149_s8]] }
  0x41   : > { %s9151_s0 = scalar_select %p6778_p7, 1, 0 }
  0x42   : > { %9153 = sst [smem:[#allocation65_spill]] %s6783_s4 }
  0x43   : > { %9152 = sst [smem:[#allocation64_spill]] %s9151_s0 }
  0x44   : > { %s5464_s0 = scalar_select %p6771_p5, [#allocation4], [#allocation20] }
  0x45   : > { %s5465_s11 = scalar_select %p6771_p5, %s6532_s12, 0 }
  0x46   : > { %s78_s26 = ssub.s32 %s76_s17, %s77_s20  ;;  %s9335_s0 = smov (!%p9074_p6, %s5464_s0), [#allocation27] }
  0x47   : > { %p79_p9 = scmp.eq.s32.totalorder %s78_s26, 0  ;;  %s9337_s11 = smov (!%p9074_p6, %s5465_s11), 0 }
  0x48   : > { %s479_s15 = sld [smem:[%s9335_s0 + %s9337_s11]] }
  0x49   : > { %s6797_s14 = scalar_select %p79_p9, %s6516_s7, %s81_s18  }
  0x4a   : > { %s9156_s9 = scalar_select %p6810_p12, 1, 0 }
  0x4b   : > { %9155 = sst [smem:[#allocation66_spill]] %s6797_s14 }
  0x4c   : > { %9157 = sst [smem:[#allocation67_spill]] %s9156_s9 }
  0x4d   : > { %s6815_s20 = sld [smem:[#allocation4 + %s6532_s12]] }
  0x4e   : > { %s4972_s17 = sshll.u32 %s479_s15, 5  ;;  %s9158_s2 = sld [smem:[#allocation78_spill]] }
  0x4f   : > { %s6823_s26 = sld [smem:[#allocation4 + %s9149_s8]] }
  0x54   : > { %s6820_s25 = scalar_lea.hbm %s9158_s2, %s4972_s17  ;;  %s6051_s7 = scalar_lea.hbm %s9158_s2, 64 }
  0x55   : > { %s6046_s11 = scalar_lea.hbm %s6820_s25, 32  ;;  %p6052_p9 = scmp.lt.s32.totalorder %s6820_s25, %s9158_s2 }
  0x56   : > { %p6047_p13 = scmp.ne.s32.totalorder %s6820_s25, %s6046_s11  ;;  %p6053_p10 = scmp.lt.s32.totalorder %s6051_s7, %s6046_s11 }
  0x58   : > { %p6049_p3 = pnand %p6048_p2, %p6047_p13  ;;  %p6054_p11 = por %p6053_p10, %p6052_p9 }
  0x5a   : > { %p6050_p5 = pneg %p6049_p3 }
  0x5c   : > { %p6055_p4 = pnand %p6054_p11, %p6050_p5 }
  0x5e   : > { %6058 = shalt.err (!%p6055_p4)
}
  0x5f   : > { %s6059_s17 = scalar_lea.vmem %s6806_s30, 32  ;;  %s6535_s19 = smov [#allocation8]  }
  0x60   : > { %p6060_p6 = scmp.ne.s32.totalorder %s6806_s30, %s6059_s17  ;;  %s6064_s0 = sshll.u32 %s6535_s19, 4  ;;  %s6065_s0 = int_to_ptr.vmem [resolvable:$false] %s6064_s0 }
  0x61   : > { %s6066_s14 = scalar_lea.vmem %s6065_s0, 64  ;;  %p6067_p3 = scmp.lt.s32.totalorder %s6806_s30, %s6065_s0 }
  0x62   : > { %p6062_p1 = pnand %p6060_p6, %p6048_p2  ;;  %p6068_p0 = scmp.lt.s32.totalorder %s6066_s14, %s6059_s17 }
  0x64   : > { %p6063_p13 = pneg %p6062_p1  ;;  %p6069_p7 = por %p6068_p0, %p6067_p3 }
  0x66   : > { %p6070_p12 = pnand %p6069_p7, %p6063_p13 }
  0x68   : > { %6073 = shalt.err (!%p6070_p12)
}
  0x69   : > { %s9078_s7 = smov 16   ;;  %s9080_s9 = smov 1  }
  0x6a   : > { %s9159_s0 = scalar_lea.sflag [#allocation9], %s6783_s4  ;;  %s193_s11 = sadd.s32 1, %s6492_s29 }
  0x6b   : > { %5503 = dma.hbm_to_vmem [thread:$0]  (!%p6790_p8), %s6820_s25, 32, %s6806_s30, %s9159_s0, %s9078_s7, %s9078_s7, %s9080_s9  }
  0x6c   : > { %p200_p0 = scmp.ne.s32.totalorder %s6492_s29, %s6488_s28  ;;  %p206_p1 = scmp.ne.s32.totalorder %s6488_s28, %s6484_s27 }
  0x6d   : > { %p9160_p4 = scmp.eq.s32.totalorder %s6532_s12, 0  ;;  %s538_s24 = sand.u32 1, %s6492_s29  }
  0x6e   : > { %p9162_p7 = scmp.eq.s32.totalorder %s6755_s16, 0  ;;  %s4748_s30 = sshll.u32 %s538_s24, 1 }
  0x6f   : > { %p6856_p6 = por %p200_p0, %p9160_p4  ;;  %s190_s27 = ssub.s32 %s6815_s20, %s6823_s26 }
  0x70   : > { %p6863_p12 = por %p206_p1, %p9162_p7  ;;  %p191_p8 = scmp.eq.s32.totalorder %s190_s27, 0 }
  0x71   : > { %s540_s25 = scalar_lea.vmem [#allocation11], %s4748_s30  ;;  %p9165_p2 = scmp.lt.s32.totalorder %s6532_s12, 2 }
  0x72   : > { %s9163_s18 = scalar_select %p6863_p12, 1, 0 }
  0x73   : > { %s548_s17 = sshll.u32 %s540_s25, 4  ;;  %p9166_p5 = pmov %p9165_p2  ;;  %s6881_s17 = int_to_ptr.vmem [resolvable:$true] %s548_s17 }
  0x74   : > { %s5470_s19 = scalar_select %p6856_p6, [#allocation4], [#allocation22] }
  0x75   : > { %s6872_s14 = scalar_select %p191_p8, %s6492_s29, %s193_s11  }
  0x76   : > { %s5471_s0 = scalar_select %p6856_p6, %s6532_s12, 0 }
  0x77   : > { %9164 = sst [smem:[#allocation68_spill]] %s6872_s14  ;;  %s9339_s19 = smov (!%p9165_p2, %s5470_s19), [#allocation29] }
  0x78   : > { %s9341_s0 = smov (!%p9166_p5, %s5471_s0), 0  ;;  %p9167_p9 = pmov %p9165_p2 }
  0x79   : > { %s541_s26 = sld [smem:[%s9339_s19 + %s9341_s0]]  ;;  %p312_p11 = scmp.ne.s32.totalorder %s6468_s23, %s6464_s22 }
  0x7a   : > { %p6887_p10 = pnand %p9167_p9, %p6856_p6  ;;  %s6892_s24 = sld [smem:[#allocation4 + %s6532_s12]] }
  0x7b   : > { %s6896_s30 = sld [smem:[#allocation4 + %s9149_s8]]  ;;  %p9170_p3 = pmov %p9160_p4 }
  0x7c   : > { %s9169_s6 = sld [smem:[#allocation82_spill]]  ;;  %p6076_p4 = pneg %p6887_p10 }
  0x7d   : > { %p6909_p0 = por %p312_p11, %p9170_p3 }
  0x7f   : > { %s4974_s27 = sshll.u32 %s541_s26, 5 }
  0x80   : > { %s9171_s15 = scalar_select %p6909_p0, 1, 0 }
  0x82   : > { %s6905_s9 = scalar_lea.hbm %s9169_s6, %s4974_s27  ;;  %s6079_s7 = scalar_lea.hbm %s9169_s6, 64 }
  0x83   : > { %s6074_s0 = scalar_lea.hbm %s6905_s9, 32  ;;  %p6080_p8 = scmp.lt.s32.totalorder %s6905_s9, %s9169_s6 }
  0x84   : > { %p6075_p1 = scmp.ne.s32.totalorder %s6905_s9, %s6074_s0  ;;  %p6081_p2 = scmp.lt.s32.totalorder %s6079_s7, %s6074_s0 }
  0x86   : > { %p6077_p6 = pnand %p6076_p4, %p6075_p1  ;;  %p6082_p5 = por %p6081_p2, %p6080_p8 }
  0x88   : > { %p6078_p7 = pneg %p6077_p6 }
  0x8a   : > { %p6083_p9 = pnand %p6082_p5, %p6078_p7 }
  0x8c   : > { %6086 = shalt.err (!%p6083_p9)
}
  0x8d   : > { %s6087_s19 = scalar_lea.vmem %s6881_s17, 32  ;;  %s6538_s2 = smov [#allocation11]  }
  0x8e   : > { %p6088_p11 = scmp.ne.s32.totalorder %s6881_s17, %s6087_s19  ;;  %s6092_s14 = sshll.u32 %s6538_s2, 4  ;;  %s6093_s14 = int_to_ptr.vmem [resolvable:$false] %s6092_s14 }
  0x8f   : > { %s6094_s11 = scalar_lea.vmem %s6093_s14, 64  ;;  %p6095_p6 = scmp.lt.s32.totalorder %s6881_s17, %s6093_s14 }
  0x90   : > { %p6090_p3 = pnand %p6088_p11, %p6076_p4  ;;  %p6096_p13 = scmp.lt.s32.totalorder %s6094_s11, %s6087_s19 }
  0x92   : > { %p6091_p1 = pneg %p6090_p3  ;;  %p6097_p12 = por %p6096_p13, %p6095_p6 }
  0x94   : > { %p6098_p0 = pnand %p6097_p12, %p6091_p1 }
  0x96   : > { %6101 = shalt.err (!%p6098_p0)
}
  0x97   : > { %s9172_s0 = smov 1   ;;  %s9173_s26 = smov 16  }
  0x98   : > { %s9174_s7 = scalar_lea.sflag [#allocation12], %s6783_s4  ;;  %p9175_p12 = scmp.eq.s32.totalorder %s6755_s16, 0 }
  0x99   : > { %5513 = dma.hbm_to_vmem [thread:$0]  (!%p6887_p10), %s6905_s9, 32, %s6881_s17, %s9174_s7, %s9173_s26, %s9173_s26, %s9172_s0  }
  0x9a   : > { %p9176_p13 = scmp.ne.s32.totalorder %s6464_s22, %s6460_s21  ;;  %s600_s14 = sand.u32 1, %s6468_s23  }
  0x9b   : > { %p9179_p4 = scmp.ne.s32.totalorder %s9171_s15, 0  ;;  %p9180_p7 = scmp.lt.s32.totalorder %s6532_s12, 2 }
  0x9c   : > { %p6942_p0 = por %p9176_p13, %p9175_p12  ;;  %s302_s19 = ssub.s32 %s6892_s24, %s6896_s30 }
  0x9d   : > { %p6951_p8 = pnand %p9180_p7, %p9179_p4  ;;  %s4752_s27 = sshll.u32 %s600_s14, 1 }
  0x9e   : > { %s9177_s2 = scalar_select %p6942_p0, 1, 0 }
  0x9f   : > { %p303_p10 = scmp.eq.s32.totalorder %s302_s19, 0  ;;  %s9182_s9 = sadd.s32 1, %s6468_s23 }
  0xa0   : > { %9178 = sst [smem:[#allocation69_spill]] %s9177_s2  ;;  %p9184_p2 = pmov %p9180_p7 }
  0xa1   : > { %s5476_s21 = scalar_select %p9179_p4, [#allocation4], [#allocation24] }
  0xa2   : > { %s6962_s17 = scalar_select %p303_p10, %s6468_s23, %s9182_s9  }
  0xa3   : > { %s5477_s25 = scalar_select %p9179_p4, %s6532_s12, 0 }
  0xa4   : > { %9183 = sst [smem:[#allocation70_spill]] %s6962_s17  ;;  %s9343_s21 = smov (!%p9184_p2, %s5476_s21), [#allocation31] }
  0xa5   : > { %p9185_p5 = pmov %p9184_p2  ;;  %s602_s24 = scalar_lea.vmem [#allocation14], %s4752_s27 }
  0xa6   : > { %s610_s30 = sshll.u32 %s602_s24, 4  ;;  %s50_s14 = ssub.s32 %s6532_s12, %s9149_s8  ;;  %s6971_s30 = int_to_ptr.vmem [resolvable:$true] %s610_s30 }
  0xa7   : > { %s9345_s25 = smov (!%p9185_p5, %s5477_s25), 0  ;;  %p6976_p9 = scmp.eq.s32.totalorder %s50_s14, 0 }
  0xa8   : > { %s603_s11 = sld [smem:[%s9343_s21 + %s9345_s25]]  ;;  %s53_s9 = sadd.s32 1, %s6528_s13 }
  0xa9   : > { %s9186_s19 = scalar_select %p6976_p9, 1, 0 }
  0xaa   : > { %s9187_s10 = sld [smem:[#allocation86_spill]]  ;;  %s9086_s27 = scalar_lea.sflag [#allocation15], %s6783_s4 }
  0xab   : > { %p6104_p6 = pneg %p6951_p8 }
  0xae   : > { %s4975_s15 = sshll.u32 %s603_s11, 5 }
  0xb0   : > { %s6986_s17 = scalar_lea.hbm %s9187_s10, %s4975_s15  ;;  %s6107_s11 = scalar_lea.hbm %s9187_s10, 64 }
  0xb1   : > { %s6102_s21 = scalar_lea.hbm %s6986_s17, 32  ;;  %p6108_p4 = scmp.lt.s32.totalorder %s6986_s17, %s9187_s10 }
  0xb2   : > { %p6103_p1 = scmp.ne.s32.totalorder %s6986_s17, %s6102_s21  ;;  %p6109_p7 = scmp.lt.s32.totalorder %s6107_s11, %s6102_s21 }
  0xb4   : > { %p6105_p12 = pnand %p6104_p6, %p6103_p1  ;;  %p6110_p10 = por %p6109_p7, %p6108_p4 }
  0xb6   : > { %p6106_p13 = pneg %p6105_p12 }
  0xb8   : > { %p6111_p2 = pnand %p6110_p10, %p6106_p13 }
  0xba   : > { %6114 = shalt.err (!%p6111_p2)
}
  0xbb   : > { %s6115_s6 = scalar_lea.vmem %s6971_s30, 32  ;;  %s6539_s29 = smov [#allocation14]  }
  0xbc   : > { %p6116_p5 = scmp.ne.s32.totalorder %s6971_s30, %s6115_s6  ;;  %s6120_s15 = sshll.u32 %s6539_s29, 4  ;;  %s6121_s15 = int_to_ptr.vmem [resolvable:$false] %s6120_s15 }
  0xbd   : > { %s6122_s25 = scalar_lea.vmem %s6121_s15, 64  ;;  %p6123_p12 = scmp.lt.s32.totalorder %s6971_s30, %s6121_s15 }
  0xbe   : > { %p6118_p3 = pnand %p6116_p5, %p6104_p6  ;;  %p6124_p11 = scmp.lt.s32.totalorder %s6122_s25, %s6115_s6 }
  0xc0   : > { %p6119_p1 = pneg %p6118_p3  ;;  %p6125_p0 = por %p6124_p11, %p6123_p12 }
  0xc2   : > { %p6126_p9 = pnand %p6125_p0, %p6119_p1 }
  0xc4   : > { %6129 = shalt.err (!%p6126_p9)
}
  0xc5   : > { %5523 = dma.hbm_to_vmem [thread:$0]  (!%p6951_p8), %s6986_s17, 32, %s6971_s30, %s9086_s27, %s9173_s26, %s9173_s26, %s9172_s0  }
  0xc6   : > { %p9188_p0 = scmp.ne.s32.totalorder %s9186_s19, 0  ;;  %p9190_p9 = scmp.ne.s32.totalorder %s6528_s13, %s6524_s3 }
  0xc7   : > { %p9191_p11 = scmp.eq.s32.totalorder %s6532_s12, 0  ;;  %p9192_p6 = scmp.ne.s32.totalorder %s6524_s3, %s6520_s5 }
  0xc8   : > { %s7019_s20 = scalar_select %p9188_p0, %s6528_s13, %s53_s9  }
  0xc9   : > { %p62_p3 = por %p9191_p11, %p9190_p9  ;;  %p9193_p13 = scmp.eq.s32.totalorder %s6755_s16, 0 }
  0xca   : > { %9189 = sst [smem:[#allocation71_spill]] %s7019_s20  ;;  %p426_p7 = scmp.eq.s32.totalorder %s6755_s16, 1 }
  0xcb   : > { %p7031_p4 = por %p9193_p13, %p9192_p6  ;;  %s9195_s24 = sadd.s32 4294967294, %s6532_s12  }
  0xcc   : > { %p432_p10 = scmp.eq.s32.totalorder %s9195_s24, 1  ;;  %s452_s11 = sand.u32 1, %s6528_s13  }
  0xcd   : > { %s9194_s21 = scalar_select %p7031_p4, 1, 0 }
  0xce   : > { %s4971_s14 = sshll.u32 %s6532_s12, 11  ;;  %p9196_p2 = pmov %p9190_p9 }
  0xcf   : > { %p9199_p5 = pmov %p9192_p6  ;;  %s4738_s19 = sshll.u32 %s452_s11, 7 }
  0xd0   : > { %p7043_p8 = por %p426_p7, %p9196_p2  ;;  %s9202_s1 = sld [smem:[#allocation77_spill]] }
  0xd1   : > { %p7050_p1 = por %p432_p10, %p9199_p5  ;;  %s456_s15 = scalar_lea.vmem [#allocation5], %s4738_s19 }
  0xd2   : > { %s9197_s17 = scalar_select %p7043_p8, 1, 0 }
  0xd3   : > { %s9200_s30 = scalar_select %p7050_p1, 1, 0 }
  0xd4   : > { %9198 = sst [smem:[#allocation72_spill]] %s9197_s17  ;;  %s464_s25 = sshll.u32 %s456_s15, 4  ;;  %s7065_s25 = int_to_ptr.vmem [resolvable:$true] %s464_s25 }
  0xd5   : > { %9201 = sst [smem:[#allocation73_spill]] %s9200_s30  ;;  %p9203_p12 = scmp.lt.s32.totalorder %s6532_s12, 2 }
  0xd6   : > { %s7057_s29 = scalar_lea.hbm %s9202_s1, %s4971_s14  ;;  %s7067_s24 = scalar_lea.sflag [#allocation6], %s452_s11 }
  0xd7   : > { %p7061_p0 = pnand %p9203_p12, %p62_p3  ;;  %s6130_s27 = scalar_lea.hbm %s7057_s29, 2048 }
  0xd8   : > { %p6131_p9 = scmp.ne.s32.totalorder %s7057_s29, %s6130_s27  ;;  %s6135_s19 = scalar_lea.hbm %s9202_s1, 4096 }
  0xd9   : > { %p6132_p11 = pneg %p7061_p0  ;;  %p6136_p3 = scmp.lt.s32.totalorder %s7057_s29, %s9202_s1 }
  0xda   : > { %p6137_p7 = scmp.lt.s32.totalorder %s6135_s19, %s6130_s27 }
  0xdb   : > { %p6133_p6 = pnand %p6132_p11, %p6131_p9 }
  0xdc   : > { %p6138_p10 = por %p6137_p7, %p6136_p3 }
  0xdd   : > { %p6134_p13 = pneg %p6133_p6 }
  0xdf   : > { %p6139_p2 = pnand %p6138_p10, %p6134_p13 }
  0xe1   : > { %6142 = shalt.err (!%p6139_p2)
}
  0xe2   : > { %s6143_s11 = scalar_lea.vmem %s7065_s25, 2048  ;;  %s6540_s10 = smov [#allocation5]  }
  0xe3   : > { %p6144_p5 = scmp.ne.s32.totalorder %s7065_s25, %s6143_s11  ;;  %s6148_s7 = sshll.u32 %s6540_s10, 4  ;;  %s6149_s7 = int_to_ptr.vmem [resolvable:$false] %s6148_s7 }
  0xe4   : > { %s6150_s14 = scalar_lea.vmem %s6149_s7, 4096  ;;  %p6151_p6 = scmp.lt.s32.totalorder %s7065_s25, %s6149_s7 }
  0xe5   : > { %p6146_p12 = pnand %p6144_p5, %p6132_p11  ;;  %p6152_p1 = scmp.lt.s32.totalorder %s6150_s14, %s6143_s11 }
  0xe7   : > { %p6147_p9 = pneg %p6146_p12  ;;  %p6153_p8 = por %p6152_p1, %p6151_p6 }
  0xe9   : > { %p6154_p4 = pnand %p6153_p8, %p6147_p9 }
  0xeb   : > { %6157 = shalt.err (!%p6154_p4)
}
  0xec   : > { %s6541_s27 = smov 128   ;;  %s9205_s9 = sld [smem:[#allocation57_spill]] }
  0xed   : > { %s9206_s19 = sld [smem:[#allocation58_spill]]  ;;  %s6542_s10 = smov 8  }
  0xee   : > { %s9207_s6 = sld [smem:[#allocation56_spill]]  ;;  %p9208_p1 = scmp.eq.s32.totalorder %s6532_s12, 0 }
  0xef   : > { %5498 = dma.hbm_to_vmem [thread:$0]  (!%p7061_p0), %s7057_s29, 2048, %s7065_s25, %s7067_s24, %s6541_s27, %s6541_s27, %s6542_s10  }
  0xf0   : > { %s132_s7 = sld [smem:[#allocation4 + %s6532_s12]]  ;;  %p9210_p0 = scmp.eq.s32.totalorder %s6755_s16, 0 }
  0xf1   : > { %s133_s15 = sld [smem:[#allocation4 + %s9149_s8]]  ;;  %p9215_p7 = scmp.lt.s32.totalorder %s6532_s12, 2 }
  0xf2   : > { %s9212_s24 = sld [smem:[#allocation53_spill]] }
  0xf3   : > { %p144_p4 = scmp.ne.s32.totalorder %s9206_s19, %s9205_s9  ;;  %s507_s11 = sand.u32 1, %s9206_s19  }
  0xf4   : > { %p150_p8 = scmp.ne.s32.totalorder %s9205_s9, %s9207_s6  ;;  %s4745_s20 = sshll.u32 %s507_s11, 7 }
  0xf5   : > { %p7097_p11 = por %p144_p4, %p9208_p1  ;;  %s9213_s27 = sld [smem:[#allocation54_spill]] }
  0xf6   : > { %p7103_p13 = por %p150_p8, %p9210_p0  ;;  %s9214_s10 = sld [smem:[#allocation52_spill]] }
  0xf7   : > { %s5467_s25 = scalar_select %p7097_p11, [#allocation4], [#allocation21] }
  0xf8   : > { %s9211_s29 = scalar_select %p7103_p13, 1, 0 }
  0xf9   : > { %s5468_s9 = scalar_select %p7097_p11, %s6532_s12, 0 }
  0xfa   : > { %s134_s6 = ssub.s32 %s132_s7, %s133_s15  ;;  %s137_s1 = sadd.s32 1, %s9206_s19 }
  0xfb   : > { %p135_p3 = scmp.eq.s32.totalorder %s134_s6, 0  ;;  %s509_s13 = scalar_lea.vmem [#allocation10], %s4745_s20 }
  0xfc   : > { %s517_s23 = sshll.u32 %s509_s13, 4  ;;  %s9347_s25 = smov (!%p9215_p7, %s5467_s25), [#allocation28]  ;;  %s7120_s23 = int_to_ptr.vmem [resolvable:$true] %s517_s23 }
  0xfd   : > { %s9349_s19 = smov (!%p135_p3, %s9206_s19), %s137_s1  ;;  %p9217_p10 = pmov %p9215_p7 }
  0xfe   : > { %9216 = sst [smem:[#allocation74_spill]] %s9349_s19  ;;  %p9218_p2 = pmov %p9215_p7 }
  0xff   : > { %s9351_s9 = smov (!%p9217_p10, %s5468_s9), 0  ;;  %s7131_s15 = sld [smem:[#allocation4 + %s6532_s12]] }
 0x100   : > { %p7126_p5 = pnand %p9218_p2, %p7097_p11  ;;  %s510_s7 = sld [smem:[%s9347_s25 + %s9351_s9]] }
 0x101   : > { %s7134_s20 = sld [smem:[#allocation4 + %s9149_s8]] }
 0x102   : > { %s9220_s19 = sld [smem:[#allocation80_spill]]  ;;  %p6160_p4 = pneg %p7126_p5 }
 0x106   : > { %s4973_s13 = sshll.u32 %s510_s7, 11 }
 0x108   : > { %s9221_s2 = smov %s9220_s19  ;;  %s7141_s30 = scalar_lea.hbm %s9220_s19, %s4973_s13 }
 0x109   : > { %s6158_s14 = scalar_lea.hbm %s7141_s30, 2048  ;;  %s6163_s7 = scalar_lea.hbm %s9221_s2, 4096 }
 0x10a   : > { %p6159_p6 = scmp.ne.s32.totalorder %s7141_s30, %s6158_s14  ;;  %p6164_p11 = scmp.lt.s32.totalorder %s7141_s30, %s9221_s2 }
 0x10b   : > { %p6165_p0 = scmp.lt.s32.totalorder %s6163_s7, %s6158_s14 }
 0x10c   : > { %p6161_p8 = pnand %p6160_p4, %p6159_p6 }
 0x10d   : > { %p6166_p3 = por %p6165_p0, %p6164_p11 }
 0x10e   : > { %p6162_p1 = pneg %p6161_p8 }
 0x110   : > { %p6167_p7 = pnand %p6166_p3, %p6162_p1 }
 0x112   : > { %6170 = shalt.err (!%p6167_p7)
}
 0x113   : > { %s6171_s19 = scalar_lea.vmem %s7120_s23, 2048  ;;  %s6543_s13 = smov [#allocation10]  }
 0x114   : > { %p6172_p10 = scmp.ne.s32.totalorder %s7120_s23, %s6171_s19  ;;  %s6176_s1 = sshll.u32 %s6543_s13, 4  ;;  %s6177_s1 = int_to_ptr.vmem [resolvable:$false] %s6176_s1 }
 0x115   : > { %s6178_s6 = scalar_lea.vmem %s6177_s1, 4096  ;;  %p6179_p8 = scmp.lt.s32.totalorder %s7120_s23, %s6177_s1 }
 0x116   : > { %p6174_p2 = pnand %p6172_p10, %p6160_p4  ;;  %p6180_p12 = scmp.lt.s32.totalorder %s6178_s6, %s6171_s19 }
 0x118   : > { %p6175_p6 = pneg %p6174_p2  ;;  %p6181_p9 = por %p6180_p12, %p6179_p8 }
 0x11a   : > { %p6182_p13 = pnand %p6181_p9, %p6175_p6 }
 0x11c   : > { %6185 = shalt.err (!%p6182_p13)
}
 0x11d   : > { %s9098_s5 = smov 64   ;;  %s9100_s17 = smov 4  }
 0x11e   : > { %s9222_s14 = scalar_lea.sflag [#allocation9], %s6783_s4  ;;  %s249_s25 = sadd.s32 1, %s9213_s27 }
 0x11f   : > { %5508 = dma.hbm_to_vmem [thread:$0]  (!%p7126_p5), %s7141_s30, 2048, %s7120_s23, %s9222_s14, %s9098_s5, %s9098_s5, %s9100_s17  }
 0x120   : > { %p9223_p13 = scmp.eq.s32.totalorder %s6755_s16, 0  ;;  %p9224_p12 = scmp.ne.s32.totalorder %s9212_s24, %s9214_s10 }
 0x121   : > { %p9226_p4 = scmp.eq.s32.totalorder %s6532_s12, 0  ;;  %p9227_p1 = scmp.ne.s32.totalorder %s9213_s27, %s9212_s24 }
 0x122   : > { %p7174_p9 = por %p9224_p12, %p9223_p13  ;;  %s569_s7 = sand.u32 1, %s9213_s27  }
 0x123   : > { %p258_p11 = por %p9227_p1, %p9226_p4  ;;  %s9228_s19 = sld [smem:[#allocation48_spill]] }
 0x124   : > { %s9225_s9 = scalar_select %p7174_p9, 1, 0 }
 0x125   : > { %s9229_s11 = sld [smem:[#allocation49_spill]]  ;;  %s246_s13 = ssub.s32 %s7131_s15, %s7134_s20 }
 0x126   : > { %s9230_s1 = sld [smem:[#allocation47_spill]]  ;;  %s5460_s6 = smul.u32 384, %s569_s7 }
 0x127   : > { %p247_p5 = scmp.eq.s32.totalorder %s246_s13, 0  ;;  %p9231_p0 = scmp.lt.s32.totalorder %s6532_s12, 2 }
 0x128   : > { %s5473_s30 = scalar_select %p258_p11, [#allocation4], [#allocation23] }
 0x129   : > { %p7188_p3 = pnand %p9231_p0, %p258_p11  ;;  %s9353_s27 = smov (!%p247_p5, %s9213_s27), %s249_s25 }
 0x12a   : > { %9233 = sst [smem:[#allocation75_spill]] %s9353_s27  ;;  %p9234_p7 = pmov %p9231_p0 }
 0x12b   : > { %s5474_s24 = scalar_select %p258_p11, %s6532_s12, 0 }
 0x12c   : > { %s9355_s30 = smov (!%p9234_p7, %s5473_s30), [#allocation30]  ;;  %p9235_p10 = pmov %p9231_p0 }
 0x12d   : > { %s571_s15 = scalar_lea.vmem [#allocation13], %s5460_s6  ;;  %s7203_s14 = sld [smem:[#allocation4 + %s6532_s12]] }
 0x12e   : > { %s9357_s24 = smov (!%p9235_p10, %s5474_s24), 0  ;;  %s579_s20 = sshll.u32 %s571_s15, 4  ;;  %s7200_s20 = int_to_ptr.vmem [resolvable:$true] %s579_s20 }
 0x12f   : > { %s572_s10 = sld [smem:[%s9355_s30 + %s9357_s24]]  ;;  %p368_p2 = scmp.ne.s32.totalorder %s9229_s11, %s9228_s19 }
 0x130   : > { %s7206_s7 = sld [smem:[#allocation4 + %s9149_s8]]  ;;  %p374_p6 = scmp.ne.s32.totalorder %s9228_s19, %s9230_s1 }
 0x131   : > { %s631_s25 = sand.u32 1, %s9229_s11   ;;  %p9236_p8 = pmov %p9226_p4 }
 0x132   : > { %p9238_p12 = scmp.eq.s32.totalorder %s6755_s16, 0  ;;  %s7225_s6 = sshll.u32 %s631_s25, 7 }
 0x133   : > { %p7215_p13 = por %p368_p2, %p9236_p8  ;;  %s9241_s17 = sld [smem:[#allocation84_spill]] }
 0x134   : > { %p7221_p4 = por %p374_p6, %p9238_p12  ;;  %p6188_p11 = pneg %p7188_p3 }
 0x135   : > { %s5461_s13 = smul.u32 6144, %s572_s10 }
 0x136   : > { %s9237_s5 = scalar_select %p7215_p13, 1, 0 }
 0x137   : > { %s9239_s30 = scalar_select %p7221_p4, 1, 0 }
 0x139   : > { %9240 = sst [smem:[#allocation56_spill]] %s9239_s30  ;;  %s9242_s2 = smov %s9241_s17 }
 0x13a   : > { %s7230_s27 = scalar_lea.hbm %s9241_s17, %s5461_s13  ;;  %s6191_s30 = scalar_lea.hbm %s9242_s2, 12288 }
 0x13b   : > { %s6186_s19 = scalar_lea.hbm %s7230_s27, 6144  ;;  %p6192_p7 = scmp.lt.s32.totalorder %s7230_s27, %s9242_s2 }
 0x13c   : > { %p6187_p1 = scmp.ne.s32.totalorder %s7230_s27, %s6186_s19  ;;  %p6193_p10 = scmp.lt.s32.totalorder %s6191_s30, %s6186_s19 }
 0x13e   : > { %p6189_p5 = pnand %p6188_p11, %p6187_p1  ;;  %p6194_p2 = por %p6193_p10, %p6192_p7 }
 0x140   : > { %p6190_p0 = pneg %p6189_p5 }
 0x142   : > { %p6195_p6 = pnand %p6194_p2, %p6190_p0 }
 0x144   : > { %6198 = shalt.err (!%p6195_p6)
}
 0x145   : > { %s6199_s17 = scalar_lea.vmem %s7200_s20, 6144  ;;  %s6546_s13 = smov [#allocation13]  }
 0x146   : > { %p6200_p8 = scmp.ne.s32.totalorder %s7200_s20, %s6199_s17  ;;  %s6204_s24 = sshll.u32 %s6546_s13, 4  ;;  %s6205_s24 = int_to_ptr.vmem [resolvable:$false] %s6204_s24 }
 0x147   : > { %s6206_s15 = scalar_lea.vmem %s6205_s24, 12288  ;;  %p6207_p5 = scmp.lt.s32.totalorder %s7200_s20, %s6205_s24 }
 0x148   : > { %p6202_p12 = pnand %p6200_p8, %p6188_p11  ;;  %p6208_p4 = scmp.lt.s32.totalorder %s6206_s15, %s6199_s17 }
 0x14a   : > { %p6203_p1 = pneg %p6202_p12  ;;  %p6209_p9 = por %p6208_p4, %p6207_p5 }
 0x14c   : > { %p6210_p13 = pnand %p6209_p9, %p6203_p1 }
 0x14e   : > { %6213 = shalt.err (!%p6210_p13)
}
 0x14f   : > { %s9243_s22 = smov 4   ;;  %s9244_s30 = smov 64  }
 0x150   : > { %s9245_s19 = scalar_lea.sflag [#allocation12], %s6783_s4  ;;  %s9246_s23 = sld [smem:[#allocation45_spill]] }
 0x151   : > { %5518 = dma.hbm_to_vmem [thread:$0]  (!%p7188_p3), %s7230_s27, 6144, %s7200_s20, %s9245_s19, %s9244_s30, %s9244_s30, %s9243_s22  }
 0x152   : > { %s9247_s1 = sld [smem:[#allocation46_spill]]  ;;  %s358_s10 = ssub.s32 %s7203_s14, %s7206_s7 }
 0x153   : > { %s9248_s25 = sld [smem:[#allocation44_spill]]  ;;  %s361_s17 = sadd.s32 1, %s9229_s11 }
 0x154   : > { %p359_p9 = scmp.eq.s32.totalorder %s358_s10, 0  ;;  %s633_s13 = scalar_lea.vmem [#allocation16], %s7225_s6 }
 0x155   : > { %s641_s24 = sshll.u32 %s633_s13, 4  ;;  %p9249_p13 = scmp.ne.s32.totalorder %s9237_s5, 0  ;;  %s7282_s24 = int_to_ptr.vmem [resolvable:$true] %s641_s24 }
 0x156   : > { %s9359_s11 = smov (!%p359_p9, %s9229_s11), %s361_s17  ;;  %p9251_p4 = scmp.lt.s32.totalorder %s6532_s12, 2 }
 0x157   : > { %s5479_s15 = scalar_select %p9249_p13, [#allocation4], [#allocation25] }
 0x158   : > { %9250 = sst [smem:[#allocation76_spill]] %s9359_s11  ;;  %p9252_p3 = pmov %p9251_p4 }
 0x159   : > { %s5480_s2 = scalar_select %p9249_p13, %s6532_s12, 0 }
 0x15a   : > { %s9361_s15 = smov (!%p9251_p4, %s5479_s15), [#allocation32]  ;;  %p9253_p11 = pmov %p9252_p3 }
 0x15b   : > { %s9363_s2 = smov (!%p9252_p3, %s5480_s2), 0  ;;  %s7280_s14 = sld [smem:[#allocation4 + %s6532_s12]] }
 0x15c   : > { %p7275_p0 = pnand %p9253_p11, %p9249_p13  ;;  %s634_s20 = sld [smem:[%s9361_s15 + %s9363_s2]] }
 0x15d   : > { %s7285_s7 = sld [smem:[#allocation4 + %s9149_s8]]  ;;  %p396_p7 = scmp.ne.s32.totalorder %s9247_s1, %s9246_s23 }
 0x15e   : > { %s9255_s5 = sld [smem:[#allocation88_spill]]  ;;  %p9257_p2 = scmp.eq.s32.totalorder %s6532_s12, 0 }
 0x15f   : > { %p6216_p12 = pneg %p7275_p0 }
 0x160   : > { %p7299_p6 = por %p396_p7, %p9257_p2 }
 0x162   : > { %s4976_s6 = sshll.u32 %s634_s20, 11 }
 0x163   : > { %s9258_s2 = scalar_select %p7299_p6, 1, 0 }
 0x164   : > { %s9256_s4 = smov %s9255_s5  ;;  %s7295_s13 = scalar_lea.hbm %s9255_s5, %s4976_s6 }
 0x165   : > { %s6214_s15 = scalar_lea.hbm %s7295_s13, 2048  ;;  %s6219_s10 = scalar_lea.hbm %s9256_s4, 4096 }
 0x166   : > { %p6215_p8 = scmp.ne.s32.totalorder %s7295_s13, %s6214_s15  ;;  %p6220_p9 = scmp.lt.s32.totalorder %s7295_s13, %s9256_s4 }
 0x167   : > { %p6221_p13 = scmp.lt.s32.totalorder %s6219_s10, %s6214_s15 }
 0x168   : > { %p6217_p1 = pnand %p6216_p12, %p6215_p8 }
 0x169   : > { %p6222_p4 = por %p6221_p13, %p6220_p9 }
 0x16a   : > { %p6218_p5 = pneg %p6217_p1 }
 0x16c   : > { %p6223_p3 = pnand %p6222_p4, %p6218_p5 }
 0x16e   : > { %6226 = shalt.err (!%p6223_p3)
}
 0x16f   : > { %s6227_s5 = scalar_lea.vmem %s7282_s24, 2048  ;;  %s6547_s11 = smov [#allocation16]  }
 0x170   : > { %p6228_p11 = scmp.ne.s32.totalorder %s7282_s24, %s6227_s5  ;;  %s6232_s8 = sshll.u32 %s6547_s11, 4  ;;  %s6233_s8 = int_to_ptr.vmem [resolvable:$false] %s6232_s8 }
 0x171   : > { %s6234_s19 = scalar_lea.vmem %s6233_s8, 4096  ;;  %p6235_p8 = scmp.lt.s32.totalorder %s7282_s24, %s6233_s8 }
 0x172   : > { %p6230_p7 = pnand %p6228_p11, %p6216_p12  ;;  %p6236_p1 = scmp.lt.s32.totalorder %s6234_s19, %s6227_s5 }
 0x174   : > { %p6231_p2 = pneg %p6230_p7  ;;  %p6237_p10 = por %p6236_p1, %p6235_p8 }
 0x176   : > { %p6238_p6 = pnand %p6237_p10, %p6231_p2 }
 0x178   : > { %6241 = shalt.err (!%p6238_p6)
}
 0x179   : > { %s9259_s15 = sld [smem:[#allocation65_spill]]  ;;  %p9261_p10 = scmp.eq.s32.totalorder %s6755_s16, 0 }
 0x17a   : > { %p9262_p6 = scmp.ne.s32.totalorder %s9246_s23, %s9248_s25  ;;  %s386_s11 = ssub.s32 %s7280_s14, %s7285_s7 }
 0x17b   : > { %s389_s27 = sadd.s32 1, %s9247_s1  ;;  %p387_p5 = scmp.eq.s32.totalorder %s386_s11, 0 }
 0x17c   : > { %p7331_p12 = por %p9262_p6, %p9261_p10  ;;  %s9264_s10 = sand.u32 1, %s9247_s1  }
 0x17d   : > { %s4758_s6 = sshll.u32 %s9264_s10, 1  ;;  %p9265_p9 = scmp.ne.s32.totalorder %s9258_s2, 0 }
 0x17e   : > { %s9263_s8 = scalar_select %p7331_p12, 1, 0 }
 0x17f   : > { %s9260_s20 = scalar_lea.sflag [#allocation15], %s9259_s15  ;;  %p9266_p13 = scmp.lt.s32.totalorder %s6532_s12, 2 }
 0x180   : > { %5528 = dma.hbm_to_vmem [thread:$0]  (!%p7275_p0), %s7295_s13, 2048, %s7282_s24, %s9260_s20, %s9244_s30, %s9244_s30, %s9243_s22  }
 0x181   : > { %s5482_s17 = scalar_select %p9265_p9, [#allocation4], [#allocation26] }
 0x182   : > { %s7343_s5 = scalar_select %p387_p5, %s9247_s1, %s389_s27  }
 0x183   : > { %s5483_s19 = scalar_select %p9265_p9, %s6532_s12, 0 }
 0x184   : > { %s9365_s17 = smov (!%p9266_p13, %s5482_s17), [#allocation33]  ;;  %p9267_p0 = pmov %p9266_p13 }
 0x185   : > { %s655_s23 = scalar_lea.vmem [#allocation17], %s4758_s6  ;;  %s9270_s13 = sld [smem:[#allocation89_spill]] }
 0x186   : > { %s9367_s19 = smov (!%p9267_p0, %s5483_s19), 0  ;;  %p9268_p4 = pmov %p9267_p0 }
 0x187   : > { %s656_s30 = sld [smem:[%s9365_s17 + %s9367_s19]]  ;;  %s663_s25 = sshll.u32 %s655_s23, 4  ;;  %s7360_s25 = int_to_ptr.vmem [resolvable:$true] %s663_s25 }
 0x188   : > { %p7356_p3 = pnand %p9268_p4, %p9265_p9  ;;  %s9272_s20 = sand.u32 1, %s9247_s1  }
 0x189   : > { %s7369_s2 = scalar_lea.sflag [#allocation18], %s9272_s20 }
 0x18a   : > { %p6244_p7 = pneg %p7356_p3 }
 0x18b   : > { %s9271_s10 = smov %s9270_s13 }
 0x18c   : > { %s6247_s17 = scalar_lea.hbm %s9271_s10, 64 }
 0x18d   : > { %s4977_s24 = sshll.u32 %s656_s30, 5 }
 0x18e   : > { %s7365_s15 = scalar_lea.hbm %s9270_s13, %s4977_s24 }
 0x18f   : > { %s6242_s11 = scalar_lea.hbm %s7365_s15, 32  ;;  %p6248_p1 = scmp.lt.s32.totalorder %s7365_s15, %s9271_s10 }
 0x190   : > { %p6243_p11 = scmp.ne.s32.totalorder %s7365_s15, %s6242_s11  ;;  %p6249_p10 = scmp.lt.s32.totalorder %s6247_s17, %s6242_s11 }
 0x192   : > { %p6245_p2 = pnand %p6244_p7, %p6243_p11  ;;  %p6250_p6 = por %p6249_p10, %p6248_p1 }
 0x194   : > { %p6246_p8 = pneg %p6245_p2 }
 0x196   : > { %p6251_p5 = pnand %p6250_p6, %p6246_p8 }
 0x198   : > { %6254 = shalt.err (!%p6251_p5)
}
 0x199   : > { %s6255_s1 = scalar_lea.vmem %s7360_s25, 32  ;;  %s6548_s23 = smov [#allocation17]  }
 0x19a   : > { %p6256_p9 = scmp.ne.s32.totalorder %s7360_s25, %s6255_s1  ;;  %s6260_s24 = sshll.u32 %s6548_s23, 4  ;;  %s6261_s24 = int_to_ptr.vmem [resolvable:$false] %s6260_s24 }
 0x19b   : > { %s6262_s14 = scalar_lea.vmem %s6261_s24, 64  ;;  %p6263_p4 = scmp.lt.s32.totalorder %s7360_s25, %s6261_s24 }
 0x19c   : > { %p6258_p13 = pnand %p6256_p9, %p6244_p7  ;;  %p6264_p11 = scmp.lt.s32.totalorder %s6262_s14, %s6255_s1 }
 0x19e   : > { %p6259_p0 = pneg %p6258_p13  ;;  %p6265_p2 = por %p6264_p11, %p6263_p4 }
 0x1a0   : > { %p6266_p12 = pnand %p6265_p2, %p6259_p0 }
 0x1a2   : > { %6269 = shalt.err (!%p6266_p12)
}
 0x1a3   : > { %5533 = dma.hbm_to_vmem [thread:$0]  (!%p7356_p3), %s7365_s15, 32, %s7360_s25, %s7369_s2, %s9173_s26, %s9173_s26, %s9172_s0  }
 0x1a4   : > { %s9273_s7 = sld [smem:[#allocation67_spill]] }
 0x1aa   : > { %p9274_p7 = scmp.ne.s32.totalorder %s9273_s7, 0 }
 0x1ab   : > { %s7396_s13 = sand.u32 (!%p9274_p7), 1, %s6524_s3   ;;  %p9275_p12 = scmp.ne.s32.totalorder (!%p9274_p7), %s9194_s21, 0 }
 0x1ac   : > { %675 = sbr.rel (%p9274_p7) target bundleno = 3722 (0xe8a), region = 72  ;;  %s4762_s20 = sshll.u32 (!%p9274_p7), %s7396_s13, 7 }
 0x1ad   : > { %s678_s11 = scalar_lea.sflag (!%p9274_p7), [#allocation6], %s7396_s13  ;;  %s7402_s22 = scalar_lea.vmem (!%p9274_p7), [#allocation5], %s4762_s20 }
 0x1b1   : > { %6399 = dma.done.wait (%p9275_p12), %s678_s11, 2048  }
 0x1b2   : > { %6401 = vsyncadd (%p9275_p12), %s678_s11, 4294965248  ;;  %s9276_s0 = sld [smem:[#allocation59_spill]]  ;;  %s686_s25 = sand.u32 1, %s6755_s16  }
 0x1b3   : > { %s9277_s26 = sld [smem:[#allocation64_spill]]  ;;  %s687_s27 = scalar_lea.sflag [#allocation9], %s686_s25 }
 0x1b8   : > { %s688_s15 = sand.u32 1, %s9276_s0  }
 0x1b9   : > { %s7410_s2 = sshll.u32 %s688_s15, 1  ;;  %p9278_p3 = scmp.ne.s32.totalorder %s9277_s26, 0 }
 0x1ba   : > { %s690_s6 = scalar_lea.vmem [#allocation8], %s7410_s2 }
 0x1bb   : > { %6403 = dma.done.wait (%p9278_p3), %s687_s27, 32  }
 0x1bc   : > { %6405 = vsyncadd (%p9278_p3), %s687_s27, 4294967264  ;;  %s9279_s17 = sld [smem:[#allocation57_spill]]  ;;  %p9280_p8 = scmp.ne.s32.totalorder %s9211_s29, 0 }
 0x1c2   : > { %s697_s19 = sand.u32 1, %s9279_s17  }
 0x1c3   : > { %s4764_s21 = sshll.u32 %s697_s19, 7 }
 0x1c4   : > { %s7418_s30 = scalar_lea.vmem [#allocation10], %s4764_s21 }
 0x1c5   : > { %6407 = dma.done.wait (%p9280_p8), %s687_s27, 2048  }
 0x1c6   : > { %6409 = vsyncadd (%p9280_p8), %s687_s27, 4294965248  ;;  %s706_s1 = sand.u32 1, %s6488_s28   ;;  %s705_s24 = scalar_lea.sflag [#allocation12], %s686_s25 }
 0x1c7   : > { %s7425_s23 = sshll.u32 %s706_s1, 1  ;;  %p9281_p1 = scmp.ne.s32.totalorder %s9163_s18, 0 }
 0x1c8   : > { %s708_s14 = scalar_lea.vmem [#allocation11], %s7425_s23 }
 0x1c9   : > { %6411 = dma.done.wait (%p9281_p1), %s705_s24, 32  }
 0x1ca   : > { %6413 = vsyncadd (%p9281_p1), %s705_s24, 4294967264  ;;  %s9282_s7 = sld [smem:[#allocation53_spill]]  ;;  %p9283_p10 = scmp.ne.s32.totalorder %s9225_s9, 0 }
 0x1d0   : > { %s715_s11 = sand.u32 1, %s9282_s7  }
 0x1d1   : > { %s5462_s0 = smul.u32 384, %s715_s11 }
 0x1d3   : > { %s7433_s26 = scalar_lea.vmem [#allocation13], %s5462_s0 }
 0x1d4   : > { %6415 = dma.done.wait (%p9283_p10), %s705_s24, 6144  }
 0x1d5   : > { %6417 = vsyncadd (%p9283_p10), %s705_s24, 4294961152  ;;  %s9284_s29 = sld [smem:[#allocation50_spill]]  ;;  %s723_s19 = scalar_lea.sflag [#allocation15], %s686_s25 }
 0x1d6   : > { %s9285_s15 = sld [smem:[#allocation69_spill]] }
 0x1db   : > { %s724_s27 = sand.u32 1, %s9284_s29  }
 0x1dc   : > { %s7440_s17 = sshll.u32 %s724_s27, 1  ;;  %p9286_p6 = scmp.ne.s32.totalorder %s9285_s15, 0 }
 0x1dd   : > { %s726_s18 = scalar_lea.vmem [#allocation14], %s7440_s17 }
 0x1de   : > { %6419 = dma.done.wait (%p9286_p6), %s723_s19, 32  }
 0x1df   : > { %6421 = vsyncadd (%p9286_p6), %s723_s19, 4294967264  ;;  %s9287_s21 = sld [smem:[#allocation48_spill]] }
 0x1e0   : > { %s9288_s1 = sld [smem:[#allocation56_spill]] }
 0x1e5   : > { %s733_s7 = sand.u32 1, %s9287_s21  }
 0x1e6   : > { %s4767_s11 = sshll.u32 %s733_s7, 7  ;;  %p9289_p5 = scmp.ne.s32.totalorder %s9288_s1, 0 }
 0x1e7   : > { %s7448_s0 = scalar_lea.vmem [#allocation16], %s4767_s11 }
 0x1e8   : > { %6423 = dma.done.wait (%p9289_p5), %s723_s19, 2048  }
 0x1e9   : > { %6425 = vsyncadd (%p9289_p5), %s723_s19, 4294965248  ;;  %s9290_s9 = sld [smem:[#allocation45_spill]]  ;;  %p9291_p9 = scmp.ne.s32.totalorder %s9263_s8, 0 }
 0x1ef   : > { %s740_s25 = sand.u32 1, %s9290_s9  }
 0x1f0   : > { %s7455_s24 = sshll.u32 %s740_s25, 1  ;;  %s741_s29 = scalar_lea.sflag [#allocation18], %s740_s25 }
 0x1f1   : > { %s744_s15 = scalar_lea.vmem [#allocation17], %s7455_s24 }
 0x1f2   : > { %6427 = dma.done.wait (%p9291_p9), %s741_s29, 32  }
 0x1f3   : > { %6429 = vsyncadd (%p9291_p9), %s741_s29, 4294967264  ;;  %v7463_v0 = vld [vmem:[%s7402_s22] sm:$0xff]  ;;  %v7466_v1 = vld [vmem:[%s7402_s22 + $0x10] sm:$0xff]  ;;  %v887_v8 = vlaneseq  ;;  %v6549_v12 = vmov 0.0   ;;  %s849_s8 = sld [smem:[#allocation4 + %s6755_s16]]  ;;  %s4979_s2 = sshll.u32 %s6755_s16, 11 }
 0x1f4   : > { %929 = vadd.xlane.f32.xlu0 %v7463_v0  ;;  %933 = vadd.xlane.f32.xlu1 %v7466_v1  ;;  %v7471_v2 = vld [vmem:[%s7402_s22 + $0x8] sm:$0xff]  ;;  %v7474_v3 = vld [vmem:[%s7402_s22 + $0x18] sm:$0xff]  ;;  %v7477_v4 = vld [vmem:[%s7402_s22 + $0x20] sm:$0xff]  ;;  %895 = vst [vmem:[#allocation2] sm:$0x3] %v6549_v12  ;;  %s9292_s1 = sld [smem:[#allocation79_spill]] }
 0x1f5   : > { %v7482_v5 = vld [vmem:[%s7402_s22 + $0x28] sm:$0xff]  ;;  %v7485_v6 = vld [vmem:[%s7402_s22 + $0x30] sm:$0xff]  ;;  %v7488_v7 = vld [vmem:[%s7402_s22 + $0x38] sm:$0xff]  ;;  %v888_v11 = vand.u32 127, %v887_v8  ;;  %896 = vst [vmem:[#allocation2 + $0x18] sm:$0x3] %v6549_v12 }
 0x1f6   : > { %v7495_v9 = vld [vmem:[%s7402_s22 + $0x40] sm:$0xff]  ;;  %v7498_v10 = vld [vmem:[%s7402_s22 + $0x48] sm:$0xff]  ;;  %897 = vst [vmem:[#allocation2 + $0x30] sm:$0x3] %v6549_v12  ;;  %898 = vst [vmem:[#allocation2 + $0x48] sm:$0x3] %v6549_v12 }
 0x1f7   : > { %899 = vst [vmem:[#allocation2 + $0x60] sm:$0x3] %v6549_v12  ;;  %900 = vst [vmem:[#allocation2 + $0x78] sm:$0x3] %v6549_v12  ;;  %v7501_v13 = vld [vmem:[%s7402_s22 + $0x50] sm:$0xff]  ;;  %v7504_v14 = vld [vmem:[%s7402_s22 + $0x58] sm:$0xff] }
 0x1f8   : > { %931 = vadd.xlane.f32.xlu0 %v7471_v2  ;;  %935 = vadd.xlane.f32.xlu1 %v7474_v3  ;;  %901 = vst [vmem:[#allocation2 + $0x90] sm:$0x3] %v6549_v12  ;;  %902 = vst [vmem:[#allocation2 + $0xa8] sm:$0x3] %v6549_v12  ;;  %v7511_v15 = vld [vmem:[%s7402_s22 + $0x60] sm:$0xff]  ;;  %vm892_vm0 = vcmp.lt.s32.totalorder %v888_v11, 16 }
 0x1f9   : > { %903 = vst [vmem:[#allocation2 + $0x12] sm:$0x3] %v6549_v12  ;;  %904 = vst [vmem:[#allocation2 + $0x2a] sm:$0x3] %v6549_v12  ;;  %v7514_v16 = vld [vmem:[%s7402_s22 + $0x68] sm:$0xff]  ;;  %v7516_v17 = vsel %vm892_vm0, 1.0, %v6549_v12 }
 0x1fa   : > { %905 = vst [vmem:[#allocation2 + $0x42] sm:$0x3] %v6549_v12  ;;  %906 = vst [vmem:[#allocation2 + $0x5a] sm:$0x3] %v6549_v12  ;;  %v7519_v18 = vld [vmem:[%s7402_s22 + $0x70] sm:$0xff]  ;;  %v7522_v19 = vld [vmem:[%s7402_s22 + $0x78] sm:$0xff] }
 0x1fb   : > { %907 = vst [vmem:[#allocation2 + $0x72] sm:$0x3] %v6549_v12  ;;  %908 = vst [vmem:[#allocation2 + $0x8a] sm:$0x3] %v6549_v12  ;;  %vm889_vm1 = vcmp.lt.s32.totalorder %v888_v11, 32  ;;  %p850_p13 = scmp.lt.s32.totalorder %s849_s8, 1 }
 0x1fc   : > { %937 = vadd.xlane.f32.xlu0 %v7477_v4  ;;  %939 = vadd.xlane.f32.xlu1 %v7482_v5  ;;  %909 = vst [vmem:[#allocation2 + $0xa2] sm:$0x3] %v6549_v12  ;;  %910 = vst [vmem:[#allocation2 + $0xba] sm:$0x3] %v6549_v12  ;;  %v7528_v24 = vsel %vm889_vm1, 1.0, %v6549_v12  ;;  %s856_s11 = sld [smem:[#allocation4 + %s6755_s16]] }
 0x1fd   : > { %s9369_s8 = smov (!%p850_p13, %s849_s8), 1  ;;  %s863_s19 = sld [smem:[#allocation4 + %s6755_s16]] }
 0x1fe   : > { %s4770_s27 = sshll.u32 %s9369_s8, 1  ;;  %s9293_s8 = sld [smem:[#allocation81_spill]] }
 0x1ff   : > { %s7638_s7 = scalar_lea.vmem %s9292_s1, %s4770_s27  ;;  %s870_s29 = sld [smem:[#allocation4 + %s6755_s16]] }
 0x200   : > { %941 = vadd.xlane.f32.xlu0 %v7485_v6  ;;  %943 = vadd.xlane.f32.xlu1 %v7488_v7  ;;  %s9295_s1 = sld [smem:[#allocation85_spill]] }
 0x202   : > { %p857_p0 = scmp.lt.s32.totalorder %s856_s11, 1 }
 0x203   : > { %p864_p4 = scmp.lt.s32.totalorder %s863_s19, 1 }
 0x204   : > { %945 = vadd.xlane.f32.xlu0 %v7495_v9  ;;  %947 = vadd.xlane.f32.xlu1 %v7498_v10  ;;  %s9371_s11 = smov (!%p857_p0, %s856_s11), 1 }
 0x205   : > { %s4771_s9 = sshll.u32 %s9371_s11, 1  ;;  %s9373_s19 = smov (!%p864_p4, %s863_s19), 1 }
 0x206   : > { %s7699_s27 = scalar_lea.vmem %s9293_s8, %s4771_s9  ;;  %s4772_s21 = sshll.u32 %s9373_s19, 1 }
 0x207   : > { %s9294_s9 = sld [smem:[#allocation83_spill]]  ;;  %p871_p11 = scmp.lt.s32.totalorder %s870_s29, 1 }
 0x208   : > { %949 = vadd.xlane.f32.xlu0 %v7501_v13  ;;  %951 = vadd.xlane.f32.xlu1 %v7504_v14 }
 0x209   : > { %s9375_s29 = smov (!%p871_p11, %s870_s29), 1 }
 0x20a   : > { %s4773_s8 = sshll.u32 %s9375_s29, 1 }
 0x20b   : > { %s7937_s11 = scalar_lea.vmem %s9295_s1, %s4773_s8 }
 0x20c   : > { %953 = vadd.xlane.f32.xlu0 %v7511_v15  ;;  %955 = vadd.xlane.f32.xlu1 %v7514_v16 }
 0x20d   : > { %s7858_s25 = scalar_lea.vmem %s9294_s9, %s4772_s21  ;;  %s877_s9 = sld [smem:[#allocation4 + %s6755_s16]] }
 0x20e   : > { %s9296_s21 = sld [smem:[#allocation87_spill]]  ;;  %s4436_s16 = scalar_lea.sflag [#allocation7], %s7396_s13 }
 0x210   : > { %957 = vadd.xlane.f32.xlu0 %v7519_v18  ;;  %959 = vadd.xlane.f32.xlu1 %v7522_v19 }
 0x213   : > { %p878_p2 = scmp.lt.s32.totalorder %s877_s9, 1 }
 0x215   : > { %s9377_s9 = smov (!%p878_p2, %s877_s9), 1 }
 0x216   : > { %s4774_s29 = sshll.u32 %s9377_s9, 1 }
 0x217   : > { %s8119_s1 = scalar_lea.vmem %s9296_s21, %s4774_s29 }
 0x27d   : > { %v930_v20 = vpop.xlane.xlu0 %929  ;;  %v934_v21 = vpop.xlane.xlu1 %933 }
 0x27e   : > { %v961_v22 = vmul.f32 0.03125, %v930_v20  ;;  %v963_v23 = vmul.f32 0.03125, %v934_v21 }
 0x280   : > { %v977_v25 = vsub.f32 %v7463_v0, %v961_v22  ;;  %v979_v26 = vsub.f32 %v7466_v1, %v963_v23 }
 0x281   : > { %v932_v27 = vpop.xlane.xlu0 %931  ;;  %v936_v28 = vpop.xlane.xlu1 %935 }
 0x282   : > { %v962_v29 = vmul.f32 0.03125, %v932_v27  ;;  %v964_v30 = vmul.f32 0.03125, %v936_v28  ;;  %v7533_v31 = vmul.f32 %v7528_v24, %v977_v25  ;;  %v7536_v32 = vmul.f32 %v7528_v24, %v979_v26 }
 0x284   : > { %v978_v33 = vsub.f32 %v7471_v2, %v962_v29  ;;  %v980_v34 = vsub.f32 %v7474_v3, %v964_v30  ;;  %v1009_v35 = vmul.f32 %v7533_v31, %v7533_v31  ;;  %v1011_v38 = vmul.f32 %v7536_v32, %v7536_v32 }
 0x285   : > { %v938_v36 = vpop.xlane.xlu0 %937  ;;  %v940_v37 = vpop.xlane.xlu1 %939 }
 0x286   : > { %v965_v39 = vmul.f32 0.03125, %v938_v36  ;;  %1025 = vadd.xlane.f32.xlu0 %v1009_v35  ;;  %v966_v40 = vmul.f32 0.03125, %v940_v37  ;;  %v7545_v41 = vmul.f32 %v7528_v24, %v978_v33  ;;  %v7548_v42 = vmul.f32 %v7528_v24, %v980_v34 }
 0x288   : > { %v981_v43 = vsub.f32 %v7477_v4, %v965_v39  ;;  %v982_v44 = vsub.f32 %v7482_v5, %v966_v40  ;;  %v1010_v45 = vmul.f32 %v7545_v41, %v7545_v41  ;;  %v1012_v48 = vmul.f32 %v7548_v42, %v7548_v42 }
 0x289   : > { %v942_v46 = vpop.xlane.xlu0 %941  ;;  %v944_v47 = vpop.xlane.xlu1 %943 }
 0x28a   : > { %v967_v49 = vmul.f32 0.03125, %v942_v46  ;;  %1029 = vadd.xlane.f32.xlu0 %v1011_v38  ;;  %1027 = vadd.xlane.f32.xlu1 %v1010_v45  ;;  %v968_v50 = vmul.f32 0.03125, %v944_v47  ;;  %v7557_v51 = vmul.f32 %v7528_v24, %v981_v43  ;;  %v7560_v52 = vmul.f32 %v7528_v24, %v982_v44  ;;  %v5754_v47 = vld [vmem:[%s7418_s30 + $0x18] sm:$0xff]  }
 0x28c   : > { %v983_v53 = vsub.f32 %v7485_v6, %v967_v49  ;;  %v984_v54 = vsub.f32 %v7488_v7, %v968_v50  ;;  %v1013_v55 = vmul.f32 %v7557_v51, %v7557_v51  ;;  %v1014_v58 = vmul.f32 %v7560_v52, %v7560_v52  ;;  %v5756_v49 = vld [vmem:[%s7418_s30 + $0x8] sm:$0xff]   ;;  %v5757_v50 = vld [vmem:[%s7418_s30] sm:$0xff]  }
 0x28d   : > { %v946_v56 = vpop.xlane.xlu0 %945  ;;  %v948_v57 = vpop.xlane.xlu1 %947 }
 0x28e   : > { %v969_v59 = vmul.f32 0.03125, %v946_v56  ;;  %1031 = vadd.xlane.f32.xlu1 %v1012_v48  ;;  %1033 = vadd.xlane.f32.xlu0 %v1013_v55  ;;  %v970_v60 = vmul.f32 0.03125, %v948_v57  ;;  %v7569_v61 = vmul.f32 %v7528_v24, %v983_v53  ;;  %v7572_v62 = vmul.f32 %v7528_v24, %v984_v54  ;;  %v5755_v48 = vld [vmem:[%s7418_s30 + $0x10] sm:$0xff]  }
 0x290   : > { %v985_v63 = vsub.f32 %v7495_v9, %v969_v59  ;;  %v986_v0 = vsub.f32 %v7498_v10, %v970_v60  ;;  %v1015_v1 = vmul.f32 %v7569_v61, %v7569_v61  ;;  %v1016_v4 = vmul.f32 %v7572_v62, %v7572_v62  ;;  %v5750_v9 = vld [vmem:[%s7418_s30 + $0x38] sm:$0xff]  }
 0x291   : > { %v950_v2 = vpop.xlane.xlu0 %949  ;;  %v952_v3 = vpop.xlane.xlu1 %951  ;;  %5140 = vmatprep.subr.bf16.mxu0 %v5750_v9 }
 0x292   : > { %v971_v5 = vmul.f32 0.03125, %v950_v2  ;;  %1035 = vadd.xlane.f32.xlu1 %v1014_v58  ;;  %1037 = vadd.xlane.f32.xlu0 %v1015_v1  ;;  %v972_v6 = vmul.f32 0.03125, %v952_v3  ;;  %v7581_v7 = vmul.f32 %v7528_v24, %v985_v63  ;;  %v7584_v8 = vmul.f32 %v7528_v24, %v986_v0 }
 0x293   : > { %5141 = vmatpush3.bf16.msra.mxu0 %v5750_v9 }
 0x294   : > { %v987_v10 = vsub.f32 %v7501_v13, %v971_v5  ;;  %v988_v11 = vsub.f32 %v7504_v14, %v972_v6  ;;  %v1017_v12 = vmul.f32 %v7581_v7, %v7581_v7  ;;  %v1018_v22 = vmul.f32 %v7584_v8, %v7584_v8  ;;  %v5751_v14 = vld [vmem:[%s7418_s30 + $0x30] sm:$0xff]  }
 0x295   : > { %v954_v20 = vpop.xlane.xlu0 %953  ;;  %v956_v21 = vpop.xlane.xlu1 %955  ;;  %5142 = vmatprep.subr.bf16.mxu0 %v5751_v14 }
 0x296   : > { %v973_v23 = vmul.f32 0.03125, %v954_v20  ;;  %1039 = vadd.xlane.f32.xlu1 %v1016_v4  ;;  %1041 = vadd.xlane.f32.xlu0 %v1017_v12  ;;  %v974_v25 = vmul.f32 0.03125, %v956_v21  ;;  %v7594_v26 = vmul.f32 %v7528_v24, %v987_v10  ;;  %v7597_v13 = vmul.f32 %v7528_v24, %v988_v11 }
 0x297   : > { %5143 = vmatpush3.bf16.msra.mxu0 %v5751_v14 }
 0x298   : > { %v989_v27 = vsub.f32 %v7511_v15, %v973_v23  ;;  %v990_v28 = vsub.f32 %v7514_v16, %v974_v25  ;;  %v1019_v29 = vmul.f32 %v7594_v26, %v7594_v26  ;;  %v1020_v34 = vmul.f32 %v7597_v13, %v7597_v13  ;;  %v5752_v16 = vld [vmem:[%s7418_s30 + $0x28] sm:$0xff]  }
 0x299   : > { %v958_v30 = vpop.xlane.xlu0 %957  ;;  %v960_v33 = vpop.xlane.xlu1 %959  ;;  %5144 = vmatprep.subr.bf16.mxu0 %v5752_v16 }
 0x29a   : > { %v975_v35 = vmul.f32 0.03125, %v958_v30  ;;  %1043 = vadd.xlane.f32.xlu1 %v1018_v22  ;;  %1045 = vadd.xlane.f32.xlu0 %v1019_v29  ;;  %v976_v36 = vmul.f32 0.03125, %v960_v33  ;;  %v7607_v37 = vmul.f32 %v7528_v24, %v989_v27  ;;  %v7610_v15 = vmul.f32 %v7528_v24, %v990_v28  ;;  %v7642_v27 = vld [vmem:[%s690_s6] ss:$0 sm:$0xff] }
 0x29b   : > { %5145 = vmatpush3.bf16.msra.mxu0 %v5752_v16  ;;  %v7646_v16 = vld [vmem:[%s7638_s7] ss:$0 sm:$0xff] }
 0x29c   : > { %v991_v38 = vsub.f32 %v7519_v18, %v975_v35  ;;  %v992_v39 = vsub.f32 %v7522_v19, %v976_v36  ;;  %v1021_v40 = vmul.f32 %v7607_v37, %v7607_v37  ;;  %v1022_v43 = vmul.f32 %v7610_v15, %v7610_v15  ;;  %v5753_v18 = vld [vmem:[%s7418_s30 + $0x20] sm:$0xff]  }
 0x29d   : > { %5146 = vmatprep.subr.bf16.mxu0 %v5753_v18 }
 0x29e   : > { %1047 = vadd.xlane.f32.xlu1 %v1020_v34  ;;  %1049 = vadd.xlane.f32.xlu0 %v1021_v40  ;;  %v7620_v44 = vmul.f32 %v7528_v24, %v991_v38  ;;  %v7623_v45 = vmul.f32 %v7528_v24, %v992_v39 }
 0x29f   : > { %5147 = vmatpush3.bf16.msra.mxu0 %v5753_v18 }
 0x2a0   : > { %v1023_v19 = vmul.f32 %v7620_v44, %v7620_v44  ;;  %v1024_v46 = vmul.f32 %v7623_v45, %v7623_v45  ;;  %5148 = vmatprep.subr.bf16.mxu0 %v5754_v47 }
 0x2a2   : > { %1051 = vadd.xlane.f32.xlu1 %v1022_v43  ;;  %1053 = vadd.xlane.f32.xlu0 %v1023_v19 }
 0x2a3   : > { %5149 = vmatpush3.bf16.msra.mxu0 %v5754_v47 }
 0x2a4   : > { %5150 = vmatprep.subr.bf16.mxu0 %v5755_v48 }
 0x2a6   : > { %1055 = vadd.xlane.f32.xlu1 %v1024_v46 }
 0x2a7   : > { %5151 = vmatpush3.bf16.msra.mxu0 %v5755_v48 }
 0x2a8   : > { %5152 = vmatprep.subr.bf16.mxu0 %v5756_v49 }
 0x2ab   : > { %5153 = vmatpush3.bf16.msra.mxu0 %v5756_v49 }
 0x2ac   : > { %5154 = vmatprep.subr.bf16.mxu0 %v5757_v50 }
 0x2af   : > { %5155 = vmatpush3.bf16.msra.mxu0 %v5757_v50 }
 0x30f   : > { %v1026_v53 = vpop.xlane.xlu0 %1025 }
 0x310   : > { %v1057_v54 = vmul.f32 0.03125, %v1026_v53 }
 0x312   : > { %v1073_v55 = vadd.f32 1e-05, %v1057_v54 }
 0x313   : > { %v1028_v56 = vpop.xlane.xlu1 %1027  ;;  %v1030_v57 = vpop.xlane.xlu0 %1029 }
 0x314   : > { %5830 = vrsqrt.f32 %v1073_v55  ;;  %v1058_v58 = vmul.f32 0.03125, %v1028_v56  ;;  %v1059_v59 = vmul.f32 0.03125, %v1030_v57 }
 0x316   : > { %v1074_v60 = vadd.f32 1e-05, %v1058_v58  ;;  %v1075_v63 = vadd.f32 1e-05, %v1059_v59 }
 0x317   : > { %v1032_v0 = vpop.xlane.xlu1 %1031  ;;  %v1034_v1 = vpop.xlane.xlu0 %1033 }
 0x318   : > { %5832 = vrsqrt.f32 %v1074_v60  ;;  %v1060_v2 = vmul.f32 0.03125, %v1032_v0  ;;  %v1061_v3 = vmul.f32 0.03125, %v1034_v1 }
 0x319   : > { %5834 = vrsqrt.f32 %v1075_v63 }
 0x31a   : > { %v1076_v4 = vadd.f32 1e-05, %v1060_v2  ;;  %v1077_v5 = vadd.f32 1e-05, %v1061_v3 }
 0x31b   : > { %v1036_v6 = vpop.xlane.xlu1 %1035  ;;  %v1038_v9 = vpop.xlane.xlu0 %1037 }
 0x31c   : > { %5836 = vrsqrt.f32 %v1076_v4  ;;  %v1062_v10 = vmul.f32 0.03125, %v1036_v6  ;;  %v1063_v11 = vmul.f32 0.03125, %v1038_v9 }
 0x31d   : > { %5838 = vrsqrt.f32 %v1077_v5 }
 0x31e   : > { %v1078_v12 = vadd.f32 1e-05, %v1062_v10  ;;  %v1079_v20 = vadd.f32 1e-05, %v1063_v11 }
 0x31f   : > { %v1040_v21 = vpop.xlane.xlu1 %1039  ;;  %v1042_v22 = vpop.xlane.xlu0 %1041 }
 0x320   : > { %5840 = vrsqrt.f32 %v1078_v12  ;;  %v1064_v23 = vmul.f32 0.03125, %v1040_v21  ;;  %v1065_v25 = vmul.f32 0.03125, %v1042_v22 }
 0x321   : > { %v5831_v14 = vpop.eup %5830  ;;  %5842 = vrsqrt.f32 %v1079_v20 }
 0x322   : > { %v1080_v28 = vadd.f32 1e-05, %v1064_v23  ;;  %v1081_v29 = vadd.f32 1e-05, %v1065_v25  ;;  %v1105_v30 = vmul.f32 %v5831_v14, %v7533_v31 }
 0x323   : > { %v1044_v33 = vpop.xlane.xlu1 %1043  ;;  %v1046_v34 = vpop.xlane.xlu0 %1045 }
 0x324   : > { %5844 = vrsqrt.f32 %v1080_v28  ;;  %v1066_v35 = vmul.f32 0.03125, %v1044_v33  ;;  %v1067_v36 = vmul.f32 0.03125, %v1046_v34  ;;  %v1127_v38 = vmul.f32 %v7642_v27, %v1105_v30 }
 0x325   : > { %v5833_v39 = vpop.eup %5832  ;;  %5846 = vrsqrt.f32 %v1081_v29 }
 0x326   : > { %v5835_v40 = vpop.eup %5834  ;;  %v1082_v43 = vadd.f32 1e-05, %v1066_v35  ;;  %v1083_v18 = vadd.f32 1e-05, %v1067_v36  ;;  %v1106_v19 = vmul.f32 %v5833_v39, %v7545_v41  ;;  %v1149_v31 = vadd.f32 %v7646_v16, %v1127_v38 }
 0x327   : > { %v1048_v46 = vpop.xlane.xlu1 %1047  ;;  %v1050_v47 = vpop.xlane.xlu0 %1049  ;;  %v1107_v48 = vmul.f32 %v5835_v40, %v7536_v32 }
 0x328   : > { %5848 = vrsqrt.f32 %v1082_v43  ;;  %v1068_v49 = vmul.f32 0.03125, %v1048_v46  ;;  %v1069_v50 = vmul.f32 0.03125, %v1050_v47  ;;  %v1128_v53 = vmul.f32 %v7642_v27, %v1106_v19 }
 0x329   : > { %v5837_v54 = vpop.eup %5836  ;;  %5850 = vrsqrt.f32 %v1083_v18  ;;  %v1129_v55 = vmul.f32 %v7642_v27, %v1107_v48  ;;  %v1165_v0 = vmax.f32 %v1149_v31, 0.0 }
 0x32a   : > { %v5839_v56 = vpop.eup %5838  ;;  %v1084_v57 = vadd.f32 1e-05, %v1068_v49  ;;  %v1085_v58 = vadd.f32 1e-05, %v1069_v50  ;;  %v1150_v41 = vadd.f32 %v7646_v16, %v1128_v53  ;;  %v1108_v59 = vmul.f32 %v5837_v54, %v7548_v42 }
 0x32b   : > { %v1052_v60 = vpop.xlane.xlu1 %1051  ;;  %v1054_v63 = vpop.xlane.xlu0 %1053  ;;  %v1109_v32 = vmul.f32 %v5839_v56, %v7557_v51  ;;  %v1151_v6 = vadd.f32 %v7646_v16, %v1129_v55 }
 0x32c   : > { %5852 = vrsqrt.f32 %v1084_v57  ;;  %v1070_v1 = vmul.f32 0.03125, %v1052_v60  ;;  %v1071_v2 = vmul.f32 0.03125, %v1054_v63  ;;  %v1166_v3 = vmax.f32 %v1150_v41, 0.0 }
 0x32d   : > { %v5841_v4 = vpop.eup %5840  ;;  %5854 = vrsqrt.f32 %v1085_v58  ;;  %v1130_v5 = vmul.f32 %v7642_v27, %v1108_v59  ;;  %v1131_v9 = vmul.f32 %v7642_v27, %v1109_v32  ;;  %v1167_v29 = vmax.f32 %v1151_v6, 0.0 }
 0x32e   : > { %v5843_v10 = vpop.eup %5842  ;;  %v1086_v11 = vadd.f32 1e-05, %v1070_v1  ;;  %v1087_v42 = vadd.f32 1e-05, %v1071_v2  ;;  %v1197_v12 = vpack.c.bf16 %v1166_v3, %v1165_v0  ;;  %v1110_v20 = vmul.f32 %v5841_v4, %v7560_v52 }
 0x32f   : > { %v1056_v21 = vpop.xlane.xlu1 %1055  ;;  %v1152_v51 = vadd.f32 %v7646_v16, %v1130_v5  ;;  %v1153_v22 = vadd.f32 %v7646_v16, %v1131_v9  ;;  %v1111_v23 = vmul.f32 %v5843_v10, %v7569_v61 }
 0x330   : > { %5856 = vrsqrt.f32 %v1086_v11  ;;  %v1072_v25 = vmul.f32 0.03125, %v1056_v21  ;;  %5156 = vmatprep.mubr.bf16.mxu0 %v1197_v12  ;;  %v1132_v14 = vmul.f32 %v7642_v27, %v1110_v20 }
 0x331   : > { %v5845_v28 = vpop.eup %5844  ;;  %5858 = vrsqrt.f32 %v1087_v42  ;;  %v1168_v30 = vmax.f32 %v1152_v51, 0.0  ;;  %v1133_v33 = vmul.f32 %v7642_v27, %v1111_v23  ;;  %v1169_v39 = vmax.f32 %v1153_v22, 0.0 }
 0x332   : > { %v5847_v34 = vpop.eup %5846  ;;  %v1088_v52 = vadd.f32 1e-05, %v1072_v25  ;;  %v1154_v35 = vadd.f32 %v7646_v16, %v1132_v14  ;;  %v1112_v36 = vmul.f32 %v5845_v28, %v7572_v62 }
 0x333   : > { %v1198_v38 = vpack.c.bf16 %v1168_v30, %v1167_v29  ;;  %v1113_v61 = vmul.f32 %v5847_v34, %v7581_v7  ;;  %v1155_v18 = vadd.f32 %v7646_v16, %v1133_v33 }
 0x334   : > { %5860 = vrsqrt.f32 %v1088_v52  ;;  %v1170_v40 = vmax.f32 %v1154_v35, 0.0  ;;  %v1134_v43 = vmul.f32 %v7642_v27, %v1112_v36 }
 0x335   : > { %v5849_v19 = vpop.eup %5848  ;;  %5157 = vmatmul.mubr.bf16.vlgmr.msra.gmra.mxu0 %v1198_v38  ;;  %v1135_v46 = vmul.f32 %v7642_v27, %v1113_v61  ;;  %v1171_v7 = vmax.f32 %v1155_v18, 0.0 }
 0x336   : > { %v5851_v47 = vpop.eup %5850  ;;  %v1199_v31 = vpack.c.bf16 %v1170_v40, %v1169_v39  ;;  %v1156_v48 = vadd.f32 %v7646_v16, %v1134_v43  ;;  %v1114_v62 = vmul.f32 %v5849_v19, %v7584_v8 }
 0x337   : > { %v1115_v49 = vmul.f32 %v5851_v47, %v7594_v26  ;;  %v1157_v54 = vadd.f32 %v7646_v16, %v1135_v46 }
 0x338   : > { %5160 = vmatprep.mubr.bf16.mxu0 %v1199_v31  ;;  %v1172_v50 = vmax.f32 %v1156_v48, 0.0  ;;  %v1136_v53 = vmul.f32 %v7642_v27, %v1114_v62 }
 0x339   : > { %v5853_v55 = vpop.eup %5852  ;;  %v1137_v56 = vmul.f32 %v7642_v27, %v1115_v49  ;;  %v1173_v60 = vmax.f32 %v1157_v54, 0.0 }
 0x33a   : > { %v5855_v57 = vpop.eup %5854  ;;  %v1200_v58 = vpack.c.bf16 %v1172_v50, %v1171_v7  ;;  %v1158_v41 = vadd.f32 %v7646_v16, %v1136_v53  ;;  %v1116_v59 = vmul.f32 %v5853_v55, %v7597_v13 }
 0x33b   : > { %v1117_v8 = vmul.f32 %v5855_v57, %v7607_v37  ;;  %v1159_v0 = vadd.f32 %v7646_v16, %v1137_v56 }
 0x33c   : > { %v1174_v26 = vmax.f32 %v1158_v41, 0.0  ;;  %v1138_v63 = vmul.f32 %v7642_v27, %v1116_v59 }
 0x33d   : > { %v5857_v32 = vpop.eup %5856  ;;  %5161 = vmatmul.mubr.bf16.gmra.mxu0 %v1200_v58  ;;  %v1139_v1 = vmul.f32 %v7642_v27, %v1117_v8  ;;  %v1175_v37 = vmax.f32 %v1159_v0, 0.0 }
 0x33e   : > { %v5859_v2 = vpop.eup %5858  ;;  %v1201_v3 = vpack.c.bf16 %v1174_v26, %v1173_v60  ;;  %v1160_v4 = vadd.f32 %v7646_v16, %v1138_v63  ;;  %v1118_v5 = vmul.f32 %v5857_v32, %v7610_v15 }
 0x33f   : > { %v1119_v13 = vmul.f32 %v5859_v2, %v7620_v44  ;;  %v1161_v10 = vadd.f32 %v7646_v16, %v1139_v1 }
 0x340   : > { %5164 = vmatprep.mubr.bf16.mxu0 %v1201_v3  ;;  %v1176_v6 = vmax.f32 %v1160_v4, 0.0  ;;  %v1140_v9 = vmul.f32 %v7642_v27, %v1118_v5 }
 0x341   : > { %v5861_v11 = vpop.eup %5860  ;;  %v1141_v42 = vmul.f32 %v7642_v27, %v1119_v13  ;;  %v1177_v51 = vmax.f32 %v1161_v10, 0.0 }
 0x342   : > { %v1202_v12 = vpack.c.bf16 %v1176_v6, %v1175_v37  ;;  %v1162_v20 = vadd.f32 %v7646_v16, %v1140_v9  ;;  %v1120_v21 = vmul.f32 %v5861_v11, %v7623_v45 }
 0x343   : > { %v1163_v22 = vadd.f32 %v7646_v16, %v1141_v42 }
 0x344   : > { %v1178_v15 = vmax.f32 %v1162_v20, 0.0  ;;  %v1142_v44 = vmul.f32 %v7642_v27, %v1120_v21  ;;  %v4779_v27 = vld [vmem:[%s7699_s27] ss:$0 sm:$0xff] }
 0x345   : > { %5165 = vmatmul.mubr.bf16.gmra.mxu0 %v1202_v12  ;;  %v1179_v14 = vmax.f32 %v1163_v22, 0.0 }
 0x346   : > { %v1203_v23 = vpack.c.bf16 %v1178_v15, %v1177_v51  ;;  %v1164_v25 = vadd.f32 %v7646_v16, %v1142_v44 }
 0x348   : > { %5168 = vmatprep.mubr.bf16.mxu0 %v1203_v23  ;;  %v1180_v28 = vmax.f32 %v1164_v25, 0.0 }
 0x34a   : > { %v1204_v29 = vpack.c.bf16 %v1180_v28, %v1179_v14 }
 0x34d   : > { %5169 = vmatmul.mubr.bf16.gmra.mxu0 %v1204_v29 }
 0x3f5   : > { %v5158_v45 = vpop.f32.mrf.mxu0 }
 0x3f6   : > { %v1303_v52 = vadd.f32 %v5158_v45, %v4779_v27 }
 0x3f7   : > { %v1294_v30 = vpop.f32.mrf.mxu0 }
 0x3f8   : > { %v1295_v33 = vadd.f32 %v4779_v27, %v1294_v30 }
 0x3f9   : > { %v5159_v16 = vpop.f32.mrf.mxu0 }
 0x3fa   : > { %1359 = vadd.xlane.f32.xlu0 %v1295_v33  ;;  %v7702_v39 = vadd.f32 %v5159_v16, %v4779_v27 }
 0x3fb   : > { %v1297_v34 = vpop.f32.mrf.mxu0 }
 0x3fc   : > { %v1298_v35 = vadd.f32 %v4779_v27, %v1297_v34 }
 0x3fd   : > { %v5162_v36 = vpop.f32.mrf.mxu0 }
 0x3fe   : > { %1361 = vadd.xlane.f32.xlu1 %v1298_v35  ;;  %1363 = vadd.xlane.f32.xlu0 %v1303_v52  ;;  %v7708_v18 = vadd.f32 %v5162_v36, %v4779_v27 }
 0x3ff   : > { %v1310_v38 = vpop.f32.mrf.mxu0 }
 0x400   : > { %v7704_v61 = vadd.f32 %v4779_v27, %v1310_v38 }
 0x401   : > { %v5163_v40 = vpop.f32.mrf.mxu0 }
 0x402   : > { %1365 = vadd.xlane.f32.xlu1 %v7702_v39  ;;  %1367 = vadd.xlane.f32.xlu0 %v7704_v61  ;;  %v7714_v31 = vadd.f32 %v5163_v40, %v4779_v27 }
 0x403   : > { %v1313_v43 = vpop.f32.mrf.mxu0 }
 0x404   : > { %v7710_v19 = vadd.f32 %v4779_v27, %v1313_v43 }
 0x405   : > { %v5166_v46 = vpop.f32.mrf.mxu0 }
 0x406   : > { %1369 = vadd.xlane.f32.xlu1 %v7710_v19  ;;  %1371 = vadd.xlane.f32.xlu0 %v7708_v18  ;;  %v7720_v7 = vadd.f32 %v5166_v46, %v4779_v27 }
 0x407   : > { %v1326_v47 = vpop.f32.mrf.mxu0 }
 0x408   : > { %v7716_v48 = vadd.f32 %v4779_v27, %v1326_v47 }
 0x409   : > { %v5167_v62 = vpop.f32.mrf.mxu0 }
 0x40a   : > { %1373 = vadd.xlane.f32.xlu1 %v7714_v31  ;;  %1375 = vadd.xlane.f32.xlu0 %v7716_v48  ;;  %v7726_v55 = vadd.f32 %v5167_v62, %v4779_v27 }
 0x40b   : > { %v1329_v49 = vpop.f32.mrf.mxu0 }
 0x40c   : > { %v7722_v50 = vadd.f32 %v4779_v27, %v1329_v49 }
 0x40d   : > { %v5170_v53 = vpop.f32.mrf.mxu0 }
 0x40e   : > { %1377 = vadd.xlane.f32.xlu1 %v7722_v50  ;;  %1379 = vadd.xlane.f32.xlu0 %v7720_v7  ;;  %v7732_v41 = vadd.f32 %v5170_v53, %v4779_v27 }
 0x40f   : > { %v1342_v54 = vpop.f32.mrf.mxu0 }
 0x410   : > { %v7728_v56 = vadd.f32 %v4779_v27, %v1342_v54 }
 0x411   : > { %v5171_v57 = vpop.f32.mrf.mxu0 }
 0x412   : > { %1381 = vadd.xlane.f32.xlu1 %v7726_v55  ;;  %1383 = vadd.xlane.f32.xlu0 %v7728_v56  ;;  %v7738_v8 = vadd.f32 %v5171_v57, %v4779_v27 }
 0x413   : > { %v1345_v58 = vpop.f32.mrf.mxu0 }
 0x414   : > { %v7734_v59 = vadd.f32 %v4779_v27, %v1345_v58 }
 0x416   : > { %1385 = vadd.xlane.f32.xlu1 %v7734_v59  ;;  %1387 = vadd.xlane.f32.xlu0 %v7732_v41 }
 0x41a   : > { %1389 = vadd.xlane.f32.xlu1 %v7738_v8 }
 0x483   : > { %v1360_v60 = vpop.xlane.xlu0 %1359 }
 0x484   : > { %v1391_v26 = vmul.f32 0.0625, %v1360_v60 }
 0x486   : > { %v1407_v63 = vsub.f32 %v1295_v33, %v1391_v26 }
 0x487   : > { %v1362_v0 = vpop.xlane.xlu1 %1361  ;;  %v1364_v32 = vpop.xlane.xlu0 %1363 }
 0x488   : > { %v1392_v1 = vmul.f32 0.0625, %v1362_v0  ;;  %v1393_v2 = vmul.f32 0.0625, %v1364_v32  ;;  %v7742_v3 = vmul.f32 %v7516_v17, %v1407_v63 }
 0x48a   : > { %v1408_v4 = vsub.f32 %v1298_v35, %v1392_v1  ;;  %v1409_v5 = vsub.f32 %v1303_v52, %v1393_v2  ;;  %v1439_v13 = vmul.f32 %v7742_v3, %v7742_v3 }
 0x48b   : > { %v1366_v37 = vpop.xlane.xlu1 %1365  ;;  %v1368_v6 = vpop.xlane.xlu0 %1367 }
 0x48c   : > { %v1394_v9 = vmul.f32 0.0625, %v1366_v37  ;;  %v1395_v10 = vmul.f32 0.0625, %v1368_v6  ;;  %1455 = vadd.xlane.f32.xlu0 %v1439_v13  ;;  %v7747_v11 = vmul.f32 %v7516_v17, %v1408_v4  ;;  %v7750_v42 = vmul.f32 %v7516_v17, %v1409_v5  ;;  %v5762_v6 = vld [vmem:[%s7433_s26 + $0x68] sm:$0xff]  }
 0x48e   : > { %v1410_v12 = vsub.f32 %v7702_v39, %v1394_v9  ;;  %v1411_v20 = vsub.f32 %v7704_v61, %v1395_v10  ;;  %v1440_v21 = vmul.f32 %v7747_v11, %v7747_v11  ;;  %v1441_v51 = vmul.f32 %v7750_v42, %v7750_v42 }
 0x48f   : > { %v1370_v15 = vpop.xlane.xlu1 %1369  ;;  %v1372_v44 = vpop.xlane.xlu0 %1371 }
 0x490   : > { %v1396_v22 = vmul.f32 0.0625, %v1370_v15  ;;  %v1397_v23 = vmul.f32 0.0625, %v1372_v44  ;;  %1457 = vadd.xlane.f32.xlu1 %v1440_v21  ;;  %1459 = vadd.xlane.f32.xlu0 %v1441_v51  ;;  %v7759_v25 = vmul.f32 %v7516_v17, %v1410_v12  ;;  %v7762_v14 = vmul.f32 %v7516_v17, %v1411_v20  ;;  %v5764_v44 = vld [vmem:[%s7433_s26 + $0x60] sm:$0xff]  }
 0x492   : > { %v1412_v28 = vsub.f32 %v7710_v19, %v1396_v22  ;;  %v1413_v29 = vsub.f32 %v7708_v18, %v1397_v23  ;;  %v1442_v45 = vmul.f32 %v7759_v25, %v7759_v25  ;;  %v1443_v27 = vmul.f32 %v7762_v14, %v7762_v14 }
 0x493   : > { %v1374_v30 = vpop.xlane.xlu1 %1373  ;;  %v1376_v33 = vpop.xlane.xlu0 %1375 }
 0x494   : > { %v1398_v16 = vmul.f32 0.0625, %v1374_v30  ;;  %v1399_v34 = vmul.f32 0.0625, %v1376_v33  ;;  %1461 = vadd.xlane.f32.xlu1 %v1442_v45  ;;  %1463 = vadd.xlane.f32.xlu0 %v1443_v27  ;;  %v7771_v52 = vmul.f32 %v7516_v17, %v1412_v28  ;;  %v7774_v35 = vmul.f32 %v7516_v17, %v1413_v29  ;;  %v5763_v45 = vld [vmem:[%s7433_s26 + $0x28] sm:$0xff]   ;;  %v5765_v30 = vld [vmem:[%s7433_s26 + $0x20] sm:$0xff]   ;;  %v5768_v33 = vld [vmem:[%s7433_s26 + $0x50] sm:$0xff]  }
 0x496   : > { %v1414_v36 = vsub.f32 %v7714_v31, %v1398_v16  ;;  %v1415_v38 = vsub.f32 %v7716_v48, %v1399_v34  ;;  %v1444_v39 = vmul.f32 %v7771_v52, %v7771_v52  ;;  %v1445_v61 = vmul.f32 %v7774_v35, %v7774_v35  ;;  %v5758_v31 = vld [vmem:[%s7433_s26 + $0x78] sm:$0xff]   ;;  %v5770_v34 = vld [vmem:[%s7433_s26 + $0x48] sm:$0xff]  }
 0x497   : > { %v1378_v40 = vpop.xlane.xlu1 %1377  ;;  %v1380_v43 = vpop.xlane.xlu0 %1379  ;;  %5172 = vmatprep.subr.bf16.mxu1 %v5758_v31  ;;  %v5767_v16 = vld [vmem:[%s7433_s26 + $0x18] sm:$0xff]  }
 0x498   : > { %v1400_v18 = vmul.f32 0.0625, %v1378_v40  ;;  %v1401_v19 = vmul.f32 0.0625, %v1380_v43  ;;  %1465 = vadd.xlane.f32.xlu1 %v1444_v39  ;;  %1467 = vadd.xlane.f32.xlu0 %v1445_v61  ;;  %v7783_v46 = vmul.f32 %v7516_v17, %v1414_v36  ;;  %v7786_v47 = vmul.f32 %v7516_v17, %v1415_v38  ;;  %v5769_v36 = vld [vmem:[%s7433_s26 + $0x10] sm:$0xff]   ;;  %v5772_v38 = vld [vmem:[%s7433_s26 + $0x40] sm:$0xff]   ;;  %v5771_v39 = vld [vmem:[%s7433_s26 + $0x8] sm:$0xff]  }
 0x499   : > { %5173 = vmatpush3.bf16.msra.mxu1 %v5758_v31  ;;  %v7850_v61 = vld [vmem:[%s7433_s26 + $0xb8] sm:$0xff]   ;;  %v5773_v40 = vld [vmem:[%s7433_s26] sm:$0xff]  }
 0x49a   : > { %v1416_v48 = vsub.f32 %v7722_v50, %v1400_v18  ;;  %v1417_v62 = vsub.f32 %v7720_v7, %v1401_v19  ;;  %v1446_v49 = vmul.f32 %v7783_v46, %v7783_v46  ;;  %v1447_v53 = vmul.f32 %v7786_v47, %v7786_v47  ;;  %v5760_v7 = vld [vmem:[%s7433_s26 + $0x70] sm:$0xff]  }
 0x49b   : > { %v1382_v54 = vpop.xlane.xlu1 %1381  ;;  %v1384_v57 = vpop.xlane.xlu0 %1383  ;;  %5174 = vmatprep.subr.bf16.mxu1 %v5760_v7 }
 0x49c   : > { %v1402_v58 = vmul.f32 0.0625, %v1382_v54  ;;  %v1403_v60 = vmul.f32 0.0625, %v1384_v57  ;;  %1469 = vadd.xlane.f32.xlu1 %v1446_v49  ;;  %1471 = vadd.xlane.f32.xlu0 %v1447_v53  ;;  %v7796_v26 = vmul.f32 %v7516_v17, %v1416_v48  ;;  %v7799_v50 = vmul.f32 %v7516_v17, %v1417_v62 }
 0x49d   : > { %5175 = vmatpush3.bf16.msra.mxu1 %v5760_v7 }
 0x49e   : > { %v1418_v63 = vsub.f32 %v7726_v55, %v1402_v58  ;;  %v1419_v0 = vsub.f32 %v7728_v56, %v1403_v60  ;;  %v1448_v32 = vmul.f32 %v7796_v26, %v7796_v26  ;;  %v1449_v1 = vmul.f32 %v7799_v50, %v7799_v50  ;;  %v5759_v56 = vld [vmem:[%s7433_s26 + $0x38] sm:$0xff]   ;;  %5176 = vmatprep.subr.bf16.mxu1 %v5762_v6 }
 0x49f   : > { %v1386_v2 = vpop.xlane.xlu1 %1385  ;;  %v1388_v4 = vpop.xlane.xlu0 %1387  ;;  %5204 = vmatprep.subr.bf16.mxu0 %v5759_v56 }
 0x4a0   : > { %v1404_v5 = vmul.f32 0.0625, %v1386_v2  ;;  %v1405_v13 = vmul.f32 0.0625, %v1388_v4  ;;  %1473 = vadd.xlane.f32.xlu1 %v1448_v32  ;;  %1475 = vadd.xlane.f32.xlu0 %v1449_v1  ;;  %v7809_v37 = vmul.f32 %v7516_v17, %v1418_v63  ;;  %v7812_v55 = vmul.f32 %v7516_v17, %v1419_v0 }
 0x4a1   : > { %5205 = vmatpush3.bf16.msra.mxu0 %v5759_v56  ;;  %5177 = vmatpush3.bf16.msra.mxu1 %v5762_v6 }
 0x4a2   : > { %v1420_v9 = vsub.f32 %v7734_v59, %v1404_v5  ;;  %v1421_v10 = vsub.f32 %v7732_v41, %v1405_v13  ;;  %v1450_v12 = vmul.f32 %v7809_v37, %v7809_v37  ;;  %v1451_v20 = vmul.f32 %v7812_v55, %v7812_v55  ;;  %v5761_v41 = vld [vmem:[%s7433_s26 + $0x30] sm:$0xff]   ;;  %5178 = vmatprep.subr.bf16.mxu1 %v5764_v44 }
 0x4a3   : > { %v1390_v21 = vpop.xlane.xlu1 %1389  ;;  %5206 = vmatprep.subr.bf16.mxu0 %v5761_v41 }
 0x4a4   : > { %v1406_v51 = vmul.f32 0.0625, %v1390_v21  ;;  %1477 = vadd.xlane.f32.xlu1 %v1450_v12  ;;  %1479 = vadd.xlane.f32.xlu0 %v1451_v20  ;;  %v7823_v15 = vmul.f32 %v7516_v17, %v1420_v9  ;;  %v7826_v59 = vmul.f32 %v7516_v17, %v1421_v10  ;;  %v7862_v20 = vld [vmem:[%s708_s14] ss:$0 sm:$0xff] }
 0x4a5   : > { %5207 = vmatpush3.bf16.msra.mxu0 %v5761_v41  ;;  %5179 = vmatpush3.bf16.msra.mxu1 %v5764_v44  ;;  %v7866_v44 = vld [vmem:[%s7858_s25] ss:$0 sm:$0xff] }
 0x4a6   : > { %v1422_v22 = vsub.f32 %v7738_v8, %v1406_v51  ;;  %v1452_v23 = vmul.f32 %v7823_v15, %v7823_v15  ;;  %v1453_v28 = vmul.f32 %v7826_v59, %v7826_v59  ;;  %v5766_v8 = vld [vmem:[%s7433_s26 + $0x58] sm:$0xff]   ;;  %5208 = vmatprep.subr.bf16.mxu0 %v5763_v45 }
 0x4a7   : > { %5180 = vmatprep.subr.bf16.mxu1 %v5766_v8 }
 0x4a8   : > { %1481 = vadd.xlane.f32.xlu1 %v1452_v23  ;;  %1483 = vadd.xlane.f32.xlu0 %v1453_v28  ;;  %v7836_v29 = vmul.f32 %v7516_v17, %v1422_v22 }
 0x4a9   : > { %5209 = vmatpush3.bf16.msra.mxu0 %v5763_v45  ;;  %5181 = vmatpush3.bf16.msra.mxu1 %v5766_v8 }
 0x4aa   : > { %v1454_v27 = vmul.f32 %v7836_v29, %v7836_v29  ;;  %5210 = vmatprep.subr.bf16.mxu0 %v5765_v30  ;;  %5182 = vmatprep.subr.bf16.mxu1 %v5768_v33 }
 0x4ac   : > { %1485 = vadd.xlane.f32.xlu1 %v1454_v27 }
 0x4ad   : > { %5211 = vmatpush3.bf16.msra.mxu0 %v5765_v30  ;;  %5183 = vmatpush3.bf16.msra.mxu1 %v5768_v33 }
 0x4ae   : > { %5212 = vmatprep.subr.bf16.mxu0 %v5767_v16  ;;  %5184 = vmatprep.subr.bf16.mxu1 %v5770_v34 }
 0x4b1   : > { %5213 = vmatpush3.bf16.msra.mxu0 %v5767_v16  ;;  %5185 = vmatpush3.bf16.msra.mxu1 %v5770_v34 }
 0x4b2   : > { %5214 = vmatprep.subr.bf16.mxu0 %v5769_v36  ;;  %5186 = vmatprep.subr.bf16.mxu1 %v5772_v38 }
 0x4b5   : > { %5215 = vmatpush3.bf16.msra.mxu0 %v5769_v36  ;;  %5187 = vmatpush3.bf16.msra.mxu1 %v5772_v38 }
 0x4b6   : > { %5216 = vmatprep.subr.bf16.mxu0 %v5771_v39  ;;  %5236 = vmatprep.subr.bf16.mxu1 %v7850_v61 }
 0x4b9   : > { %5217 = vmatpush3.bf16.msra.mxu0 %v5771_v39 }
 0x4ba   : > { %5218 = vmatprep.subr.bf16.mxu0 %v5773_v40 }
 0x4bd   : > { %5219 = vmatpush3.bf16.msra.mxu0 %v5773_v40 }
 0x515   : > { %v1456_v43 = vpop.xlane.xlu0 %1455 }
 0x516   : > { %v1487_v18 = vmul.f32 0.0625, %v1456_v43 }
 0x518   : > { %v1503_v19 = vadd.f32 1e-05, %v1487_v18 }
 0x519   : > { %v1458_v31 = vpop.xlane.xlu1 %1457  ;;  %v1460_v48 = vpop.xlane.xlu0 %1459 }
 0x51a   : > { %5862 = vrsqrt.f32 %v1503_v19  ;;  %v1488_v62 = vmul.f32 0.0625, %v1458_v31  ;;  %v1489_v49 = vmul.f32 0.0625, %v1460_v48 }
 0x51c   : > { %v1504_v53 = vadd.f32 1e-05, %v1488_v62  ;;  %v1505_v54 = vadd.f32 1e-05, %v1489_v49 }
 0x51d   : > { %v1462_v57 = vpop.xlane.xlu1 %1461  ;;  %v1464_v58 = vpop.xlane.xlu0 %1463 }
 0x51e   : > { %5864 = vrsqrt.f32 %v1504_v53  ;;  %v1490_v60 = vmul.f32 0.0625, %v1462_v57  ;;  %v1491_v7 = vmul.f32 0.0625, %v1464_v58 }
 0x51f   : > { %5866 = vrsqrt.f32 %v1505_v54 }
 0x520   : > { %v1506_v63 = vadd.f32 1e-05, %v1490_v60  ;;  %v1507_v0 = vadd.f32 1e-05, %v1491_v7 }
 0x521   : > { %v1466_v32 = vpop.xlane.xlu1 %1465  ;;  %v1468_v1 = vpop.xlane.xlu0 %1467 }
 0x522   : > { %5868 = vrsqrt.f32 %v1506_v63  ;;  %v1492_v2 = vmul.f32 0.0625, %v1466_v32  ;;  %v1493_v4 = vmul.f32 0.0625, %v1468_v1 }
 0x523   : > { %5870 = vrsqrt.f32 %v1507_v0 }
 0x524   : > { %v1508_v5 = vadd.f32 1e-05, %v1492_v2  ;;  %v1509_v13 = vadd.f32 1e-05, %v1493_v4 }
 0x525   : > { %v1470_v56 = vpop.xlane.xlu1 %1469  ;;  %v1472_v6 = vpop.xlane.xlu0 %1471 }
 0x526   : > { %5872 = vrsqrt.f32 %v1508_v5  ;;  %v1494_v9 = vmul.f32 0.0625, %v1470_v56  ;;  %v1495_v10 = vmul.f32 0.0625, %v1472_v6 }
 0x527   : > { %v5863_v12 = vpop.eup %5862  ;;  %5874 = vrsqrt.f32 %v1509_v13 }
 0x528   : > { %v1535_v21 = vmul.f32 %v5863_v12, %v7742_v3  ;;  %v1510_v51 = vadd.f32 1e-05, %v1494_v9  ;;  %v1511_v41 = vadd.f32 1e-05, %v1495_v10 }
 0x529   : > { %v1474_v22 = vpop.xlane.xlu1 %1473  ;;  %v1476_v23 = vpop.xlane.xlu0 %1475 }
 0x52a   : > { %v1557_v28 = vmul.f32 %v7862_v20, %v1535_v21  ;;  %5876 = vrsqrt.f32 %v1510_v51  ;;  %v1496_v45 = vmul.f32 0.0625, %v1474_v22  ;;  %v1497_v8 = vmul.f32 0.0625, %v1476_v23 }
 0x52b   : > { %v5865_v27 = vpop.eup %5864  ;;  %5878 = vrsqrt.f32 %v1511_v41 }
 0x52c   : > { %v5867_v30 = vpop.eup %5866  ;;  %v1579_v33 = vadd.f32 %v7866_v44, %v1557_v28  ;;  %v1536_v16 = vmul.f32 %v5865_v27, %v7747_v11  ;;  %v1512_v34 = vadd.f32 1e-05, %v1496_v45  ;;  %v1513_v3 = vadd.f32 1e-05, %v1497_v8 }
 0x52d   : > { %v1537_v36 = vmul.f32 %v5867_v30, %v7750_v42  ;;  %v1478_v38 = vpop.xlane.xlu1 %1477  ;;  %v1480_v39 = vpop.xlane.xlu0 %1479  ;;  %v5775_v30 = vld [vmem:[%s7433_s26 + $0xb0] sm:$0xff]  }
 0x52e   : > { %v1595_v40 = vmax.f32 %v1579_v33, 0.0  ;;  %v1558_v43 = vmul.f32 %v7862_v20, %v1536_v16  ;;  %5880 = vrsqrt.f32 %v1512_v34  ;;  %v1498_v18 = vmul.f32 0.0625, %v1478_v38 }
 0x52f   : > { %v5869_v19 = vpop.eup %5868  ;;  %v1559_v31 = vmul.f32 %v7862_v20, %v1537_v36  ;;  %5882 = vrsqrt.f32 %v1513_v3  ;;  %v1499_v48 = vmul.f32 0.0625, %v1480_v39 }
 0x530   : > { %v5871_v62 = vpop.eup %5870  ;;  %1611 = vst [vmem:[#allocation2 + $0x2] sm:$0xff] %v1595_v40  ;;  %v1580_v11 = vadd.f32 %v7866_v44, %v1558_v43  ;;  %v1538_v49 = vmul.f32 %v5869_v19, %v7759_v25  ;;  %v1514_v53 = vadd.f32 1e-05, %v1498_v18 }
 0x531   : > { %v1581_v42 = vadd.f32 %v7866_v44, %v1559_v31  ;;  %v1539_v54 = vmul.f32 %v5871_v62, %v7762_v14  ;;  %v1515_v57 = vadd.f32 1e-05, %v1499_v48  ;;  %v1482_v58 = vpop.xlane.xlu1 %1481  ;;  %v1484_v60 = vpop.xlane.xlu0 %1483  ;;  %v5776_v48 = vld [vmem:[%s7433_s26 + $0xa8] sm:$0xff]  }
 0x532   : > { %v1596_v7 = vmax.f32 %v1580_v11, 0.0  ;;  %v1560_v63 = vmul.f32 %v7862_v20, %v1538_v49  ;;  %5884 = vrsqrt.f32 %v1514_v53  ;;  %v1500_v0 = vmul.f32 0.0625, %v1482_v58 }
 0x533   : > { %v5873_v32 = vpop.eup %5872  ;;  %v1597_v1 = vmax.f32 %v1581_v42, 0.0  ;;  %v1561_v2 = vmul.f32 %v7862_v20, %v1539_v54  ;;  %5886 = vrsqrt.f32 %v1515_v57  ;;  %v1501_v4 = vmul.f32 0.0625, %v1484_v60 }
 0x534   : > { %v5875_v25 = vpop.eup %5874  ;;  %1612 = vst [vmem:[#allocation2 + $0xa] sm:$0xff] %v1596_v7  ;;  %v1582_v5 = vadd.f32 %v7866_v44, %v1560_v63  ;;  %v1540_v14 = vmul.f32 %v5873_v32, %v7771_v52  ;;  %v1516_v13 = vadd.f32 1e-05, %v1500_v0  ;;  %v1699_v56 = vpack.c.bf16 %v1596_v7, %v1595_v40  ;;  %v5777_v0 = vld [vmem:[%s7433_s26 + $0xa0] sm:$0xff]  }
 0x535   : > { %1613 = vst [vmem:[#allocation2 + $0x1a] sm:$0xff] %v1597_v1  ;;  %v1583_v6 = vadd.f32 %v7866_v44, %v1561_v2  ;;  %v1541_v9 = vmul.f32 %v5875_v25, %v7774_v35  ;;  %v1517_v10 = vadd.f32 1e-05, %v1501_v4  ;;  %v1486_v12 = vpop.xlane.xlu1 %1485 }
 0x536   : > { %v1598_v21 = vmax.f32 %v1582_v5, 0.0  ;;  %v1562_v51 = vmul.f32 %v7862_v20, %v1540_v14  ;;  %5888 = vrsqrt.f32 %v1516_v13  ;;  %v1502_v41 = vmul.f32 0.0625, %v1486_v12  ;;  %5188 = vmatprep.mubr.bf16.mxu1 %v1699_v56  ;;  %v5778_v12 = vld [vmem:[%s7433_s26 + $0x98] sm:$0xff]  }
 0x537   : > { %v5877_v22 = vpop.eup %5876  ;;  %v1599_v23 = vmax.f32 %v1583_v6, 0.0  ;;  %v1563_v52 = vmul.f32 %v7862_v20, %v1541_v9  ;;  %5890 = vrsqrt.f32 %v1517_v10  ;;  %v1627_v40 = vld [vmem:[#allocation2 + $0x1] sm:$0xff] }
 0x538   : > { %v5879_v28 = vpop.eup %5878  ;;  %1614 = vst [vmem:[#allocation2 + $0x22] sm:$0xff] %v1598_v21  ;;  %v1584_v45 = vadd.f32 %v7866_v44, %v1562_v51  ;;  %v1542_v35 = vmul.f32 %v5877_v22, %v7783_v46  ;;  %v1518_v8 = vadd.f32 1e-05, %v1502_v41  ;;  %v1700_v27 = vpack.c.bf16 %v1598_v21, %v1597_v1 }
 0x539   : > { %1615 = vst [vmem:[#allocation2 + $0x32] sm:$0xff] %v1599_v23  ;;  %v1585_v33 = vadd.f32 %v7866_v44, %v1563_v52  ;;  %v1543_v16 = vmul.f32 %v5879_v28, %v7786_v47 }
 0x53a   : > { %v1600_v34 = vmax.f32 %v1584_v45, 0.0  ;;  %v1564_v3 = vmul.f32 %v7862_v20, %v1542_v35  ;;  %5892 = vrsqrt.f32 %v1518_v8  ;;  %5189 = vmatmul.mubr.bf16.vlgmr.msra.gmra.mxu1 %v1700_v27 }
 0x53b   : > { %v5881_v36 = vpop.eup %5880  ;;  %v1601_v38 = vmax.f32 %v1585_v33, 0.0  ;;  %v1565_v39 = vmul.f32 %v7862_v20, %v1543_v16  ;;  %v1628_v46 = vld [vmem:[#allocation2 + $0x9] sm:$0xff]  ;;  %5237 = vmatpush3.bf16.msra.mxu1 %v7850_v61 }
 0x53c   : > { %v5883_v43 = vpop.eup %5882  ;;  %1616 = vst [vmem:[#allocation2 + $0x3a] sm:$0xff] %v1600_v34  ;;  %v1586_v18 = vadd.f32 %v7866_v44, %v1564_v3  ;;  %v1544_v47 = vmul.f32 %v5881_v36, %v7796_v26  ;;  %v1659_v19 = vpack.c.bf16 %v1628_v46, %v1627_v40  ;;  %5238 = vmatprep.subr.bf16.mxu1 %v5775_v30  ;;  %v1629_v26 = vld [vmem:[#allocation2 + $0x19] sm:$0xff]  ;;  %v5780_v46 = vld [vmem:[%s7433_s26 + $0x88] sm:$0xff]  }
 0x53d   : > { %v1701_v31 = vpack.c.bf16 %v1600_v34, %v1599_v23  ;;  %1617 = vst [vmem:[#allocation2 + $0x4a] sm:$0xff] %v1601_v38  ;;  %v1587_v62 = vadd.f32 %v7866_v44, %v1565_v39  ;;  %v1545_v11 = vmul.f32 %v5883_v43, %v7799_v50 }
 0x53e   : > { %v1602_v49 = vmax.f32 %v1586_v18, 0.0  ;;  %v1566_v53 = vmul.f32 %v7862_v20, %v1544_v47  ;;  %5220 = vmatprep.mubr.bf16.mxu0 %v1659_v19  ;;  %v1997_v18 = vld [vmem:[#allocation2 + $0x3] sm:$0xff] }
 0x53f   : > { %5192 = vmatprep.mubr.bf16.mxu1 %v1701_v31  ;;  %v5885_v61 = vpop.eup %5884  ;;  %v1603_v42 = vmax.f32 %v1587_v62, 0.0  ;;  %v1567_v54 = vmul.f32 %v7862_v20, %v1545_v11  ;;  %v1630_v57 = vld [vmem:[#allocation2 + $0x21] sm:$0xff]  ;;  %5239 = vmatpush3.bf16.msra.mxu1 %v5775_v30  ;;  %v5779_v30 = vld [vmem:[%s7433_s26 + $0x90] sm:$0xff]  }
 0x540   : > { %v5887_v58 = vpop.eup %5886  ;;  %1618 = vst [vmem:[#allocation2 + $0x52] sm:$0xff] %v1602_v49  ;;  %v1588_v60 = vadd.f32 %v7866_v44, %v1566_v53  ;;  %v1546_v7 = vmul.f32 %v5885_v61, %v7809_v37  ;;  %v1660_v50 = vpack.c.bf16 %v1630_v57, %v1629_v26  ;;  %5240 = vmatprep.subr.bf16.mxu1 %v5776_v48  ;;  %v1631_v37 = vld [vmem:[#allocation2 + $0x31] sm:$0xff]  ;;  %v5781_v62 = vld [vmem:[%s7433_s26 + $0x80] sm:$0xff]   ;;  %v1999_v61 = vld [vmem:[#allocation2 + $0x1b] sm:$0xff] }
 0x541   : > { %v1702_v63 = vpack.c.bf16 %v1602_v49, %v1601_v38  ;;  %1619 = vst [vmem:[#allocation2 + $0x62] sm:$0xff] %v1603_v42  ;;  %v1589_v32 = vadd.f32 %v7866_v44, %v1567_v54  ;;  %v1547_v1 = vmul.f32 %v5887_v58, %v7812_v55 }
 0x542   : > { %v1604_v2 = vmax.f32 %v1588_v60, 0.0  ;;  %v1568_v4 = vmul.f32 %v7862_v20, %v1546_v7  ;;  %5221 = vmatmul.mubr.bf16.vlgmr.msra.gmra.mxu0 %v1660_v50 }
 0x543   : > { %5193 = vmatmul.mubr.bf16.gmra.mxu1 %v1702_v63  ;;  %v5889_v25 = vpop.eup %5888  ;;  %v1605_v5 = vmax.f32 %v1589_v32, 0.0  ;;  %v1569_v14 = vmul.f32 %v7862_v20, %v1547_v1  ;;  %v1632_v13 = vld [vmem:[#allocation2 + $0x39] sm:$0xff] }
 0x544   : > { %5241 = vmatpush3.bf16.msra.mxu1 %v5776_v48  ;;  %v5891_v56 = vpop.eup %5890  ;;  %1620 = vst [vmem:[#allocation2 + $0x6a] sm:$0xff] %v1604_v2  ;;  %v1590_v6 = vadd.f32 %v7866_v44, %v1568_v4  ;;  %v1548_v9 = vmul.f32 %v5889_v25, %v7823_v15  ;;  %v1661_v55 = vpack.c.bf16 %v1632_v13, %v1631_v37  ;;  %v1633_v15 = vld [vmem:[#allocation2 + $0x49] sm:$0xff]  ;;  %v2001_v54 = vld [vmem:[#allocation2 + $0x33] sm:$0xff]  ;;  %v2002_v26 = vld [vmem:[#allocation2 + $0x3b] sm:$0xff] }
 0x545   : > { %5242 = vmatprep.subr.bf16.mxu1 %v5777_v0  ;;  %v1703_v10 = vpack.c.bf16 %v1604_v2, %v1603_v42  ;;  %1621 = vst [vmem:[#allocation2 + $0x7a] sm:$0xff] %v1605_v5  ;;  %v1591_v21 = vadd.f32 %v7866_v44, %v1569_v14  ;;  %v1549_v51 = vmul.f32 %v5891_v56, %v7826_v59  ;;  %v2000_v42 = vld [vmem:[#allocation2 + $0x23] sm:$0xff] }
 0x546   : > { %v1606_v41 = vmax.f32 %v1590_v6, 0.0  ;;  %v1570_v22 = vmul.f32 %v7862_v20, %v1548_v9  ;;  %5224 = vmatprep.mubr.bf16.mxu0 %v1661_v55  ;;  %v2030_v7 = vpack.c.bf16 %v2000_v42, %v1999_v61  ;;  %v2031_v50 = vpack.c.bf16 %v2002_v26, %v2001_v54 }
 0x547   : > { %5196 = vmatprep.mubr.bf16.mxu1 %v1703_v10  ;;  %v5893_v23 = vpop.eup %5892  ;;  %v1607_v52 = vmax.f32 %v1591_v21, 0.0  ;;  %v1571_v28 = vmul.f32 %v7862_v20, %v1549_v51  ;;  %v1634_v45 = vld [vmem:[#allocation2 + $0x51] sm:$0xff] }
 0x548   : > { %5243 = vmatpush3.bf16.msra.mxu1 %v5777_v0  ;;  %1622 = vst [vmem:[#allocation2 + $0x82] sm:$0xff] %v1606_v41  ;;  %v1592_v35 = vadd.f32 %v7866_v44, %v1570_v22  ;;  %v1550_v8 = vmul.f32 %v5893_v23, %v7836_v29  ;;  %v1662_v27 = vpack.c.bf16 %v1634_v45, %v1633_v15  ;;  %v1635_v36 = vld [vmem:[#allocation2 + $0x61] sm:$0xff]  ;;  %v2003_v63 = vld [vmem:[#allocation2 + $0x4b] sm:$0xff]  ;;  %v2004_v0 = vld [vmem:[#allocation2 + $0x53] sm:$0xff] }
 0x549   : > { %5244 = vmatprep.subr.bf16.mxu1 %v5778_v12  ;;  %v1704_v59 = vpack.c.bf16 %v1606_v41, %v1605_v5  ;;  %1623 = vst [vmem:[#allocation2 + $0x92] sm:$0xff] %v1607_v52  ;;  %v1593_v33 = vadd.f32 %v7866_v44, %v1571_v28  ;;  %v2032_v2 = vpack.c.bf16 %v2004_v0, %v2003_v63 }
 0x54a   : > { %v1608_v16 = vmax.f32 %v1592_v35, 0.0  ;;  %v1572_v34 = vmul.f32 %v7862_v20, %v1550_v8  ;;  %5225 = vmatmul.mubr.bf16.gmra.mxu0 %v1662_v27  ;;  %v1998_v20 = vld [vmem:[#allocation2 + $0xb] sm:$0xff] }
 0x54b   : > { %5197 = vmatmul.mubr.bf16.gmra.mxu1 %v1704_v59  ;;  %v1609_v3 = vmax.f32 %v1593_v33, 0.0  ;;  %v1636_v38 = vld [vmem:[#allocation2 + $0x69] sm:$0xff] }
 0x54c   : > { %5245 = vmatpush3.bf16.msra.mxu1 %v5778_v12  ;;  %1624 = vst [vmem:[#allocation2 + $0x9a] sm:$0xff] %v1608_v16  ;;  %v1594_v29 = vadd.f32 %v7866_v44, %v1572_v34  ;;  %v1663_v39 = vpack.c.bf16 %v1636_v38, %v1635_v36  ;;  %v1705_v40 = vpack.c.bf16 %v1608_v16, %v1607_v52  ;;  %v1637_v47 = vld [vmem:[#allocation2 + $0x79] sm:$0xff]  ;;  %v2005_v32 = vld [vmem:[#allocation2 + $0x63] sm:$0xff]  ;;  %v2006_v1 = vld [vmem:[#allocation2 + $0x6b] sm:$0xff] }
 0x54d   : > { %5246 = vmatprep.subr.bf16.mxu1 %v5779_v30  ;;  %1625 = vst [vmem:[#allocation2 + $0xaa] sm:$0xff] %v1609_v3  ;;  %v2029_v44 = vpack.c.bf16 %v1998_v20, %v1997_v18  ;;  %v2033_v4 = vpack.c.bf16 %v2006_v1, %v2005_v32 }
 0x54e   : > { %v1610_v43 = vmax.f32 %v1594_v29, 0.0  ;;  %5228 = vmatprep.mubr.bf16.mxu0 %v1663_v39  ;;  %5200 = vmatprep.mubr.bf16.mxu1 %v1705_v40 }
 0x54f   : > { %v1638_v19 = vld [vmem:[#allocation2 + $0x81] sm:$0xff] }
 0x550   : > { %5247 = vmatpush3.bf16.msra.mxu1 %v5779_v30  ;;  %1626 = vst [vmem:[#allocation2 + $0xb2] sm:$0xff] %v1610_v43  ;;  %v1664_v31 = vpack.c.bf16 %v1638_v19, %v1637_v47  ;;  %v1706_v48 = vpack.c.bf16 %v1610_v43, %v1609_v3  ;;  %v1639_v11 = vld [vmem:[#allocation2 + $0x91] sm:$0xff]  ;;  %v2007_v25 = vld [vmem:[#allocation2 + $0x7b] sm:$0xff]  ;;  %v2008_v5 = vld [vmem:[#allocation2 + $0x83] sm:$0xff] }
 0x551   : > { %5248 = vmatprep.subr.bf16.mxu1 %v5780_v46  ;;  %v2034_v13 = vpack.c.bf16 %v2008_v5, %v2007_v25 }
 0x552   : > { %5229 = vmatmul.mubr.bf16.gmra.mxu0 %v1664_v31 }
 0x553   : > { %5201 = vmatmul.mubr.bf16.gmra.mxu1 %v1706_v48  ;;  %v1640_v49 = vld [vmem:[#allocation2 + $0x99] sm:$0xff] }
 0x554   : > { %5249 = vmatpush3.bf16.msra.mxu1 %v5780_v46  ;;  %5252 = vmatprep.mubr.bf16.mxu1 %v2029_v44  ;;  %v1665_v53 = vpack.c.bf16 %v1640_v49, %v1639_v11  ;;  %v1641_v57 = vld [vmem:[#allocation2 + $0xa9] sm:$0xff]  ;;  %v2009_v14 = vld [vmem:[#allocation2 + $0x93] sm:$0xff]  ;;  %v2010_v37 = vld [vmem:[#allocation2 + $0x9b] sm:$0xff] }
 0x555   : > { %5250 = vmatprep.subr.bf16.mxu1 %v5781_v62  ;;  %v2035_v56 = vpack.c.bf16 %v2010_v37, %v2009_v14  ;;  %v7940_v48 = vld [vmem:[%s7937_s11] ss:$0 sm:$0xff] }
 0x556   : > { %5232 = vmatprep.mubr.bf16.mxu0 %v1665_v53 }
 0x557   : > { %v1642_v58 = vld [vmem:[#allocation2 + $0xb1] sm:$0xff] }
 0x558   : > { %5251 = vmatpush3.bf16.msra.mxu1 %v5781_v62  ;;  %v1666_v60 = vpack.c.bf16 %v1642_v58, %v1641_v57  ;;  %v2011_v6 = vld [vmem:[#allocation2 + $0xab] sm:$0xff]  ;;  %v2012_v9 = vld [vmem:[#allocation2 + $0xb3] sm:$0xff] }
 0x559   : > { %v2036_v55 = vpack.c.bf16 %v2012_v9, %v2011_v6 }
 0x55a   : > { %5233 = vmatmul.mubr.bf16.gmra.mxu0 %v1666_v60 }
 0x55b   : > { %5253 = vmatmul.mubr.bf16.vlgmr.msra.gmra.mxu1 %v2030_v7 }
 0x55c   : > { %5256 = vmatprep.mubr.bf16.mxu1 %v2031_v50 }
 0x563   : > { %5257 = vmatmul.mubr.bf16.gmra.mxu1 %v2032_v2 }
 0x564   : > { %5260 = vmatprep.mubr.bf16.mxu1 %v2033_v4 }
 0x56b   : > { %5261 = vmatmul.mubr.bf16.gmra.mxu1 %v2034_v13 }
 0x56c   : > { %5264 = vmatprep.mubr.bf16.mxu1 %v2035_v56 }
 0x573   : > { %5265 = vmatmul.mubr.bf16.gmra.mxu1 %v2036_v55 }
 0x5fa   : > { %v5190_v10 = vpop.f32.mrf.mxu1 }
 0x5fc   : > { %v1789_v12 = vpop.f32.mrf.mxu1 }
 0x5fe   : > { %v5191_v21 = vpop.f32.mrf.mxu1 }
 0x600   : > { %v1792_v51 = vpop.f32.mrf.mxu1 }
 0x602   : > { %v5222_v41 = vpop.f32.mrf.mxu0 }
 0x603   : > { %v5194_v22 = vpop.f32.mrf.mxu1  ;;  %v1943_v47 = vadd.f32 %v5222_v41, %v5190_v10 }
 0x604   : > { %v1934_v23 = vpop.f32.mrf.mxu0 }
 0x605   : > { %v1805_v52 = vpop.f32.mrf.mxu1  ;;  %v1935_v43 = vadd.f32 %v1934_v23, %v1789_v12 }
 0x606   : > { %v5223_v28 = vpop.f32.mrf.mxu0 }
 0x607   : > { %v5195_v15 = vpop.f32.mrf.mxu1  ;;  %v1946_v61 = vadd.f32 %v5223_v28, %v5191_v21 }
 0x608   : > { %v1937_v45 = vpop.f32.mrf.mxu0 }
 0x609   : > { %v1808_v35 = vpop.f32.mrf.mxu1  ;;  %v1938_v62 = vadd.f32 %v1937_v45, %v1792_v51 }
 0x60a   : > { %v5226_v8 = vpop.f32.mrf.mxu0 }
 0x60b   : > { %v5198_v27 = vpop.f32.mrf.mxu1  ;;  %v1959_v63 = vadd.f32 %v5226_v8, %v5194_v22 }
 0x60c   : > { %v1950_v59 = vpop.f32.mrf.mxu0 }
 0x60d   : > { %v1821_v30 = vpop.f32.mrf.mxu1  ;;  %v1951_v26 = vadd.f32 %v1950_v59, %v1805_v52 }
 0x60e   : > { %v5227_v16 = vpop.f32.mrf.mxu0 }
 0x60f   : > { %v7924_v33 = vpop.f32.mrf.mxu1  ;;  %v1962_v37 = vadd.f32 %v5227_v16, %v5195_v15 }
 0x610   : > { %v1953_v36 = vpop.f32.mrf.mxu0 }
 0x611   : > { %v1824_v34 = vpop.f32.mrf.mxu1  ;;  %v1954_v1 = vadd.f32 %v1953_v36, %v1808_v35 }
 0x612   : > { %v5230_v39 = vpop.f32.mrf.mxu0 }
 0x613   : > { %v7926_v3 = vpop.f32.mrf.mxu1  ;;  %v1975_v51 = vadd.f32 %v5230_v39, %v5198_v27 }
 0x614   : > { %v1966_v18 = vpop.f32.mrf.mxu0 }
 0x615   : > { %v7928_v38 = vpop.f32.mrf.mxu1  ;;  %v1967_v6 = vadd.f32 %v1966_v18, %v1821_v30 }
 0x616   : > { %v5231_v49 = vpop.f32.mrf.mxu0 }
 0x617   : > { %v7930_v29 = vpop.f32.mrf.mxu1  ;;  %v1978_v8 = vadd.f32 %v5231_v49, %v7924_v33 }
 0x618   : > { %v1969_v7 = vpop.f32.mrf.mxu0 }
 0x619   : > { %v7932_v40 = vpop.f32.mrf.mxu1  ;;  %v1970_v23 = vadd.f32 %v1969_v7, %v1824_v34 }
 0x61a   : > { %v5234_v5 = vpop.f32.mrf.mxu0 }
 0x61b   : > { %v5254_v46 = vpop.f32.mrf.mxu1 }
 0x61c   : > { %v2184_v44 = vadd.f32 %v5254_v46, %v1943_v47  ;;  %v1982_v12 = vpop.f32.mrf.mxu0 }
 0x61d   : > { %v2119_v20 = vpop.f32.mrf.mxu1  ;;  %v1983_v30 = vadd.f32 %v1982_v12, %v7928_v38 }
 0x61e   : > { %v2182_v19 = vadd.f32 %v2119_v20, %v1935_v43  ;;  %v7947_v58 = vadd.f32 %v7940_v48, %v2184_v44  ;;  %v5235_v45 = vpop.f32.mrf.mxu0  ;;  %v1991_v43 = vadd.f32 %v5234_v5, %v7926_v3 }
 0x61f   : > { %v5255_v31 = vpop.f32.mrf.mxu1 }
 0x620   : > { %v7943_v11 = vadd.f32 %v7940_v48, %v2182_v19  ;;  %v2185_v57 = vadd.f32 %v5255_v31, %v1946_v61  ;;  %v1985_v39 = vpop.f32.mrf.mxu0 }
 0x621   : > { %v2122_v53 = vpop.f32.mrf.mxu1  ;;  %v1986_v20 = vadd.f32 %v1985_v39, %v7932_v40 }
 0x622   : > { %v2183_v42 = vadd.f32 %v2122_v53, %v1938_v62  ;;  %2223 = vadd.xlane.f32.xlu0 %v7943_v11  ;;  %v7955_v4 = vadd.f32 %v7940_v48, %v2185_v57  ;;  %v1994_v62 = vadd.f32 %v5235_v45, %v7930_v29 }
 0x623   : > { %v5258_v54 = vpop.f32.mrf.mxu1 }
 0x624   : > { %v7950_v60 = vadd.f32 %v7940_v48, %v2183_v42  ;;  %v2188_v2 = vadd.f32 %v5258_v54, %v1959_v63 }
 0x625   : > { %v2135_v50 = vpop.f32.mrf.mxu1 }
 0x626   : > { %v2186_v0 = vadd.f32 %v2135_v50, %v1951_v26  ;;  %2227 = vadd.xlane.f32.xlu0 %v7947_v58  ;;  %2225 = vadd.xlane.f32.xlu1 %v7950_v60  ;;  %v7963_v55 = vadd.f32 %v7940_v48, %v2188_v2 }
 0x627   : > { %v5259_v32 = vpop.f32.mrf.mxu1 }
 0x628   : > { %v7958_v25 = vadd.f32 %v7940_v48, %v2186_v0  ;;  %v2189_v9 = vadd.f32 %v5259_v32, %v1962_v37 }
 0x629   : > { %v2138_v14 = vpop.f32.mrf.mxu1 }
 0x62a   : > { %v2187_v13 = vadd.f32 %v2138_v14, %v1954_v1  ;;  %2229 = vadd.xlane.f32.xlu1 %v7955_v4  ;;  %2231 = vadd.xlane.f32.xlu0 %v7958_v25  ;;  %v7971_v28 = vadd.f32 %v7940_v48, %v2189_v9 }
 0x62b   : > { %v5262_v56 = vpop.f32.mrf.mxu1 }
 0x62c   : > { %v7966_v10 = vadd.f32 %v7940_v48, %v2187_v13  ;;  %v2192_v52 = vadd.f32 %v5262_v56, %v1975_v51 }
 0x62d   : > { %v2151_v21 = vpop.f32.mrf.mxu1 }
 0x62e   : > { %v2190_v41 = vadd.f32 %v2151_v21, %v1967_v6  ;;  %2235 = vadd.xlane.f32.xlu0 %v7963_v55  ;;  %2233 = vadd.xlane.f32.xlu1 %v7966_v10  ;;  %v7981_v34 = vadd.f32 %v7940_v48, %v2192_v52 }
 0x62f   : > { %v5263_v22 = vpop.f32.mrf.mxu1 }
 0x630   : > { %v7974_v15 = vadd.f32 %v7940_v48, %v2190_v41  ;;  %v2193_v16 = vadd.f32 %v5263_v22, %v1978_v8 }
 0x631   : > { %v2154_v35 = vpop.f32.mrf.mxu1 }
 0x632   : > { %v2191_v59 = vadd.f32 %v2154_v35, %v1970_v23  ;;  %2237 = vadd.xlane.f32.xlu1 %v7971_v28  ;;  %2239 = vadd.xlane.f32.xlu0 %v7974_v15  ;;  %v7991_v47 = vadd.f32 %v7940_v48, %v2193_v16 }
 0x633   : > { %v5266_v27 = vpop.f32.mrf.mxu1 }
 0x634   : > { %v7984_v36 = vadd.f32 %v7940_v48, %v2191_v59  ;;  %v2196_v38 = vadd.f32 %v5266_v27, %v1991_v43 }
 0x635   : > { %v2167_v46 = vpop.f32.mrf.mxu1 }
 0x636   : > { %v2194_v33 = vadd.f32 %v2167_v46, %v1983_v30  ;;  %2243 = vadd.xlane.f32.xlu0 %v7981_v34  ;;  %2241 = vadd.xlane.f32.xlu1 %v7984_v36  ;;  %v8003_v40 = vadd.f32 %v7940_v48, %v2196_v38 }
 0x637   : > { %v5267_v18 = vpop.f32.mrf.mxu1 }
 0x638   : > { %v7994_v19 = vadd.f32 %v7940_v48, %v2194_v33  ;;  %v2197_v3 = vadd.f32 %v5267_v18, %v1994_v62 }
 0x639   : > { %v2170_v31 = vpop.f32.mrf.mxu1 }
 0x63a   : > { %v2195_v44 = vadd.f32 %v2170_v31, %v1986_v20  ;;  %2245 = vadd.xlane.f32.xlu1 %v7991_v47  ;;  %2247 = vadd.xlane.f32.xlu0 %v7994_v19  ;;  %v8008_v53 = vadd.f32 %v7940_v48, %v2197_v3 }
 0x63c   : > { %v8000_v49 = vadd.f32 %v7940_v48, %v2195_v44 }
 0x63e   : > { %2249 = vadd.xlane.f32.xlu1 %v8000_v49  ;;  %2251 = vadd.xlane.f32.xlu0 %v8003_v40 }
 0x642   : > { %2253 = vadd.xlane.f32.xlu1 %v8008_v53 }
 0x6ab   : > { %v2224_v29 = vpop.xlane.xlu0 %2223 }
 0x6ac   : > { %v2255_v61 = vmul.f32 0.0625, %v2224_v29 }
 0x6ae   : > { %v2271_v42 = vsub.f32 %v7943_v11, %v2255_v61 }
 0x6af   : > { %v2228_v54 = vpop.xlane.xlu0 %2227  ;;  %v2226_v26 = vpop.xlane.xlu1 %2225 }
 0x6b0   : > { %v2257_v57 = vmul.f32 0.0625, %v2228_v54  ;;  %v2256_v7 = vmul.f32 0.0625, %v2226_v26  ;;  %v8013_v50 = vmul.f32 %v7516_v17, %v2271_v42 }
 0x6b2   : > { %v2273_v63 = vsub.f32 %v7947_v58, %v2257_v57  ;;  %v2272_v0 = vsub.f32 %v7950_v60, %v2256_v7  ;;  %v2303_v48 = vmul.f32 %v8013_v50, %v8013_v50 }
 0x6b3   : > { %v2230_v32 = vpop.xlane.xlu1 %2229  ;;  %v2232_v1 = vpop.xlane.xlu0 %2231 }
 0x6b4   : > { %v2258_v2 = vmul.f32 0.0625, %v2230_v32  ;;  %v2259_v5 = vmul.f32 0.0625, %v2232_v1  ;;  %2319 = vadd.xlane.f32.xlu0 %v2303_v48  ;;  %v8020_v11 = vmul.f32 %v7516_v17, %v2272_v0  ;;  %v8023_v14 = vmul.f32 %v7516_v17, %v2273_v63 }
 0x6b6   : > { %v2274_v37 = vsub.f32 %v7955_v4, %v2258_v2  ;;  %v2275_v58 = vsub.f32 %v7958_v25, %v2259_v5  ;;  %v2304_v60 = vmul.f32 %v8020_v11, %v8020_v11  ;;  %v2305_v13 = vmul.f32 %v8023_v14, %v8023_v14 }
 0x6b7   : > { %v2236_v56 = vpop.xlane.xlu0 %2235  ;;  %v2234_v6 = vpop.xlane.xlu1 %2233 }
 0x6b8   : > { %v2261_v9 = vmul.f32 0.0625, %v2236_v56  ;;  %v2260_v12 = vmul.f32 0.0625, %v2234_v6  ;;  %2321 = vadd.xlane.f32.xlu1 %v2304_v60  ;;  %2323 = vadd.xlane.f32.xlu0 %v2305_v13  ;;  %v8032_v21 = vmul.f32 %v7516_v17, %v2274_v37  ;;  %v8035_v51 = vmul.f32 %v7516_v17, %v2275_v58 }
 0x6ba   : > { %v2277_v4 = vsub.f32 %v7963_v55, %v2261_v9  ;;  %v2276_v25 = vsub.f32 %v7966_v10, %v2260_v12  ;;  %v2306_v41 = vmul.f32 %v8032_v21, %v8032_v21  ;;  %v2307_v22 = vmul.f32 %v8035_v51, %v8035_v51 }
 0x6bb   : > { %v2238_v23 = vpop.xlane.xlu1 %2237  ;;  %v2240_v52 = vpop.xlane.xlu0 %2239 }
 0x6bc   : > { %v2262_v45 = vmul.f32 0.0625, %v2238_v23  ;;  %v2263_v35 = vmul.f32 0.0625, %v2240_v52  ;;  %2325 = vadd.xlane.f32.xlu1 %v2306_v41  ;;  %2327 = vadd.xlane.f32.xlu0 %v2307_v22  ;;  %v8044_v8 = vmul.f32 %v7516_v17, %v2276_v25  ;;  %v8047_v55 = vmul.f32 %v7516_v17, %v2277_v4  ;;  %v5786_v4 = vld [vmem:[%s7448_s0 + $0x18] sm:$0xff]   ;;  %v5787_v25 = vld [vmem:[%s7448_s0 + $0x10] sm:$0xff]   ;;  %v5788_v41 = vld [vmem:[%s7448_s0 + $0x8] sm:$0xff]  }
 0x6bd   : > { %v5789_v22 = vld [vmem:[%s7448_s0] sm:$0xff]  }
 0x6be   : > { %v2278_v10 = vsub.f32 %v7971_v28, %v2262_v45  ;;  %v2279_v59 = vsub.f32 %v7974_v15, %v2263_v35  ;;  %v2308_v27 = vmul.f32 %v8044_v8, %v8044_v8  ;;  %v2309_v30 = vmul.f32 %v8047_v55, %v8047_v55  ;;  %v5782_v28 = vld [vmem:[%s7448_s0 + $0x38] sm:$0xff]  }
 0x6bf   : > { %v2244_v16 = vpop.xlane.xlu0 %2243  ;;  %v2242_v39 = vpop.xlane.xlu1 %2241  ;;  %5268 = vmatprep.subr.bf16.mxu0 %v5782_v28 }
 0x6c0   : > { %v2265_v46 = vmul.f32 0.0625, %v2244_v16  ;;  %v2264_v43 = vmul.f32 0.0625, %v2242_v39  ;;  %2329 = vadd.xlane.f32.xlu1 %v2308_v27  ;;  %2331 = vadd.xlane.f32.xlu0 %v2309_v30  ;;  %v8056_v33 = vmul.f32 %v7516_v17, %v2278_v10  ;;  %v8059_v18 = vmul.f32 %v7516_v17, %v2279_v59 }
 0x6c1   : > { %5269 = vmatpush3.bf16.msra.mxu0 %v5782_v28 }
 0x6c2   : > { %v2281_v15 = vsub.f32 %v7981_v34, %v2265_v46  ;;  %v2280_v20 = vsub.f32 %v7984_v36, %v2264_v43  ;;  %v2310_v38 = vmul.f32 %v8056_v33, %v8056_v33  ;;  %v2311_v31 = vmul.f32 %v8059_v18, %v8059_v18  ;;  %v5783_v36 = vld [vmem:[%s7448_s0 + $0x30] sm:$0xff]  }
 0x6c3   : > { %v2246_v62 = vpop.xlane.xlu1 %2245  ;;  %v2248_v44 = vpop.xlane.xlu0 %2247  ;;  %5270 = vmatprep.subr.bf16.mxu0 %v5783_v36 }
 0x6c4   : > { %v2266_v3 = vmul.f32 0.0625, %v2246_v62  ;;  %v2267_v29 = vmul.f32 0.0625, %v2248_v44  ;;  %2333 = vadd.xlane.f32.xlu1 %v2310_v38  ;;  %2335 = vadd.xlane.f32.xlu0 %v2311_v31  ;;  %v8069_v61 = vmul.f32 %v7516_v17, %v2280_v20  ;;  %v8072_v34 = vmul.f32 %v7516_v17, %v2281_v15 }
 0x6c5   : > { %5271 = vmatpush3.bf16.msra.mxu0 %v5783_v36 }
 0x6c6   : > { %v2282_v42 = vsub.f32 %v7991_v47, %v2266_v3  ;;  %v2283_v54 = vsub.f32 %v7994_v19, %v2267_v29  ;;  %v2312_v26 = vmul.f32 %v8069_v61, %v8069_v61  ;;  %v2313_v57 = vmul.f32 %v8072_v34, %v8072_v34  ;;  %v5784_v19 = vld [vmem:[%s7448_s0 + $0x28] sm:$0xff]  }
 0x6c7   : > { %v2250_v7 = vpop.xlane.xlu1 %2249  ;;  %v2252_v63 = vpop.xlane.xlu0 %2251  ;;  %5272 = vmatprep.subr.bf16.mxu0 %v5784_v19 }
 0x6c8   : > { %v2268_v0 = vmul.f32 0.0625, %v2250_v7  ;;  %v2269_v48 = vmul.f32 0.0625, %v2252_v63  ;;  %2337 = vadd.xlane.f32.xlu1 %v2312_v26  ;;  %2339 = vadd.xlane.f32.xlu0 %v2313_v57  ;;  %v8082_v32 = vmul.f32 %v7516_v17, %v2282_v42  ;;  %v8085_v47 = vmul.f32 %v7516_v17, %v2283_v54  ;;  %v8123_v7 = vld [vmem:[%s726_s18] ss:$0 sm:$0xff] }
 0x6c9   : > { %5273 = vmatpush3.bf16.msra.mxu0 %v5784_v19 }
 0x6ca   : > { %v2284_v1 = vsub.f32 %v8000_v49, %v2268_v0  ;;  %v2285_v2 = vsub.f32 %v8003_v40, %v2269_v48  ;;  %v2314_v5 = vmul.f32 %v8082_v32, %v8082_v32  ;;  %v2315_v37 = vmul.f32 %v8085_v47, %v8085_v47  ;;  %v5785_v49 = vld [vmem:[%s7448_s0 + $0x20] sm:$0xff]  }
 0x6cb   : > { %v2254_v58 = vpop.xlane.xlu1 %2253  ;;  %5274 = vmatprep.subr.bf16.mxu0 %v5785_v49 }
 0x6cc   : > { %v2270_v60 = vmul.f32 0.0625, %v2254_v58  ;;  %2341 = vadd.xlane.f32.xlu1 %v2314_v5  ;;  %2343 = vadd.xlane.f32.xlu0 %v2315_v37  ;;  %v8095_v13 = vmul.f32 %v7516_v17, %v2284_v1  ;;  %v8098_v56 = vmul.f32 %v7516_v17, %v2285_v2  ;;  %v8127_v37 = vld [vmem:[%s8119_s1] ss:$0 sm:$0xff] }
 0x6cd   : > { %5275 = vmatpush3.bf16.msra.mxu0 %v5785_v49 }
 0x6ce   : > { %v2286_v40 = vsub.f32 %v8008_v53, %v2270_v60  ;;  %v2316_v6 = vmul.f32 %v8095_v13, %v8095_v13  ;;  %v2317_v9 = vmul.f32 %v8098_v56, %v8098_v56  ;;  %5276 = vmatprep.subr.bf16.mxu0 %v5786_v4 }
 0x6d0   : > { %2345 = vadd.xlane.f32.xlu1 %v2316_v6  ;;  %2347 = vadd.xlane.f32.xlu0 %v2317_v9  ;;  %v8107_v12 = vmul.f32 %v7516_v17, %v2286_v40 }
 0x6d1   : > { %5277 = vmatpush3.bf16.msra.mxu0 %v5786_v4 }
 0x6d2   : > { %v2318_v53 = vmul.f32 %v8107_v12, %v8107_v12  ;;  %5278 = vmatprep.subr.bf16.mxu0 %v5787_v25 }
 0x6d4   : > { %2349 = vadd.xlane.f32.xlu1 %v2318_v53 }
 0x6d5   : > { %5279 = vmatpush3.bf16.msra.mxu0 %v5787_v25 }
 0x6d6   : > { %5280 = vmatprep.subr.bf16.mxu0 %v5788_v41 }
 0x6d9   : > { %5281 = vmatpush3.bf16.msra.mxu0 %v5788_v41 }
 0x6da   : > { %5282 = vmatprep.subr.bf16.mxu0 %v5789_v22 }
 0x6dd   : > { %5283 = vmatpush3.bf16.msra.mxu0 %v5789_v22 }
 0x73d   : > { %v2320_v23 = vpop.xlane.xlu0 %2319 }
 0x73e   : > { %v2351_v52 = vmul.f32 0.0625, %v2320_v23 }
 0x740   : > { %v2367_v45 = vadd.f32 1e-05, %v2351_v52 }
 0x741   : > { %v2322_v35 = vpop.xlane.xlu1 %2321  ;;  %v2324_v10 = vpop.xlane.xlu0 %2323 }
 0x742   : > { %5894 = vrsqrt.f32 %v2367_v45  ;;  %v2352_v59 = vmul.f32 0.0625, %v2322_v35  ;;  %v2353_v27 = vmul.f32 0.0625, %v2324_v10 }
 0x744   : > { %v2368_v30 = vadd.f32 1e-05, %v2352_v59  ;;  %v2369_v16 = vadd.f32 1e-05, %v2353_v27 }
 0x745   : > { %v2326_v39 = vpop.xlane.xlu1 %2325  ;;  %v2328_v46 = vpop.xlane.xlu0 %2327 }
 0x746   : > { %5896 = vrsqrt.f32 %v2368_v30  ;;  %v2354_v43 = vmul.f32 0.0625, %v2326_v39  ;;  %v2355_v28 = vmul.f32 0.0625, %v2328_v46 }
 0x747   : > { %5898 = vrsqrt.f32 %v2369_v16 }
 0x748   : > { %v2370_v15 = vadd.f32 1e-05, %v2354_v43  ;;  %v2371_v20 = vadd.f32 1e-05, %v2355_v28 }
 0x749   : > { %v2330_v38 = vpop.xlane.xlu1 %2329  ;;  %v2332_v31 = vpop.xlane.xlu0 %2331 }
 0x74a   : > { %5900 = vrsqrt.f32 %v2370_v15  ;;  %v2356_v62 = vmul.f32 0.0625, %v2330_v38  ;;  %v2357_v44 = vmul.f32 0.0625, %v2332_v31 }
 0x74b   : > { %5902 = vrsqrt.f32 %v2371_v20 }
 0x74c   : > { %v2372_v3 = vadd.f32 1e-05, %v2356_v62  ;;  %v2373_v29 = vadd.f32 1e-05, %v2357_v44 }
 0x74d   : > { %v2334_v36 = vpop.xlane.xlu1 %2333  ;;  %v2336_v42 = vpop.xlane.xlu0 %2335 }
 0x74e   : > { %5904 = vrsqrt.f32 %v2372_v3  ;;  %v2358_v54 = vmul.f32 0.0625, %v2334_v36  ;;  %v2359_v26 = vmul.f32 0.0625, %v2336_v42 }
 0x74f   : > { %v5895_v57 = vpop.eup %5894  ;;  %5906 = vrsqrt.f32 %v2373_v29 }
 0x750   : > { %v2374_v63 = vadd.f32 1e-05, %v2358_v54  ;;  %v2375_v0 = vadd.f32 1e-05, %v2359_v26  ;;  %v2399_v48 = vmul.f32 %v5895_v57, %v8013_v50 }
 0x751   : > { %v2338_v19 = vpop.xlane.xlu1 %2337  ;;  %v2340_v1 = vpop.xlane.xlu0 %2339 }
 0x752   : > { %5908 = vrsqrt.f32 %v2374_v63  ;;  %v2360_v2 = vmul.f32 0.0625, %v2338_v19  ;;  %v2361_v5 = vmul.f32 0.0625, %v2340_v1  ;;  %v2421_v58 = vmul.f32 %v8123_v7, %v2399_v48 }
 0x753   : > { %v5897_v60 = vpop.eup %5896  ;;  %5910 = vrsqrt.f32 %v2375_v0 }
 0x754   : > { %v5899_v49 = vpop.eup %5898  ;;  %v2376_v40 = vadd.f32 1e-05, %v2360_v2  ;;  %v2377_v6 = vadd.f32 1e-05, %v2361_v5  ;;  %v2400_v9 = vmul.f32 %v5897_v60, %v8020_v11  ;;  %v2443_v25 = vadd.f32 %v8127_v37, %v2421_v58 }
 0x755   : > { %v2401_v4 = vmul.f32 %v5899_v49, %v8023_v14  ;;  %v2342_v53 = vpop.xlane.xlu1 %2341  ;;  %v2344_v50 = vpop.xlane.xlu0 %2343 }
 0x756   : > { %5912 = vrsqrt.f32 %v2376_v40  ;;  %v2362_v41 = vmul.f32 0.0625, %v2342_v53  ;;  %v2363_v22 = vmul.f32 0.0625, %v2344_v50  ;;  %v2422_v23 = vmul.f32 %v8123_v7, %v2400_v9 }
 0x757   : > { %v5901_v52 = vpop.eup %5900  ;;  %5914 = vrsqrt.f32 %v2377_v6  ;;  %v2423_v45 = vmul.f32 %v8123_v7, %v2401_v4  ;;  %v2459_v16 = vmax.f32 %v2443_v25, 0.0 }
 0x758   : > { %v5903_v35 = vpop.eup %5902  ;;  %v2402_v10 = vmul.f32 %v5901_v52, %v8032_v21  ;;  %v2378_v59 = vadd.f32 1e-05, %v2362_v41  ;;  %v2379_v11 = vadd.f32 1e-05, %v2363_v22  ;;  %v2444_v14 = vadd.f32 %v8127_v37, %v2422_v23 }
 0x759   : > { %v2346_v27 = vpop.xlane.xlu1 %2345  ;;  %v2348_v30 = vpop.xlane.xlu0 %2347  ;;  %v2403_v39 = vmul.f32 %v5903_v35, %v8035_v51  ;;  %v2445_v38 = vadd.f32 %v8127_v37, %v2423_v45 }
 0x75a   : > { %5916 = vrsqrt.f32 %v2378_v59  ;;  %v2364_v46 = vmul.f32 0.0625, %v2346_v27  ;;  %v2365_v43 = vmul.f32 0.0625, %v2348_v30  ;;  %v2460_v28 = vmax.f32 %v2444_v14, 0.0 }
 0x75b   : > { %v5905_v15 = vpop.eup %5904  ;;  %5918 = vrsqrt.f32 %v2379_v11  ;;  %v2424_v20 = vmul.f32 %v8123_v7, %v2402_v10  ;;  %v2425_v21 = vmul.f32 %v8123_v7, %v2403_v39  ;;  %v2461_v0 = vmax.f32 %v2445_v38, 0.0 }
 0x75c   : > { %v5907_v31 = vpop.eup %5906  ;;  %v2380_v62 = vadd.f32 1e-05, %v2364_v46  ;;  %v2381_v44 = vadd.f32 1e-05, %v2365_v43  ;;  %v2491_v3 = vpack.c.bf16 %v2460_v28, %v2459_v16  ;;  %v2404_v29 = vmul.f32 %v5905_v15, %v8044_v8 }
 0x75d   : > { %v2350_v36 = vpop.xlane.xlu1 %2349  ;;  %v2446_v51 = vadd.f32 %v8127_v37, %v2424_v20  ;;  %v2447_v42 = vadd.f32 %v8127_v37, %v2425_v21  ;;  %v2405_v54 = vmul.f32 %v5907_v31, %v8047_v55 }
 0x75e   : > { %5920 = vrsqrt.f32 %v2380_v62  ;;  %v2366_v26 = vmul.f32 0.0625, %v2350_v36  ;;  %5284 = vmatprep.mubr.bf16.mxu0 %v2491_v3  ;;  %v2426_v57 = vmul.f32 %v8123_v7, %v2404_v29 }
 0x75f   : > { %v5909_v63 = vpop.eup %5908  ;;  %5922 = vrsqrt.f32 %v2381_v44  ;;  %v2462_v48 = vmax.f32 %v2446_v51, 0.0  ;;  %v2427_v19 = vmul.f32 %v8123_v7, %v2405_v54  ;;  %v2463_v60 = vmax.f32 %v2447_v42, 0.0 }
 0x760   : > { %v5911_v1 = vpop.eup %5910  ;;  %v2382_v8 = vadd.f32 1e-05, %v2366_v26  ;;  %v2448_v2 = vadd.f32 %v8127_v37, %v2426_v57  ;;  %v2406_v5 = vmul.f32 %v5909_v63, %v8056_v33 }
 0x761   : > { %v2492_v58 = vpack.c.bf16 %v2462_v48, %v2461_v0  ;;  %v2407_v55 = vmul.f32 %v5911_v1, %v8059_v18  ;;  %v2449_v6 = vadd.f32 %v8127_v37, %v2427_v19 }
 0x762   : > { %5924 = vrsqrt.f32 %v2382_v8  ;;  %v2464_v49 = vmax.f32 %v2448_v2, 0.0  ;;  %v2428_v40 = vmul.f32 %v8123_v7, %v2406_v5  ;;  %v6022_v2 = vld [vmem:[%s7402_s22] sm:$0xff] }
 0x763   : > { %v5913_v9 = vpop.eup %5912  ;;  %5285 = vmatmul.mubr.bf16.vlgmr.msra.gmra.mxu0 %v2492_v58  ;;  %v2429_v4 = vmul.f32 %v8123_v7, %v2407_v55  ;;  %v2465_v18 = vmax.f32 %v2449_v6, 0.0  ;;  %v6023_v55 = vld [vmem:[%s7402_s22 + $0x10] sm:$0xff]  ;;  %v6024_v6 = vld [vmem:[%s7402_s22 + $0x8] sm:$0xff] }
 0x764   : > { %v5915_v53 = vpop.eup %5914  ;;  %v2493_v50 = vpack.c.bf16 %v2464_v49, %v2463_v60  ;;  %v2450_v25 = vadd.f32 %v8127_v37, %v2428_v40  ;;  %v2408_v33 = vmul.f32 %v5913_v9, %v8069_v61 }
 0x765   : > { %v2409_v41 = vmul.f32 %v5915_v53, %v8072_v34  ;;  %v2451_v52 = vadd.f32 %v8127_v37, %v2429_v4 }
 0x766   : > { %5288 = vmatprep.mubr.bf16.mxu0 %v2493_v50  ;;  %v2466_v22 = vmax.f32 %v2450_v25, 0.0  ;;  %v2430_v23 = vmul.f32 %v8123_v7, %v2408_v33  ;;  %v6025_v25 = vld [vmem:[%s7402_s22 + $0x18] sm:$0xff] }
 0x767   : > { %v5917_v45 = vpop.eup %5916  ;;  %v2431_v35 = vmul.f32 %v8123_v7, %v2409_v41  ;;  %v2467_v27 = vmax.f32 %v2451_v52, 0.0 }
 0x768   : > { %v5919_v10 = vpop.eup %5918  ;;  %v2494_v59 = vpack.c.bf16 %v2466_v22, %v2465_v18  ;;  %v2452_v11 = vadd.f32 %v8127_v37, %v2430_v23  ;;  %v2410_v14 = vmul.f32 %v5917_v45, %v8082_v32  ;;  %v6026_v18 = vld [vmem:[%s7402_s22 + $0x20] sm:$0xff] }
 0x769   : > { %v2411_v61 = vmul.f32 %v5919_v10, %v8085_v47  ;;  %v2453_v16 = vadd.f32 %v8127_v37, %v2431_v35  ;;  %v6027_v35 = vld [vmem:[%s7402_s22 + $0x30] sm:$0xff] }
 0x76a   : > { %v2468_v34 = vmax.f32 %v2452_v11, 0.0  ;;  %v2432_v30 = vmul.f32 %v8123_v7, %v2410_v14  ;;  %v6028_v11 = vld [vmem:[%s7402_s22 + $0x28] sm:$0xff] }
 0x76b   : > { %v5921_v39 = vpop.eup %5920  ;;  %5289 = vmatmul.mubr.bf16.gmra.mxu0 %v2494_v59  ;;  %v2433_v46 = vmul.f32 %v8123_v7, %v2411_v61  ;;  %v2469_v47 = vmax.f32 %v2453_v16, 0.0 }
 0x76c   : > { %v5923_v43 = vpop.eup %5922  ;;  %v2495_v28 = vpack.c.bf16 %v2468_v34, %v2467_v27  ;;  %v2454_v15 = vadd.f32 %v8127_v37, %v2432_v30  ;;  %v2412_v20 = vmul.f32 %v5921_v39, %v8095_v13  ;;  %v6029_v30 = vld [vmem:[%s7402_s22 + $0x38] sm:$0xff] }
 0x76d   : > { %v2413_v32 = vmul.f32 %v5923_v43, %v8098_v56  ;;  %v2455_v31 = vadd.f32 %v8127_v37, %v2433_v46  ;;  %v6030_v46 = vld [vmem:[%s7402_s22 + $0x40] sm:$0xff] }
 0x76e   : > { %5292 = vmatprep.mubr.bf16.mxu0 %v2495_v28  ;;  %v2470_v38 = vmax.f32 %v2454_v15, 0.0  ;;  %v2434_v21 = vmul.f32 %v8123_v7, %v2412_v20 }
 0x76f   : > { %v5925_v62 = vpop.eup %5924  ;;  %v2435_v44 = vmul.f32 %v8123_v7, %v2413_v32  ;;  %v2471_v51 = vmax.f32 %v2455_v31, 0.0  ;;  %v6031_v32 = vld [vmem:[%s7402_s22 + $0x50] sm:$0xff] }
 0x770   : > { %v2496_v3 = vpack.c.bf16 %v2470_v38, %v2469_v47  ;;  %v2456_v29 = vadd.f32 %v8127_v37, %v2434_v21  ;;  %v2414_v36 = vmul.f32 %v5925_v62, %v8107_v12  ;;  %v8178_v12 = vld [vmem:[%s744_s15] ss:$0 sm:$0xff] }
 0x771   : > { %v2457_v42 = vadd.f32 %v8127_v37, %v2435_v44  ;;  %v6032_v21 = vld [vmem:[%s7402_s22 + $0x48] sm:$0xff] }
 0x772   : > { %v2472_v13 = vmax.f32 %v2456_v29, 0.0  ;;  %v2436_v56 = vmul.f32 %v8123_v7, %v2414_v36  ;;  %v6033_v29 = vld [vmem:[%s7402_s22 + $0x58] sm:$0xff] }
 0x773   : > { %5293 = vmatmul.mubr.bf16.gmra.mxu0 %v2496_v3  ;;  %v2473_v57 = vmax.f32 %v2457_v42, 0.0 }
 0x774   : > { %v2497_v54 = vpack.c.bf16 %v2472_v13, %v2471_v51  ;;  %v2458_v26 = vadd.f32 %v8127_v37, %v2436_v56  ;;  %v6034_v13 = vld [vmem:[%s7402_s22 + $0x60] sm:$0xff] }
 0x776   : > { %5296 = vmatprep.mubr.bf16.mxu0 %v2497_v54  ;;  %v2474_v63 = vmax.f32 %v2458_v26, 0.0  ;;  %v6035_v26 = vld [vmem:[%s7402_s22 + $0x70] sm:$0xff] }
 0x778   : > { %v2498_v0 = vpack.c.bf16 %v2474_v63, %v2473_v57 }
 0x77b   : > { %5297 = vmatmul.mubr.bf16.gmra.mxu0 %v2498_v0  ;;  %v6036_v0 = vld [vmem:[%s7402_s22 + $0x68] sm:$0xff] }
 0x823   : > { %v5286_v48 = vpop.f32.mrf.mxu0 }
 0x824   : > { %v2597_v8 = vadd.f32 %v5286_v48, %v8178_v12 }
 0x825   : > { %v2588_v19 = vpop.f32.mrf.mxu0 }
 0x826   : > { %v2589_v7 = vadd.f32 %v8178_v12, %v2588_v19  ;;  %v8188_v49 = vadd.f32 %v6023_v55, %v2597_v8  ;;  %v6037_v19 = vld [vmem:[%s7402_s22 + $0x78] sm:$0xff]  ;;  %s8877_s22 = scalar_lea.vmem [#allocation19], %s4762_s20  ;;  %s9297_s20 = sld [smem:[#allocation72_spill]] }
 0x827   : > { %v5287_v1 = vpop.f32.mrf.mxu0 }
 0x828   : > { %v8183_v37 = vadd.f32 %v6022_v2, %v2589_v7  ;;  %v2600_v40 = vadd.f32 %v5287_v1, %v8178_v12 }
 0x829   : > { %v2591_v5 = vpop.f32.mrf.mxu0 }
 0x82a   : > { %v2592_v58 = vadd.f32 %v8178_v12, %v2591_v5  ;;  %2671 = vadd.xlane.f32.xlu0 %v8183_v37  ;;  %v8198_v33 = vadd.f32 %v6025_v25, %v2600_v40 }
 0x82b   : > { %v5290_v60 = vpop.f32.mrf.mxu0 }
 0x82c   : > { %v8192_v9 = vadd.f32 %v6024_v6, %v2592_v58  ;;  %v2613_v41 = vadd.f32 %v5290_v60, %v8178_v12  ;;  %p9300_p12 = scmp.ne.s32.totalorder %s9297_s20, 0 }
 0x82d   : > { %v2604_v4 = vpop.f32.mrf.mxu0 }
 0x82e   : > { %v2605_v53 = vadd.f32 %v8178_v12, %v2604_v4  ;;  %2673 = vadd.xlane.f32.xlu1 %v8192_v9  ;;  %2675 = vadd.xlane.f32.xlu0 %v8188_v49  ;;  %v8208_v10 = vadd.f32 %v6027_v35, %v2613_v41 }
 0x82f   : > { %v5291_v50 = vpop.f32.mrf.mxu0 }
 0x830   : > { %v8202_v22 = vadd.f32 %v6026_v18, %v2605_v53  ;;  %v2616_v59 = vadd.f32 %v5291_v50, %v8178_v12 }
 0x831   : > { %v2607_v23 = vpop.f32.mrf.mxu0 }
 0x832   : > { %v2608_v52 = vadd.f32 %v8178_v12, %v2607_v23  ;;  %2677 = vadd.xlane.f32.xlu1 %v8198_v33  ;;  %2679 = vadd.xlane.f32.xlu0 %v8202_v22  ;;  %v8218_v16 = vadd.f32 %v6029_v30, %v2616_v59 }
 0x833   : > { %v5294_v45 = vpop.f32.mrf.mxu0 }
 0x834   : > { %v8212_v14 = vadd.f32 %v6028_v11, %v2608_v52  ;;  %v2629_v39 = vadd.f32 %v5294_v45, %v8178_v12 }
 0x835   : > { %v2620_v61 = vpop.f32.mrf.mxu0 }
 0x836   : > { %v2621_v27 = vadd.f32 %v8178_v12, %v2620_v61  ;;  %2681 = vadd.xlane.f32.xlu1 %v8212_v14  ;;  %2683 = vadd.xlane.f32.xlu0 %v8208_v10  ;;  %v8228_v47 = vadd.f32 %v6031_v32, %v2629_v39 }
 0x837   : > { %v5295_v34 = vpop.f32.mrf.mxu0 }
 0x838   : > { %v8222_v43 = vadd.f32 %v6030_v46, %v2621_v27  ;;  %v2632_v38 = vadd.f32 %v5295_v34, %v8178_v12 }
 0x839   : > { %v2623_v28 = vpop.f32.mrf.mxu0 }
 0x83a   : > { %v2624_v15 = vadd.f32 %v8178_v12, %v2623_v28  ;;  %2685 = vadd.xlane.f32.xlu1 %v8218_v16  ;;  %2687 = vadd.xlane.f32.xlu0 %v8222_v43  ;;  %v8238_v36 = vadd.f32 %v6033_v29, %v2632_v38 }
 0x83b   : > { %v5298_v20 = vpop.f32.mrf.mxu0 }
 0x83c   : > { %v8232_v31 = vadd.f32 %v6032_v21, %v2624_v15  ;;  %v2645_v51 = vadd.f32 %v5298_v20, %v8178_v12 }
 0x83d   : > { %v2636_v62 = vpop.f32.mrf.mxu0 }
 0x83e   : > { %v2637_v44 = vadd.f32 %v8178_v12, %v2636_v62  ;;  %2689 = vadd.xlane.f32.xlu1 %v8232_v31  ;;  %2691 = vadd.xlane.f32.xlu0 %v8228_v47  ;;  %v8248_v57 = vadd.f32 %v6035_v26, %v2645_v51 }
 0x83f   : > { %v5299_v3 = vpop.f32.mrf.mxu0 }
 0x840   : > { %v8242_v56 = vadd.f32 %v6034_v13, %v2637_v44  ;;  %v2648_v63 = vadd.f32 %v5299_v3, %v8178_v12 }
 0x841   : > { %v2639_v42 = vpop.f32.mrf.mxu0 }
 0x842   : > { %v2640_v54 = vadd.f32 %v8178_v12, %v2639_v42  ;;  %2693 = vadd.xlane.f32.xlu1 %v8238_v36  ;;  %2695 = vadd.xlane.f32.xlu0 %v8242_v56  ;;  %v8257_v7 = vadd.f32 %v6037_v19, %v2648_v63 }
 0x844   : > { %v8252_v48 = vadd.f32 %v6036_v0, %v2640_v54 }
 0x846   : > { %2697 = vadd.xlane.f32.xlu1 %v8252_v48  ;;  %2699 = vadd.xlane.f32.xlu0 %v8248_v57 }
 0x84a   : > { %2701 = vadd.xlane.f32.xlu1 %v8257_v7 }
 0x8b3   : > { %v2672_v1 = vpop.xlane.xlu0 %2671 }
 0x8b4   : > { %v2703_v8 = vmul.f32 0.03125, %v2672_v1 }
 0x8b6   : > { %v2719_v2 = vsub.f32 %v8183_v37, %v2703_v8  ;;  %v5790_v8 = vld [vmem:[%s7418_s30 + $0x78] sm:$0xff]  }
 0x8b7   : > { %v2674_v5 = vpop.xlane.xlu1 %2673  ;;  %v2676_v58 = vpop.xlane.xlu0 %2675  ;;  %5300 = vmatprep.subr.bf16.mxu1 %v5790_v8 }
 0x8b8   : > { %v8262_v12 = vmul.f32 %v7528_v24, %v2719_v2  ;;  %v2704_v60 = vmul.f32 0.03125, %v2674_v5  ;;  %v2705_v55 = vmul.f32 0.03125, %v2676_v58  ;;  %5301 = vmatpush3.bf16.msra.mxu1 %v5790_v8 }
 0x8ba   : > { %v2720_v40 = vsub.f32 %v8192_v9, %v2704_v60  ;;  %v2721_v6 = vsub.f32 %v8188_v49, %v2705_v55  ;;  %v2751_v4 = vmul.f32 %v8262_v12, %v8262_v12 }
 0x8bb   : > { %v2678_v53 = vpop.xlane.xlu1 %2677  ;;  %v2680_v50 = vpop.xlane.xlu0 %2679 }
 0x8bc   : > { %v8269_v25 = vmul.f32 %v7528_v24, %v2720_v40  ;;  %v8272_v41 = vmul.f32 %v7528_v24, %v2721_v6  ;;  %v2706_v18 = vmul.f32 0.03125, %v2678_v53  ;;  %v2707_v23 = vmul.f32 0.03125, %v2680_v50  ;;  %2767 = vadd.xlane.f32.xlu0 %v2751_v4 }
 0x8be   : > { %v2722_v52 = vsub.f32 %v8198_v33, %v2706_v18  ;;  %v2723_v45 = vsub.f32 %v8202_v22, %v2707_v23  ;;  %v2752_v35 = vmul.f32 %v8269_v25, %v8269_v25  ;;  %v2753_v59 = vmul.f32 %v8272_v41, %v8272_v41  ;;  %v5791_v18 = vld [vmem:[%s7418_s30 + $0x70] sm:$0xff]  }
 0x8bf   : > { %v2682_v11 = vpop.xlane.xlu1 %2681  ;;  %v2684_v61 = vpop.xlane.xlu0 %2683  ;;  %5302 = vmatprep.subr.bf16.mxu1 %v5791_v18 }
 0x8c0   : > { %v8281_v27 = vmul.f32 %v7528_v24, %v2722_v52  ;;  %v8284_v34 = vmul.f32 %v7528_v24, %v2723_v45  ;;  %v2708_v30 = vmul.f32 0.03125, %v2682_v11  ;;  %v2709_v39 = vmul.f32 0.03125, %v2684_v61  ;;  %2769 = vadd.xlane.f32.xlu1 %v2752_v35  ;;  %2771 = vadd.xlane.f32.xlu0 %v2753_v59 }
 0x8c1   : > { %5303 = vmatpush3.bf16.msra.mxu1 %v5791_v18 }
 0x8c2   : > { %v2724_v46 = vsub.f32 %v8212_v14, %v2708_v30  ;;  %v2725_v28 = vsub.f32 %v8208_v10, %v2709_v39  ;;  %v2754_v15 = vmul.f32 %v8281_v27, %v8281_v27  ;;  %v2755_v20 = vmul.f32 %v8284_v34, %v8284_v34 }
 0x8c3   : > { %v2686_v32 = vpop.xlane.xlu1 %2685  ;;  %v2688_v38 = vpop.xlane.xlu0 %2687 }
 0x8c4   : > { %v8293_v21 = vmul.f32 %v7528_v24, %v2724_v46  ;;  %v8296_v62 = vmul.f32 %v7528_v24, %v2725_v28  ;;  %v2710_v44 = vmul.f32 0.03125, %v2686_v32  ;;  %v2711_v3 = vmul.f32 0.03125, %v2688_v38  ;;  %2773 = vadd.xlane.f32.xlu1 %v2754_v15  ;;  %2775 = vadd.xlane.f32.xlu0 %v2755_v20  ;;  %v5792_v28 = vld [vmem:[%s7418_s30 + $0x68] sm:$0xff]  }
 0x8c5   : > { %5304 = vmatprep.subr.bf16.mxu1 %v5792_v28 }
 0x8c6   : > { %v2726_v29 = vsub.f32 %v8218_v16, %v2710_v44  ;;  %v2727_v51 = vsub.f32 %v8222_v43, %v2711_v3  ;;  %v2756_v13 = vmul.f32 %v8293_v21, %v8293_v21  ;;  %v2757_v42 = vmul.f32 %v8296_v62, %v8296_v62  ;;  %5305 = vmatpush3.bf16.msra.mxu1 %v5792_v28 }
 0x8c7   : > { %v2690_v54 = vpop.xlane.xlu1 %2689  ;;  %v2692_v26 = vpop.xlane.xlu0 %2691 }
 0x8c8   : > { %v8305_v63 = vmul.f32 %v7528_v24, %v2726_v29  ;;  %v8308_v0 = vmul.f32 %v7528_v24, %v2727_v51  ;;  %v2712_v19 = vmul.f32 0.03125, %v2690_v54  ;;  %v2713_v1 = vmul.f32 0.03125, %v2692_v26  ;;  %2777 = vadd.xlane.f32.xlu1 %v2756_v13  ;;  %2779 = vadd.xlane.f32.xlu0 %v2757_v42  ;;  %v5793_v13 = vld [vmem:[%s7418_s30 + $0x60] sm:$0xff]  }
 0x8c9   : > { %5306 = vmatprep.subr.bf16.mxu1 %v5793_v13 }
 0x8ca   : > { %v2728_v2 = vsub.f32 %v8232_v31, %v2712_v19  ;;  %v2729_v5 = vsub.f32 %v8228_v47, %v2713_v1  ;;  %v2758_v58 = vmul.f32 %v8305_v63, %v8305_v63  ;;  %v2759_v60 = vmul.f32 %v8308_v0, %v8308_v0  ;;  %5307 = vmatpush3.bf16.msra.mxu1 %v5793_v13  ;;  %v5794_v1 = vld [vmem:[%s7418_s30 + $0x58] sm:$0xff]  }
 0x8cb   : > { %v2694_v55 = vpop.xlane.xlu1 %2693  ;;  %v2696_v40 = vpop.xlane.xlu0 %2695  ;;  %5308 = vmatprep.subr.bf16.mxu1 %v5794_v1 }
 0x8cc   : > { %v8318_v6 = vmul.f32 %v7528_v24, %v2728_v2  ;;  %v8321_v4 = vmul.f32 %v7528_v24, %v2729_v5  ;;  %v2714_v53 = vmul.f32 0.03125, %v2694_v55  ;;  %v2715_v50 = vmul.f32 0.03125, %v2696_v40  ;;  %2781 = vadd.xlane.f32.xlu1 %v2758_v58  ;;  %2783 = vadd.xlane.f32.xlu0 %v2759_v60  ;;  %v5795_v2 = vld [vmem:[%s7418_s30 + $0x50] sm:$0xff]   ;;  %v5796_v5 = vld [vmem:[%s7418_s30 + $0x48] sm:$0xff]   ;;  %v5797_v58 = vld [vmem:[%s7418_s30 + $0x40] sm:$0xff]  }
 0x8ce   : > { %v2730_v23 = vsub.f32 %v8238_v36, %v2714_v53  ;;  %v2731_v52 = vsub.f32 %v8242_v56, %v2715_v50  ;;  %v2760_v45 = vmul.f32 %v8318_v6, %v8318_v6  ;;  %v2761_v35 = vmul.f32 %v8321_v4, %v8321_v4  ;;  %5309 = vmatpush3.bf16.msra.mxu1 %v5794_v1  ;;  %v8366_v1 = vld [vmem:[%s690_s6 + $0x1] ss:$0 sm:$0xff]  ;;  %s4450_s6 = sshll.u32 %s8877_s22, 4  ;;  %s8928_s6 = int_to_ptr.vmem [resolvable:$true] %s4450_s6 }
 0x8cf   : > { %v2698_v59 = vpop.xlane.xlu1 %2697  ;;  %v2700_v11 = vpop.xlane.xlu0 %2699  ;;  %5310 = vmatprep.subr.bf16.mxu1 %v5795_v2  ;;  %s6270_s17 = scalar_lea.vmem %s8928_s6, 2048 }
 0x8d0   : > { %v8331_v61 = vmul.f32 %v7528_v24, %v2730_v23  ;;  %v8334_v30 = vmul.f32 %v7528_v24, %v2731_v52  ;;  %v2716_v39 = vmul.f32 0.03125, %v2698_v59  ;;  %v2717_v46 = vmul.f32 0.03125, %v2700_v11  ;;  %2785 = vadd.xlane.f32.xlu1 %v2760_v45  ;;  %2787 = vadd.xlane.f32.xlu0 %v2761_v35  ;;  %p6271_p7 = scmp.ne.s32.totalorder %s8928_s6, %s6270_s17 }
 0x8d2   : > { %v2732_v15 = vsub.f32 %v8252_v48, %v2716_v39  ;;  %v2733_v20 = vsub.f32 %v8248_v57, %v2717_v46  ;;  %v2762_v32 = vmul.f32 %v8331_v61, %v8331_v61  ;;  %v2763_v38 = vmul.f32 %v8334_v30, %v8334_v30  ;;  %5311 = vmatpush3.bf16.msra.mxu1 %v5795_v2  ;;  %p6272_p3 = pnand %p6271_p7, %p9300_p12 }
 0x8d3   : > { %v2702_v44 = vpop.xlane.xlu1 %2701  ;;  %5312 = vmatprep.subr.bf16.mxu1 %v5796_v5 }
 0x8d4   : > { %v8344_v3 = vmul.f32 %v7528_v24, %v2732_v15  ;;  %v8347_v29 = vmul.f32 %v7528_v24, %v2733_v20  ;;  %v2718_v51 = vmul.f32 0.03125, %v2702_v44  ;;  %2789 = vadd.xlane.f32.xlu1 %v2762_v32  ;;  %2791 = vadd.xlane.f32.xlu0 %v2763_v38  ;;  %p6273_p8 = pneg %p6272_p3 }
 0x8d6   : > { %v2734_v42 = vsub.f32 %v8257_v7, %v2718_v51  ;;  %v2764_v54 = vmul.f32 %v8344_v3, %v8344_v3  ;;  %v2765_v26 = vmul.f32 %v8347_v29, %v8347_v29  ;;  %5313 = vmatpush3.bf16.msra.mxu1 %v5796_v5 }
 0x8d7   : > { %5314 = vmatprep.subr.bf16.mxu1 %v5797_v58 }
 0x8d8   : > { %v8356_v19 = vmul.f32 %v7528_v24, %v2734_v42  ;;  %2793 = vadd.xlane.f32.xlu1 %v2764_v54  ;;  %2795 = vadd.xlane.f32.xlu0 %v2765_v26 }
 0x8da   : > { %v2766_v8 = vmul.f32 %v8356_v19, %v8356_v19  ;;  %5315 = vmatpush3.bf16.msra.mxu1 %v5797_v58 }
 0x8dc   : > { %2797 = vadd.xlane.f32.xlu1 %v2766_v8 }
 0x945   : > { %v2768_v24 = vpop.xlane.xlu0 %2767 }
 0x946   : > { %v2799_v60 = vmul.f32 0.03125, %v2768_v24 }
 0x948   : > { %v2815_v55 = vadd.f32 1e-05, %v2799_v60  ;;  %v8370_v60 = vld [vmem:[%s7638_s7 + $0x1] ss:$0 sm:$0xff] }
 0x949   : > { %v2770_v40 = vpop.xlane.xlu1 %2769  ;;  %v2772_v53 = vpop.xlane.xlu0 %2771 }
 0x94a   : > { %5926 = vrsqrt.f32 %v2815_v55  ;;  %v2800_v50 = vmul.f32 0.03125, %v2770_v40  ;;  %v2801_v18 = vmul.f32 0.03125, %v2772_v53 }
 0x94c   : > { %v2816_v23 = vadd.f32 1e-05, %v2800_v50  ;;  %v2817_v52 = vadd.f32 1e-05, %v2801_v18 }
 0x94d   : > { %v2774_v45 = vpop.xlane.xlu1 %2773  ;;  %v2776_v35 = vpop.xlane.xlu0 %2775 }
 0x94e   : > { %5928 = vrsqrt.f32 %v2816_v23  ;;  %v2802_v59 = vmul.f32 0.03125, %v2774_v45  ;;  %v2803_v11 = vmul.f32 0.03125, %v2776_v35 }
 0x94f   : > { %5930 = vrsqrt.f32 %v2817_v52 }
 0x950   : > { %v2818_v39 = vadd.f32 1e-05, %v2802_v59  ;;  %v2819_v46 = vadd.f32 1e-05, %v2803_v11 }
 0x951   : > { %v2778_v28 = vpop.xlane.xlu1 %2777  ;;  %v2780_v15 = vpop.xlane.xlu0 %2779 }
 0x952   : > { %5932 = vrsqrt.f32 %v2818_v39  ;;  %v2804_v20 = vmul.f32 0.03125, %v2778_v28  ;;  %v2805_v32 = vmul.f32 0.03125, %v2780_v15 }
 0x953   : > { %5934 = vrsqrt.f32 %v2819_v46 }
 0x954   : > { %v2820_v38 = vadd.f32 1e-05, %v2804_v20  ;;  %v2821_v44 = vadd.f32 1e-05, %v2805_v32 }
 0x955   : > { %v2782_v51 = vpop.xlane.xlu1 %2781  ;;  %v2784_v13 = vpop.xlane.xlu0 %2783 }
 0x956   : > { %5936 = vrsqrt.f32 %v2820_v38  ;;  %v2806_v42 = vmul.f32 0.03125, %v2782_v51  ;;  %v2807_v54 = vmul.f32 0.03125, %v2784_v13 }
 0x957   : > { %v5927_v26 = vpop.eup %5926  ;;  %5938 = vrsqrt.f32 %v2821_v44 }
 0x958   : > { %v2822_v8 = vadd.f32 1e-05, %v2806_v42  ;;  %v2823_v2 = vadd.f32 1e-05, %v2807_v54  ;;  %v2847_v5 = vmul.f32 %v5927_v26, %v8262_v12 }
 0x959   : > { %v2786_v58 = vpop.xlane.xlu1 %2785  ;;  %v2788_v24 = vpop.xlane.xlu0 %2787 }
 0x95a   : > { %5940 = vrsqrt.f32 %v2822_v8  ;;  %v2808_v55 = vmul.f32 0.03125, %v2786_v58  ;;  %v2809_v40 = vmul.f32 0.03125, %v2788_v24  ;;  %v2869_v53 = vmul.f32 %v8366_v1, %v2847_v5 }
 0x95b   : > { %v5929_v50 = vpop.eup %5928  ;;  %5942 = vrsqrt.f32 %v2823_v2 }
 0x95c   : > { %v5931_v18 = vpop.eup %5930  ;;  %v2824_v23 = vadd.f32 1e-05, %v2808_v55  ;;  %v2825_v52 = vadd.f32 1e-05, %v2809_v40  ;;  %v2848_v45 = vmul.f32 %v5929_v50, %v8269_v25  ;;  %v2891_v11 = vadd.f32 %v8370_v60, %v2869_v53 }
 0x95d   : > { %v2849_v35 = vmul.f32 %v5931_v18, %v8272_v41  ;;  %v2790_v59 = vpop.xlane.xlu1 %2789  ;;  %v2792_v12 = vpop.xlane.xlu0 %2791 }
 0x95e   : > { %5944 = vrsqrt.f32 %v2824_v23  ;;  %v2810_v39 = vmul.f32 0.03125, %v2790_v59  ;;  %v2811_v46 = vmul.f32 0.03125, %v2792_v12  ;;  %v2870_v28 = vmul.f32 %v8366_v1, %v2848_v45 }
 0x95f   : > { %v5933_v15 = vpop.eup %5932  ;;  %5946 = vrsqrt.f32 %v2825_v52  ;;  %v2871_v20 = vmul.f32 %v8366_v1, %v2849_v35  ;;  %v2907_v42 = vmax.f32 %v2891_v11, 0.0 }
 0x960   : > { %v5935_v32 = vpop.eup %5934  ;;  %v2850_v38 = vmul.f32 %v5933_v15, %v8281_v27  ;;  %v2826_v44 = vadd.f32 1e-05, %v2810_v39  ;;  %v2827_v25 = vadd.f32 1e-05, %v2811_v46  ;;  %v2892_v41 = vadd.f32 %v8370_v60, %v2870_v28 }
 0x961   : > { %v2794_v51 = vpop.xlane.xlu1 %2793  ;;  %v2796_v13 = vpop.xlane.xlu0 %2795  ;;  %v2851_v54 = vmul.f32 %v5935_v32, %v8284_v34  ;;  %v2893_v24 = vadd.f32 %v8370_v60, %v2871_v20 }
 0x962   : > { %5948 = vrsqrt.f32 %v2826_v44  ;;  %v2812_v26 = vmul.f32 0.03125, %v2794_v51  ;;  %v2813_v8 = vmul.f32 0.03125, %v2796_v13  ;;  %v2908_v2 = vmax.f32 %v2892_v41, 0.0 }
 0x963   : > { %v5937_v5 = vpop.eup %5936  ;;  %5950 = vrsqrt.f32 %v2827_v25  ;;  %v2872_v58 = vmul.f32 %v8366_v1, %v2850_v38  ;;  %v2873_v27 = vmul.f32 %v8366_v1, %v2851_v54  ;;  %v2909_v11 = vmax.f32 %v2893_v24, 0.0 }
 0x964   : > { %v5939_v55 = vpop.eup %5938  ;;  %v2828_v40 = vadd.f32 1e-05, %v2812_v26  ;;  %v2829_v53 = vadd.f32 1e-05, %v2813_v8  ;;  %v2940_v50 = vpack.c.bf16 %v2908_v2, %v2907_v42  ;;  %v2852_v18 = vmul.f32 %v5937_v5, %v8293_v21 }
 0x965   : > { %v2798_v23 = vpop.xlane.xlu1 %2797  ;;  %v2894_v34 = vadd.f32 %v8370_v60, %v2872_v58  ;;  %v2895_v52 = vadd.f32 %v8370_v60, %v2873_v27  ;;  %v2853_v45 = vmul.f32 %v5939_v55, %v8296_v62 }
 0x966   : > { %5952 = vrsqrt.f32 %v2828_v40  ;;  %v2814_v35 = vmul.f32 0.03125, %v2798_v23  ;;  %5316 = vmatprep.mubr.bf16.mxu1 %v2940_v50  ;;  %v2874_v59 = vmul.f32 %v8366_v1, %v2852_v18 }
 0x967   : > { %v5941_v12 = vpop.eup %5940  ;;  %5954 = vrsqrt.f32 %v2829_v53  ;;  %v2910_v39 = vmax.f32 %v2894_v34, 0.0  ;;  %v2875_v46 = vmul.f32 %v8366_v1, %v2853_v45  ;;  %v2911_v38 = vmax.f32 %v2895_v52, 0.0 }
 0x968   : > { %v5943_v28 = vpop.eup %5942  ;;  %v2830_v21 = vadd.f32 1e-05, %v2814_v35  ;;  %v2896_v15 = vadd.f32 %v8370_v60, %v2874_v59  ;;  %v2854_v20 = vmul.f32 %v5941_v12, %v8305_v63 }
 0x969   : > { %v2941_v32 = vpack.c.bf16 %v2910_v39, %v2909_v11  ;;  %v2855_v62 = vmul.f32 %v5943_v28, %v8308_v0  ;;  %v2897_v41 = vadd.f32 %v8370_v60, %v2875_v46 }
 0x96a   : > { %5956 = vrsqrt.f32 %v2830_v21  ;;  %v2912_v44 = vmax.f32 %v2896_v15, 0.0  ;;  %v2876_v25 = vmul.f32 %v8366_v1, %v2854_v20 }
 0x96b   : > { %v5945_v51 = vpop.eup %5944  ;;  %5317 = vmatmul.mubr.bf16.vlgmr.msra.gmra.mxu1 %v2941_v32  ;;  %v2877_v13 = vmul.f32 %v8366_v1, %v2855_v62  ;;  %v2913_v0 = vmax.f32 %v2897_v41, 0.0 }
 0x96c   : > { %v5947_v42 = vpop.eup %5946  ;;  %v2942_v54 = vpack.c.bf16 %v2912_v44, %v2911_v38  ;;  %v2898_v26 = vadd.f32 %v8370_v60, %v2876_v25  ;;  %v2856_v63 = vmul.f32 %v5945_v51, %v8318_v6 }
 0x96d   : > { %v2857_v8 = vmul.f32 %v5947_v42, %v8321_v4  ;;  %v2899_v58 = vadd.f32 %v8370_v60, %v2877_v13 }
 0x96e   : > { %5320 = vmatprep.mubr.bf16.mxu1 %v2942_v54  ;;  %v2914_v2 = vmax.f32 %v2898_v26, 0.0  ;;  %v2878_v5 = vmul.f32 %v8366_v1, %v2856_v63  ;;  %v4847_v26 = vld [vmem:[%s7699_s27 + $0x1] ss:$0 sm:$0xff] }
 0x96f   : > { %v5949_v24 = vpop.eup %5948  ;;  %v2879_v27 = vmul.f32 %v8366_v1, %v2857_v8  ;;  %v2915_v18 = vmax.f32 %v2899_v58, 0.0 }
 0x970   : > { %v5951_v55 = vpop.eup %5950  ;;  %v2943_v40 = vpack.c.bf16 %v2914_v2, %v2913_v0  ;;  %v2900_v53 = vadd.f32 %v8370_v60, %v2878_v5  ;;  %v2858_v50 = vmul.f32 %v5949_v24, %v8331_v61 }
 0x971   : > { %v2859_v6 = vmul.f32 %v5951_v55, %v8334_v30  ;;  %v2901_v34 = vadd.f32 %v8370_v60, %v2879_v27 }
 0x972   : > { %v2916_v4 = vmax.f32 %v2900_v53, 0.0  ;;  %v2880_v23 = vmul.f32 %v8366_v1, %v2858_v50 }
 0x973   : > { %v5953_v52 = vpop.eup %5952  ;;  %5321 = vmatmul.mubr.bf16.gmra.mxu1 %v2943_v40  ;;  %v2881_v45 = vmul.f32 %v8366_v1, %v2859_v6  ;;  %v2917_v30 = vmax.f32 %v2901_v34, 0.0 }
 0x974   : > { %v5955_v35 = vpop.eup %5954  ;;  %v2944_v59 = vpack.c.bf16 %v2916_v4, %v2915_v18  ;;  %v2902_v12 = vadd.f32 %v8370_v60, %v2880_v23  ;;  %v2860_v11 = vmul.f32 %v5953_v52, %v8344_v3 }
 0x975   : > { %v2861_v61 = vmul.f32 %v5955_v35, %v8347_v29  ;;  %v2903_v28 = vadd.f32 %v8370_v60, %v2881_v45 }
 0x976   : > { %5324 = vmatprep.mubr.bf16.mxu1 %v2944_v59  ;;  %v2918_v39 = vmax.f32 %v2902_v12, 0.0  ;;  %v2882_v46 = vmul.f32 %v8366_v1, %v2860_v11 }
 0x977   : > { %v5957_v21 = vpop.eup %5956  ;;  %v2883_v15 = vmul.f32 %v8366_v1, %v2861_v61  ;;  %v2919_v62 = vmax.f32 %v2903_v28, 0.0 }
 0x978   : > { %v2945_v20 = vpack.c.bf16 %v2918_v39, %v2917_v30  ;;  %v2904_v32 = vadd.f32 %v8370_v60, %v2882_v46  ;;  %v2862_v38 = vmul.f32 %v5957_v21, %v8356_v19 }
 0x979   : > { %v2905_v44 = vadd.f32 %v8370_v60, %v2883_v15 }
 0x97a   : > { %v2920_v3 = vmax.f32 %v2904_v32, 0.0  ;;  %v2884_v29 = vmul.f32 %v8366_v1, %v2862_v38 }
 0x97b   : > { %5325 = vmatmul.mubr.bf16.gmra.mxu1 %v2945_v20  ;;  %v2921_v51 = vmax.f32 %v2905_v44, 0.0 }
 0x97c   : > { %v2946_v25 = vpack.c.bf16 %v2920_v3, %v2919_v62  ;;  %v2906_v41 = vadd.f32 %v8370_v60, %v2884_v29 }
 0x97e   : > { %5328 = vmatprep.mubr.bf16.mxu1 %v2946_v25  ;;  %v2922_v13 = vmax.f32 %v2906_v41, 0.0 }
 0x980   : > { %v2947_v42 = vpack.c.bf16 %v2922_v13, %v2921_v51 }
 0x983   : > { %5329 = vmatmul.mubr.bf16.gmra.mxu1 %v2947_v42 }
 0xa2b   : > { %v5318_v54 = vpop.f32.mrf.mxu1 }
 0xa2c   : > { %v3047_v2 = vadd.f32 %v5318_v54, %v4847_v26 }
 0xa2d   : > { %v3038_v63 = vpop.f32.mrf.mxu1 }
 0xa2e   : > { %v3039_v8 = vadd.f32 %v4847_v26, %v3038_v63 }
 0xa2f   : > { %v5319_v19 = vpop.f32.mrf.mxu1 }
 0xa30   : > { %3105 = vadd.xlane.f32.xlu0 %v3039_v8  ;;  %v3050_v24 = vadd.f32 %v5319_v19, %v4847_v26 }
 0xa31   : > { %v3041_v0 = vpop.f32.mrf.mxu1 }
 0xa32   : > { %v3042_v1 = vadd.f32 %v4847_v26, %v3041_v0 }
 0xa33   : > { %v5322_v5 = vpop.f32.mrf.mxu1 }
 0xa34   : > { %3107 = vadd.xlane.f32.xlu1 %v3042_v1  ;;  %3109 = vadd.xlane.f32.xlu0 %v3047_v2  ;;  %v8420_v40 = vadd.f32 %v5322_v5, %v4847_v26 }
 0xa35   : > { %v3054_v58 = vpop.f32.mrf.mxu1 }
 0xa36   : > { %v3055_v60 = vadd.f32 %v4847_v26, %v3054_v58 }
 0xa37   : > { %v5323_v27 = vpop.f32.mrf.mxu1 }
 0xa38   : > { %3111 = vadd.xlane.f32.xlu1 %v3050_v24  ;;  %3113 = vadd.xlane.f32.xlu0 %v3055_v60  ;;  %v8426_v18 = vadd.f32 %v5323_v27, %v4847_v26 }
 0xa39   : > { %v3057_v55 = vpop.f32.mrf.mxu1 }
 0xa3a   : > { %v8422_v53 = vadd.f32 %v4847_v26, %v3057_v55 }
 0xa3b   : > { %v5326_v50 = vpop.f32.mrf.mxu1 }
 0xa3c   : > { %3115 = vadd.xlane.f32.xlu1 %v8422_v53  ;;  %3117 = vadd.xlane.f32.xlu0 %v8420_v40  ;;  %v8432_v52 = vadd.f32 %v5326_v50, %v4847_v26 }
 0xa3d   : > { %v3070_v6 = vpop.f32.mrf.mxu1 }
 0xa3e   : > { %v8428_v4 = vadd.f32 %v4847_v26, %v3070_v6 }
 0xa3f   : > { %v5327_v23 = vpop.f32.mrf.mxu1 }
 0xa40   : > { %3119 = vadd.xlane.f32.xlu1 %v8426_v18  ;;  %3121 = vadd.xlane.f32.xlu0 %v8428_v4  ;;  %v8438_v12 = vadd.f32 %v5327_v23, %v4847_v26 }
 0xa41   : > { %v3073_v34 = vpop.f32.mrf.mxu1 }
 0xa42   : > { %v8434_v45 = vadd.f32 %v4847_v26, %v3073_v34 }
 0xa43   : > { %v5330_v35 = vpop.f32.mrf.mxu1 }
 0xa44   : > { %3123 = vadd.xlane.f32.xlu1 %v8434_v45  ;;  %3125 = vadd.xlane.f32.xlu0 %v8432_v52  ;;  %v8444_v39 = vadd.f32 %v5330_v35, %v4847_v26 }
 0xa45   : > { %v3086_v59 = vpop.f32.mrf.mxu1 }
 0xa46   : > { %v8440_v11 = vadd.f32 %v4847_v26, %v3086_v59 }
 0xa47   : > { %v5331_v61 = vpop.f32.mrf.mxu1 }
 0xa48   : > { %3127 = vadd.xlane.f32.xlu1 %v8438_v12  ;;  %3129 = vadd.xlane.f32.xlu0 %v8440_v11  ;;  %v8450_v28 = vadd.f32 %v5331_v61, %v4847_v26 }
 0xa49   : > { %v3089_v30 = vpop.f32.mrf.mxu1 }
 0xa4a   : > { %v8446_v46 = vadd.f32 %v4847_v26, %v3089_v30 }
 0xa4c   : > { %3131 = vadd.xlane.f32.xlu1 %v8446_v46  ;;  %3133 = vadd.xlane.f32.xlu0 %v8444_v39 }
 0xa50   : > { %3135 = vadd.xlane.f32.xlu1 %v8450_v28 }
 0xab9   : > { %v3106_v21 = vpop.xlane.xlu0 %3105 }
 0xaba   : > { %v3137_v15 = vmul.f32 0.0625, %v3106_v21 }
 0xabc   : > { %v3153_v20 = vsub.f32 %v3039_v8, %v3137_v15 }
 0xabd   : > { %v3108_v32 = vpop.xlane.xlu1 %3107  ;;  %v3110_v38 = vpop.xlane.xlu0 %3109 }
 0xabe   : > { %v8454_v62 = vmul.f32 %v7516_v17, %v3153_v20  ;;  %v3138_v3 = vmul.f32 0.0625, %v3108_v32  ;;  %v3139_v29 = vmul.f32 0.0625, %v3110_v38 }
 0xac0   : > { %v3154_v44 = vsub.f32 %v3042_v1, %v3138_v3  ;;  %v3155_v25 = vsub.f32 %v3047_v2, %v3139_v29  ;;  %v3185_v41 = vmul.f32 %v8454_v62, %v8454_v62 }
 0xac1   : > { %v3112_v51 = vpop.xlane.xlu1 %3111  ;;  %v3114_v13 = vpop.xlane.xlu0 %3113 }
 0xac2   : > { %v8459_v42 = vmul.f32 %v7516_v17, %v3154_v44  ;;  %v8462_v54 = vmul.f32 %v7516_v17, %v3155_v25  ;;  %v3140_v26 = vmul.f32 0.0625, %v3112_v51  ;;  %v3141_v63 = vmul.f32 0.0625, %v3114_v13  ;;  %3201 = vadd.xlane.f32.xlu0 %v3185_v41 }
 0xac4   : > { %v3156_v8 = vsub.f32 %v3050_v24, %v3140_v26  ;;  %v3157_v19 = vsub.f32 %v3055_v60, %v3141_v63  ;;  %v3186_v0 = vmul.f32 %v8459_v42, %v8459_v42  ;;  %v3187_v2 = vmul.f32 %v8462_v54, %v8462_v54 }
 0xac5   : > { %v3116_v1 = vpop.xlane.xlu1 %3115  ;;  %v3118_v5 = vpop.xlane.xlu0 %3117 }
 0xac6   : > { %v8469_v58 = vmul.f32 %v7516_v17, %v3156_v8  ;;  %v8472_v27 = vmul.f32 %v7516_v17, %v3157_v19  ;;  %v3142_v55 = vmul.f32 0.0625, %v3116_v1  ;;  %v3143_v50 = vmul.f32 0.0625, %v3118_v5  ;;  %3203 = vadd.xlane.f32.xlu1 %v3186_v0  ;;  %3205 = vadd.xlane.f32.xlu0 %v3187_v2 }
 0xac8   : > { %v3158_v24 = vsub.f32 %v8422_v53, %v3142_v55  ;;  %v3159_v60 = vsub.f32 %v8420_v40, %v3143_v50  ;;  %v3188_v6 = vmul.f32 %v8469_v58, %v8469_v58  ;;  %v3189_v23 = vmul.f32 %v8472_v27, %v8472_v27 }
 0xac9   : > { %v3120_v34 = vpop.xlane.xlu1 %3119  ;;  %v3122_v35 = vpop.xlane.xlu0 %3121 }
 0xaca   : > { %v8481_v59 = vmul.f32 %v7516_v17, %v3158_v24  ;;  %v8484_v61 = vmul.f32 %v7516_v17, %v3159_v60  ;;  %v3144_v30 = vmul.f32 0.0625, %v3120_v34  ;;  %v3145_v21 = vmul.f32 0.0625, %v3122_v35  ;;  %3207 = vadd.xlane.f32.xlu1 %v3188_v6  ;;  %3209 = vadd.xlane.f32.xlu0 %v3189_v23 }
 0xacc   : > { %v3160_v40 = vsub.f32 %v8426_v18, %v3144_v30  ;;  %v3161_v53 = vsub.f32 %v8428_v4, %v3145_v21  ;;  %v3190_v15 = vmul.f32 %v8481_v59, %v8481_v59  ;;  %v3191_v20 = vmul.f32 %v8484_v61, %v8484_v61  ;;  %v5798_v18 = vld [vmem:[%s7433_s26 + $0x138] sm:$0xff]  }
 0xacd   : > { %v3124_v32 = vpop.xlane.xlu1 %3123  ;;  %v3126_v38 = vpop.xlane.xlu0 %3125  ;;  %5332 = vmatprep.subr.bf16.mxu0 %v5798_v18 }
 0xace   : > { %v8493_v3 = vmul.f32 %v7516_v17, %v3160_v40  ;;  %v8496_v29 = vmul.f32 %v7516_v17, %v3161_v53  ;;  %v3146_v44 = vmul.f32 0.0625, %v3124_v32  ;;  %v3147_v25 = vmul.f32 0.0625, %v3126_v38  ;;  %3211 = vadd.xlane.f32.xlu1 %v3190_v15  ;;  %3213 = vadd.xlane.f32.xlu0 %v3191_v20 }
 0xacf   : > { %5333 = vmatpush3.bf16.msra.mxu0 %v5798_v18 }
 0xad0   : > { %v3162_v4 = vsub.f32 %v8434_v45, %v3146_v44  ;;  %v3163_v41 = vsub.f32 %v8432_v52, %v3147_v25  ;;  %v3192_v51 = vmul.f32 %v8493_v3, %v8493_v3  ;;  %v3193_v13 = vmul.f32 %v8496_v29, %v8496_v29  ;;  %v5800_v52 = vld [vmem:[%s7433_s26 + $0x130] sm:$0xff]  }
 0xad1   : > { %v3128_v26 = vpop.xlane.xlu1 %3127  ;;  %v3130_v63 = vpop.xlane.xlu0 %3129  ;;  %5334 = vmatprep.subr.bf16.mxu0 %v5800_v52 }
 0xad2   : > { %v8506_v8 = vmul.f32 %v7516_v17, %v3162_v4  ;;  %v8509_v19 = vmul.f32 %v7516_v17, %v3163_v41  ;;  %v3148_v0 = vmul.f32 0.0625, %v3128_v26  ;;  %v3149_v2 = vmul.f32 0.0625, %v3130_v63  ;;  %3215 = vadd.xlane.f32.xlu1 %v3192_v51  ;;  %3217 = vadd.xlane.f32.xlu0 %v3193_v13  ;;  %v5803_v4 = vld [vmem:[%s7433_s26 + $0xe8] sm:$0xff]   ;;  %v5805_v51 = vld [vmem:[%s7433_s26 + $0xe0] sm:$0xff]   ;;  %v5808_v13 = vld [vmem:[%s7433_s26 + $0x110] sm:$0xff]  }
 0xad3   : > { %5335 = vmatpush3.bf16.msra.mxu0 %v5800_v52  ;;  %v5807_v26 = vld [vmem:[%s7433_s26 + $0xd8] sm:$0xff]   ;;  %v5810_v63 = vld [vmem:[%s7433_s26 + $0x108] sm:$0xff]  }
 0xad4   : > { %v3164_v45 = vsub.f32 %v8438_v12, %v3148_v0  ;;  %v3165_v1 = vsub.f32 %v8440_v11, %v3149_v2  ;;  %v3194_v5 = vmul.f32 %v8506_v8, %v8506_v8  ;;  %v3195_v55 = vmul.f32 %v8509_v19, %v8509_v19  ;;  %v5799_v12 = vld [vmem:[%s7433_s26 + $0xf8] sm:$0xff]   ;;  %v5802_v11 = vld [vmem:[%s7433_s26 + $0x128] sm:$0xff]   ;;  %v5809_v0 = vld [vmem:[%s7433_s26 + $0xd0] sm:$0xff]  }
 0xad5   : > { %v3132_v50 = vpop.xlane.xlu1 %3131  ;;  %v3134_v24 = vpop.xlane.xlu0 %3133  ;;  %5364 = vmatprep.subr.bf16.mxu1 %v5799_v12  ;;  %5336 = vmatprep.subr.bf16.mxu0 %v5802_v11  ;;  %v5812_v2 = vld [vmem:[%s7433_s26 + $0x100] sm:$0xff]   ;;  %v5811_v52 = vld [vmem:[%s7433_s26 + $0xc8] sm:$0xff]  }
 0xad6   : > { %v8519_v60 = vmul.f32 %v7516_v17, %v3164_v45  ;;  %v8522_v6 = vmul.f32 %v7516_v17, %v3165_v1  ;;  %v3150_v23 = vmul.f32 0.0625, %v3132_v50  ;;  %v3151_v34 = vmul.f32 0.0625, %v3134_v24  ;;  %3219 = vadd.xlane.f32.xlu1 %v3194_v5  ;;  %3221 = vadd.xlane.f32.xlu0 %v3195_v55  ;;  %v8560_v45 = vld [vmem:[%s7433_s26 + $0x178] sm:$0xff]   ;;  %v5813_v1 = vld [vmem:[%s7433_s26 + $0xc0] sm:$0xff]  }
 0xad7   : > { %5365 = vmatpush3.bf16.msra.mxu1 %v5799_v12  ;;  %5337 = vmatpush3.bf16.msra.mxu0 %v5802_v11 }
 0xad8   : > { %v3166_v35 = vsub.f32 %v8446_v46, %v3150_v23  ;;  %v3167_v30 = vsub.f32 %v8444_v39, %v3151_v34  ;;  %v3196_v21 = vmul.f32 %v8519_v60, %v8519_v60  ;;  %v3197_v40 = vmul.f32 %v8522_v6, %v8522_v6  ;;  %v5801_v39 = vld [vmem:[%s7433_s26 + $0xf0] sm:$0xff]   ;;  %v5804_v46 = vld [vmem:[%s7433_s26 + $0x120] sm:$0xff]  }
 0xad9   : > { %v3136_v53 = vpop.xlane.xlu1 %3135  ;;  %5366 = vmatprep.subr.bf16.mxu1 %v5801_v39  ;;  %5338 = vmatprep.subr.bf16.mxu0 %v5804_v46 }
 0xada   : > { %v8533_v15 = vmul.f32 %v7516_v17, %v3166_v35  ;;  %v8536_v20 = vmul.f32 %v7516_v17, %v3167_v30  ;;  %v3152_v32 = vmul.f32 0.0625, %v3136_v53  ;;  %3223 = vadd.xlane.f32.xlu1 %v3196_v21  ;;  %3225 = vadd.xlane.f32.xlu0 %v3197_v40 }
 0xadb   : > { %5367 = vmatpush3.bf16.msra.mxu1 %v5801_v39  ;;  %5339 = vmatpush3.bf16.msra.mxu0 %v5804_v46 }
 0xadc   : > { %v3168_v38 = vsub.f32 %v8450_v28, %v3152_v32  ;;  %v3198_v44 = vmul.f32 %v8533_v15, %v8533_v15  ;;  %v3199_v25 = vmul.f32 %v8536_v20, %v8536_v20  ;;  %v5806_v28 = vld [vmem:[%s7433_s26 + $0x118] sm:$0xff]   ;;  %5368 = vmatprep.subr.bf16.mxu1 %v5803_v4 }
 0xadd   : > { %5340 = vmatprep.subr.bf16.mxu0 %v5806_v28 }
 0xade   : > { %v8546_v18 = vmul.f32 %v7516_v17, %v3168_v38  ;;  %3227 = vadd.xlane.f32.xlu1 %v3198_v44  ;;  %3229 = vadd.xlane.f32.xlu0 %v3199_v25 }
 0xadf   : > { %5369 = vmatpush3.bf16.msra.mxu1 %v5803_v4  ;;  %5341 = vmatpush3.bf16.msra.mxu0 %v5806_v28 }
 0xae0   : > { %v3200_v41 = vmul.f32 %v8546_v18, %v8546_v18  ;;  %5370 = vmatprep.subr.bf16.mxu1 %v5805_v51  ;;  %5342 = vmatprep.subr.bf16.mxu0 %v5808_v13 }
 0xae2   : > { %3231 = vadd.xlane.f32.xlu1 %v3200_v41 }
 0xae3   : > { %5371 = vmatpush3.bf16.msra.mxu1 %v5805_v51  ;;  %5343 = vmatpush3.bf16.msra.mxu0 %v5808_v13 }
 0xae4   : > { %5372 = vmatprep.subr.bf16.mxu1 %v5807_v26  ;;  %5344 = vmatprep.subr.bf16.mxu0 %v5810_v63 }
 0xae7   : > { %5373 = vmatpush3.bf16.msra.mxu1 %v5807_v26  ;;  %5345 = vmatpush3.bf16.msra.mxu0 %v5810_v63 }
 0xae8   : > { %5374 = vmatprep.subr.bf16.mxu1 %v5809_v0  ;;  %5346 = vmatprep.subr.bf16.mxu0 %v5812_v2 }
 0xaeb   : > { %5375 = vmatpush3.bf16.msra.mxu1 %v5809_v0  ;;  %5347 = vmatpush3.bf16.msra.mxu0 %v5812_v2  ;;  %v8566_v0 = vld [vmem:[%s708_s14 + $0x1] ss:$0 sm:$0xff]  ;;  %s9298_s14 = sld [smem:[#allocation90_spill]] }
 0xaec   : > { %5376 = vmatprep.subr.bf16.mxu1 %v5811_v52  ;;  %5396 = vmatprep.subr.bf16.mxu0 %v8560_v45 }
 0xaef   : > { %5377 = vmatpush3.bf16.msra.mxu1 %v5811_v52 }
 0xaf0   : > { %5378 = vmatprep.subr.bf16.mxu1 %v5813_v1 }
 0xaf1   : > { %s9299_s8 = smov %s9298_s14 }
 0xaf3   : > { %5379 = vmatpush3.bf16.msra.mxu1 %v5813_v1 }
 0xb4b   : > { %v3202_v5 = vpop.xlane.xlu0 %3201 }
 0xb4c   : > { %v3233_v55 = vmul.f32 0.0625, %v3202_v5  ;;  %v8570_v5 = vld [vmem:[%s7858_s25 + $0x1] ss:$0 sm:$0xff] }
 0xb4e   : > { %v3249_v50 = vadd.f32 1e-05, %v3233_v55 }
 0xb4f   : > { %v3204_v24 = vpop.xlane.xlu1 %3203  ;;  %v3206_v23 = vpop.xlane.xlu0 %3205 }
 0xb50   : > { %5958 = vrsqrt.f32 %v3249_v50  ;;  %v3234_v34 = vmul.f32 0.0625, %v3204_v24  ;;  %v3235_v12 = vmul.f32 0.0625, %v3206_v23 }
 0xb52   : > { %v3250_v11 = vadd.f32 1e-05, %v3234_v34  ;;  %v3251_v35 = vadd.f32 1e-05, %v3235_v12 }
 0xb53   : > { %v3208_v30 = vpop.xlane.xlu1 %3207  ;;  %v3210_v21 = vpop.xlane.xlu0 %3209 }
 0xb54   : > { %5960 = vrsqrt.f32 %v3250_v11  ;;  %v3236_v40 = vmul.f32 0.0625, %v3208_v30  ;;  %v3237_v53 = vmul.f32 0.0625, %v3210_v21 }
 0xb55   : > { %5962 = vrsqrt.f32 %v3251_v35 }
 0xb56   : > { %v3252_v32 = vadd.f32 1e-05, %v3236_v40  ;;  %v3253_v39 = vadd.f32 1e-05, %v3237_v53 }
 0xb57   : > { %v3212_v46 = vpop.xlane.xlu1 %3211  ;;  %v3214_v38 = vpop.xlane.xlu0 %3213 }
 0xb58   : > { %5964 = vrsqrt.f32 %v3252_v32  ;;  %v3238_v44 = vmul.f32 0.0625, %v3212_v46  ;;  %v3239_v25 = vmul.f32 0.0625, %v3214_v38 }
 0xb59   : > { %5966 = vrsqrt.f32 %v3253_v39 }
 0xb5a   : > { %v3254_v4 = vadd.f32 1e-05, %v3238_v44  ;;  %v3255_v28 = vadd.f32 1e-05, %v3239_v25 }
 0xb5b   : > { %v3216_v41 = vpop.xlane.xlu1 %3215  ;;  %v3218_v51 = vpop.xlane.xlu0 %3217 }
 0xb5c   : > { %5968 = vrsqrt.f32 %v3254_v4  ;;  %v3240_v13 = vmul.f32 0.0625, %v3216_v41  ;;  %v3241_v26 = vmul.f32 0.0625, %v3218_v51 }
 0xb5d   : > { %v5959_v63 = vpop.eup %5958  ;;  %5970 = vrsqrt.f32 %v3255_v28 }
 0xb5e   : > { %v3281_v2 = vmul.f32 %v5959_v63, %v8454_v62  ;;  %v3256_v52 = vadd.f32 1e-05, %v3240_v13  ;;  %v3257_v1 = vadd.f32 1e-05, %v3241_v26 }
 0xb5f   : > { %v3220_v55 = vpop.xlane.xlu1 %3219  ;;  %v3222_v50 = vpop.xlane.xlu0 %3221 }
 0xb60   : > { %v3303_v24 = vmul.f32 %v8566_v0, %v3281_v2  ;;  %5972 = vrsqrt.f32 %v3256_v52  ;;  %v3242_v23 = vmul.f32 0.0625, %v3220_v55  ;;  %v3243_v34 = vmul.f32 0.0625, %v3222_v50 }
 0xb61   : > { %v5961_v12 = vpop.eup %5960  ;;  %5974 = vrsqrt.f32 %v3257_v1 }
 0xb62   : > { %v5963_v11 = vpop.eup %5962  ;;  %v3325_v35 = vadd.f32 %v8570_v5, %v3303_v24  ;;  %v3282_v30 = vmul.f32 %v5961_v12, %v8459_v42  ;;  %v3258_v21 = vadd.f32 1e-05, %v3242_v23  ;;  %v3259_v62 = vadd.f32 1e-05, %v3243_v34 }
 0xb63   : > { %v3283_v40 = vmul.f32 %v5963_v11, %v8462_v54  ;;  %v3224_v53 = vpop.xlane.xlu1 %3223  ;;  %v3226_v32 = vpop.xlane.xlu0 %3225 }
 0xb64   : > { %v3341_v39 = vmax.f32 %v3325_v35, 0.0  ;;  %v3304_v46 = vmul.f32 %v8566_v0, %v3282_v30  ;;  %5976 = vrsqrt.f32 %v3258_v21  ;;  %v3244_v38 = vmul.f32 0.0625, %v3224_v53 }
 0xb65   : > { %v5965_v44 = vpop.eup %5964  ;;  %v3305_v25 = vmul.f32 %v8566_v0, %v3283_v40  ;;  %5978 = vrsqrt.f32 %v3259_v62  ;;  %v3245_v4 = vmul.f32 0.0625, %v3226_v32 }
 0xb66   : > { %v5967_v28 = vpop.eup %5966  ;;  %3357 = vst [vmem:[#allocation2 + $0x2] sm:$0xff] %v3341_v39  ;;  %v3326_v42 = vadd.f32 %v8570_v5, %v3304_v46  ;;  %v3284_v41 = vmul.f32 %v5965_v44, %v8469_v58  ;;  %v3260_v51 = vadd.f32 1e-05, %v3244_v38 }
 0xb67   : > { %v3327_v54 = vadd.f32 %v8570_v5, %v3305_v25  ;;  %v3285_v13 = vmul.f32 %v5967_v28, %v8472_v27  ;;  %v3261_v26 = vadd.f32 1e-05, %v3245_v4  ;;  %v3228_v63 = vpop.xlane.xlu1 %3227  ;;  %v3230_v2 = vpop.xlane.xlu0 %3229 }
 0xb68   : > { %v3342_v52 = vmax.f32 %v3326_v42, 0.0  ;;  %v3306_v1 = vmul.f32 %v8566_v0, %v3284_v41  ;;  %5980 = vrsqrt.f32 %v3260_v51  ;;  %v3246_v55 = vmul.f32 0.0625, %v3228_v63  ;;  %v5815_v42 = vld [vmem:[%s7433_s26 + $0x170] sm:$0xff]  }
 0xb69   : > { %v5969_v50 = vpop.eup %5968  ;;  %v3343_v24 = vmax.f32 %v3327_v54, 0.0  ;;  %v3307_v23 = vmul.f32 %v8566_v0, %v3285_v13  ;;  %5982 = vrsqrt.f32 %v3261_v26  ;;  %v3247_v34 = vmul.f32 0.0625, %v3230_v2 }
 0xb6a   : > { %v5971_v58 = vpop.eup %5970  ;;  %3358 = vst [vmem:[#allocation2 + $0xa] sm:$0xff] %v3342_v52  ;;  %v3328_v12 = vadd.f32 %v8570_v5, %v3306_v1  ;;  %v3286_v27 = vmul.f32 %v5969_v50, %v8481_v59  ;;  %v3262_v11 = vadd.f32 1e-05, %v3246_v55  ;;  %v3446_v35 = vpack.c.bf16 %v3342_v52, %v3341_v39 }
 0xb6b   : > { %3359 = vst [vmem:[#allocation2 + $0x1a] sm:$0xff] %v3343_v24  ;;  %v3329_v30 = vadd.f32 %v8570_v5, %v3307_v23  ;;  %v3287_v21 = vmul.f32 %v5971_v58, %v8484_v61  ;;  %v3263_v62 = vadd.f32 1e-05, %v3247_v34  ;;  %v3232_v40 = vpop.xlane.xlu1 %3231  ;;  %v5816_v23 = vld [vmem:[%s7433_s26 + $0x168] sm:$0xff]  }
 0xb6c   : > { %v3344_v53 = vmax.f32 %v3328_v12, 0.0  ;;  %v3308_v32 = vmul.f32 %v8566_v0, %v3286_v27  ;;  %5984 = vrsqrt.f32 %v3262_v11  ;;  %v3248_v46 = vmul.f32 0.0625, %v3232_v40  ;;  %5348 = vmatprep.mubr.bf16.mxu0 %v3446_v35 }
 0xb6d   : > { %v5973_v38 = vpop.eup %5972  ;;  %v3345_v44 = vmax.f32 %v3329_v30, 0.0  ;;  %v3309_v59 = vmul.f32 %v8566_v0, %v3287_v21  ;;  %5986 = vrsqrt.f32 %v3263_v62  ;;  %v3373_v52 = vld [vmem:[#allocation2] sm:$0xff] }
 0xb6e   : > { %v5975_v39 = vpop.eup %5974  ;;  %3360 = vst [vmem:[#allocation2 + $0x22] sm:$0xff] %v3344_v53  ;;  %v3330_v25 = vadd.f32 %v8570_v5, %v3308_v32  ;;  %v3288_v61 = vmul.f32 %v5973_v38, %v8493_v3  ;;  %v3264_v4 = vadd.f32 1e-05, %v3248_v46  ;;  %v3447_v28 = vpack.c.bf16 %v3344_v53, %v3343_v24  ;;  %v5817_v32 = vld [vmem:[%s7433_s26 + $0x160] sm:$0xff]  }
 0xb6f   : > { %3361 = vst [vmem:[#allocation2 + $0x32] sm:$0xff] %v3345_v44  ;;  %v3331_v41 = vadd.f32 %v8570_v5, %v3309_v59  ;;  %v3289_v51 = vmul.f32 %v5975_v39, %v8496_v29 }
 0xb70   : > { %v3346_v54 = vmax.f32 %v3330_v25, 0.0  ;;  %v3310_v13 = vmul.f32 %v8566_v0, %v3288_v61  ;;  %5988 = vrsqrt.f32 %v3264_v4  ;;  %5349 = vmatmul.mubr.bf16.vlgmr.msra.gmra.mxu0 %v3447_v28 }
 0xb71   : > { %v5977_v26 = vpop.eup %5976  ;;  %v3347_v63 = vmax.f32 %v3331_v41, 0.0  ;;  %v3311_v2 = vmul.f32 %v8566_v0, %v3289_v51  ;;  %v3374_v3 = vld [vmem:[#allocation2 + $0x8] sm:$0xff]  ;;  %5397 = vmatpush3.bf16.msra.mxu0 %v8560_v45 }
 0xb72   : > { %v5979_v1 = vpop.eup %5978  ;;  %3362 = vst [vmem:[#allocation2 + $0x3a] sm:$0xff] %v3346_v54  ;;  %v3332_v55 = vadd.f32 %v8570_v5, %v3310_v13  ;;  %v3290_v29 = vmul.f32 %v5977_v26, %v8506_v8  ;;  %v3406_v50 = vpack.c.bf16 %v3374_v3, %v3373_v52  ;;  %5398 = vmatprep.subr.bf16.mxu0 %v5815_v42  ;;  %v3375_v8 = vld [vmem:[#allocation2 + $0x18] sm:$0xff] }
 0xb73   : > { %v3448_v24 = vpack.c.bf16 %v3346_v54, %v3345_v44  ;;  %3363 = vst [vmem:[#allocation2 + $0x4a] sm:$0xff] %v3347_v63  ;;  %v3333_v34 = vadd.f32 %v8570_v5, %v3311_v2  ;;  %v3291_v58 = vmul.f32 %v5979_v1, %v8509_v19  ;;  %v5818_v54 = vld [vmem:[%s7433_s26 + $0x158] sm:$0xff]  }
 0xb74   : > { %v3348_v12 = vmax.f32 %v3332_v55, 0.0  ;;  %v3312_v27 = vmul.f32 %v8566_v0, %v3290_v29  ;;  %5380 = vmatprep.mubr.bf16.mxu1 %v3406_v50 }
 0xb75   : > { %5352 = vmatprep.mubr.bf16.mxu0 %v3448_v24  ;;  %v5981_v45 = vpop.eup %5980  ;;  %v3349_v11 = vmax.f32 %v3333_v34, 0.0  ;;  %v3313_v35 = vmul.f32 %v8566_v0, %v3291_v58  ;;  %v3376_v30 = vld [vmem:[#allocation2 + $0x20] sm:$0xff]  ;;  %5399 = vmatpush3.bf16.msra.mxu0 %v5815_v42 }
 0xb76   : > { %v5983_v21 = vpop.eup %5982  ;;  %3364 = vst [vmem:[#allocation2 + $0x52] sm:$0xff] %v3348_v12  ;;  %v3334_v62 = vadd.f32 %v8570_v5, %v3312_v27  ;;  %v3292_v40 = vmul.f32 %v5981_v45, %v8519_v60  ;;  %v3407_v19 = vpack.c.bf16 %v3376_v30, %v3375_v8  ;;  %5400 = vmatprep.subr.bf16.mxu0 %v5816_v23  ;;  %v3377_v60 = vld [vmem:[#allocation2 + $0x30] sm:$0xff] }
 0xb77   : > { %v3449_v53 = vpack.c.bf16 %v3348_v12, %v3347_v63  ;;  %3365 = vst [vmem:[#allocation2 + $0x62] sm:$0xff] %v3349_v11  ;;  %v3335_v46 = vadd.f32 %v8570_v5, %v3313_v35  ;;  %v3293_v38 = vmul.f32 %v5983_v21, %v8522_v6  ;;  %v5820_v30 = vld [vmem:[%s7433_s26 + $0x148] sm:$0xff]  }
 0xb78   : > { %v3350_v44 = vmax.f32 %v3334_v62, 0.0  ;;  %v3314_v59 = vmul.f32 %v8566_v0, %v3292_v40  ;;  %5381 = vmatmul.mubr.bf16.vlgmr.msra.gmra.mxu1 %v3407_v19  ;;  %v3744_v62 = vld [vmem:[#allocation2 + $0x4] sm:$0xff] }
 0xb79   : > { %5353 = vmatmul.mubr.bf16.gmra.mxu0 %v3449_v53  ;;  %v5985_v39 = vpop.eup %5984  ;;  %v3351_v25 = vmax.f32 %v3335_v46, 0.0  ;;  %v3315_v61 = vmul.f32 %v8566_v0, %v3293_v38  ;;  %v3378_v4 = vld [vmem:[#allocation2 + $0x38] sm:$0xff]  ;;  %v5821_v46 = vld [vmem:[%s7433_s26 + $0x140] sm:$0xff]  }
 0xb7a   : > { %5401 = vmatpush3.bf16.msra.mxu0 %v5816_v23  ;;  %v5987_v28 = vpop.eup %5986  ;;  %3366 = vst [vmem:[#allocation2 + $0x6a] sm:$0xff] %v3350_v44  ;;  %v3336_v42 = vadd.f32 %v8570_v5, %v3314_v59  ;;  %v3294_v41 = vmul.f32 %v5985_v39, %v8533_v15  ;;  %v3408_v6 = vpack.c.bf16 %v3378_v4, %v3377_v60  ;;  %v3379_v15 = vld [vmem:[#allocation2 + $0x48] sm:$0xff]  ;;  %v5819_v23 = vld [vmem:[%s7433_s26 + $0x150] sm:$0xff]   ;;  %s8926_s26 = scalar_lea.hbm %s9298_s14, %s4979_s2 }
 0xb7b   : > { %5402 = vmatprep.subr.bf16.mxu0 %v5817_v32  ;;  %v3450_v51 = vpack.c.bf16 %v3350_v44, %v3349_v11  ;;  %3367 = vst [vmem:[#allocation2 + $0x7a] sm:$0xff] %v3351_v25  ;;  %v3337_v13 = vadd.f32 %v8570_v5, %v3315_v61  ;;  %v3295_v26 = vmul.f32 %v5987_v28, %v8536_v20  ;;  %v3746_v39 = vld [vmem:[#allocation2 + $0x1c] sm:$0xff]  ;;  %v3748_v61 = vld [vmem:[#allocation2 + $0x34] sm:$0xff] }
 0xb7c   : > { %v3352_v63 = vmax.f32 %v3336_v42, 0.0  ;;  %v3316_v2 = vmul.f32 %v8566_v0, %v3294_v41  ;;  %5384 = vmatprep.mubr.bf16.mxu1 %v3408_v6  ;;  %v3749_v60 = vld [vmem:[#allocation2 + $0x3c] sm:$0xff] }
 0xb7d   : > { %5356 = vmatprep.mubr.bf16.mxu0 %v3450_v51  ;;  %v5989_v52 = vpop.eup %5988  ;;  %v3353_v3 = vmax.f32 %v3337_v13, 0.0  ;;  %v3317_v1 = vmul.f32 %v8566_v0, %v3295_v26  ;;  %v3380_v55 = vld [vmem:[#allocation2 + $0x50] sm:$0xff]  ;;  %v3778_v6 = vpack.c.bf16 %v3749_v60, %v3748_v61 }
 0xb7e   : > { %5403 = vmatpush3.bf16.msra.mxu0 %v5817_v32  ;;  %3368 = vst [vmem:[#allocation2 + $0x82] sm:$0xff] %v3352_v63  ;;  %v3338_v29 = vadd.f32 %v8570_v5, %v3316_v2  ;;  %v3296_v50 = vmul.f32 %v5989_v52, %v8546_v18  ;;  %v3409_v24 = vpack.c.bf16 %v3380_v55, %v3379_v15  ;;  %v3381_v45 = vld [vmem:[#allocation2 + $0x60] sm:$0xff]  ;;  %v3750_v51 = vld [vmem:[#allocation2 + $0x4c] sm:$0xff] }
 0xb7f   : > { %5404 = vmatprep.subr.bf16.mxu0 %v5818_v54  ;;  %v3451_v20 = vpack.c.bf16 %v3352_v63, %v3351_v25  ;;  %3369 = vst [vmem:[#allocation2 + $0x92] sm:$0xff] %v3353_v3  ;;  %v3339_v34 = vadd.f32 %v8570_v5, %v3317_v1  ;;  %v3747_v25 = vld [vmem:[#allocation2 + $0x24] sm:$0xff] }
 0xb80   : > { %v3354_v58 = vmax.f32 %v3338_v29, 0.0  ;;  %v3318_v12 = vmul.f32 %v8566_v0, %v3296_v50  ;;  %5385 = vmatmul.mubr.bf16.gmra.mxu1 %v3409_v24  ;;  %v3745_v0 = vld [vmem:[#allocation2 + $0xc] sm:$0xff]  ;;  %v3777_v41 = vpack.c.bf16 %v3747_v25, %v3746_v39 }
 0xb81   : > { %5357 = vmatmul.mubr.bf16.gmra.mxu0 %v3451_v20  ;;  %v3355_v27 = vmax.f32 %v3339_v34, 0.0  ;;  %v3382_v11 = vld [vmem:[#allocation2 + $0x68] sm:$0xff] }
 0xb82   : > { %5405 = vmatpush3.bf16.msra.mxu0 %v5818_v54  ;;  %3370 = vst [vmem:[#allocation2 + $0x9a] sm:$0xff] %v3354_v58  ;;  %v3340_v18 = vadd.f32 %v8570_v5, %v3318_v12  ;;  %v3410_v35 = vpack.c.bf16 %v3382_v11, %v3381_v45  ;;  %v3452_v8 = vpack.c.bf16 %v3354_v58, %v3353_v3  ;;  %v3383_v40 = vld [vmem:[#allocation2 + $0x78] sm:$0xff]  ;;  %v3752_v13 = vld [vmem:[#allocation2 + $0x64] sm:$0xff]  ;;  %v3753_v26 = vld [vmem:[#allocation2 + $0x6c] sm:$0xff] }
 0xb83   : > { %5406 = vmatprep.subr.bf16.mxu0 %v5819_v23  ;;  %3371 = vst [vmem:[#allocation2 + $0xaa] sm:$0xff] %v3355_v27  ;;  %v3776_v5 = vpack.c.bf16 %v3745_v0, %v3744_v62  ;;  %v3751_v54 = vld [vmem:[#allocation2 + $0x54] sm:$0xff]  ;;  %v3780_v2 = vpack.c.bf16 %v3753_v26, %v3752_v13 }
 0xb84   : > { %v3356_v21 = vmax.f32 %v3340_v18, 0.0  ;;  %5388 = vmatprep.mubr.bf16.mxu1 %v3410_v35  ;;  %5360 = vmatprep.mubr.bf16.mxu0 %v3452_v8  ;;  %v3779_v63 = vpack.c.bf16 %v3751_v54, %v3750_v51 }
 0xb85   : > { %v3384_v19 = vld [vmem:[#allocation2 + $0x80] sm:$0xff] }
 0xb86   : > { %5407 = vmatpush3.bf16.msra.mxu0 %v5819_v23  ;;  %3372 = vst [vmem:[#allocation2 + $0xb2] sm:$0xff] %v3356_v21  ;;  %v3411_v53 = vpack.c.bf16 %v3384_v19, %v3383_v40  ;;  %v3453_v32 = vpack.c.bf16 %v3356_v21, %v3355_v27  ;;  %v3385_v38 = vld [vmem:[#allocation2 + $0x90] sm:$0xff]  ;;  %v3754_v52 = vld [vmem:[#allocation2 + $0x7c] sm:$0xff]  ;;  %v3755_v3 = vld [vmem:[#allocation2 + $0x84] sm:$0xff] }
 0xb87   : > { %5408 = vmatprep.subr.bf16.mxu0 %v5820_v30  ;;  %v3781_v55 = vpack.c.bf16 %v3755_v3, %v3754_v52 }
 0xb88   : > { %5389 = vmatmul.mubr.bf16.gmra.mxu1 %v3411_v53 }
 0xb89   : > { %5361 = vmatmul.mubr.bf16.gmra.mxu0 %v3453_v32  ;;  %v3386_v44 = vld [vmem:[#allocation2 + $0x98] sm:$0xff] }
 0xb8a   : > { %5409 = vmatpush3.bf16.msra.mxu0 %v5820_v30  ;;  %5412 = vmatprep.mubr.bf16.mxu0 %v3776_v5  ;;  %v3412_v59 = vpack.c.bf16 %v3386_v44, %v3385_v38  ;;  %v3387_v4 = vld [vmem:[#allocation2 + $0xa8] sm:$0xff]  ;;  %v3756_v1 = vld [vmem:[#allocation2 + $0x94] sm:$0xff]  ;;  %v3757_v15 = vld [vmem:[#allocation2 + $0x9c] sm:$0xff] }
 0xb8b   : > { %5410 = vmatprep.subr.bf16.mxu0 %v5821_v46  ;;  %v3782_v29 = vpack.c.bf16 %v3757_v15, %v3756_v1 }
 0xb8c   : > { %5392 = vmatprep.mubr.bf16.mxu1 %v3412_v59 }
 0xb8d   : > { %v3388_v28 = vld [vmem:[#allocation2 + $0xb0] sm:$0xff] }
 0xb8e   : > { %5411 = vmatpush3.bf16.msra.mxu0 %v5821_v46  ;;  %v3413_v42 = vpack.c.bf16 %v3388_v28, %v3387_v4  ;;  %v3758_v50 = vld [vmem:[#allocation2 + $0xac] sm:$0xff]  ;;  %v3759_v24 = vld [vmem:[#allocation2 + $0xb4] sm:$0xff] }
 0xb8f   : > { %v3783_v20 = vpack.c.bf16 %v3759_v24, %v3758_v50 }
 0xb90   : > { %5393 = vmatmul.mubr.bf16.gmra.mxu1 %v3413_v42 }
 0xb91   : > { %5413 = vmatmul.mubr.bf16.vlgmr.msra.gmra.mxu0 %v3777_v41 }
 0xb92   : > { %5416 = vmatprep.mubr.bf16.mxu0 %v3778_v6  ;;  %v8638_v6 = vld [vmem:[%s7937_s11 + $0x1] ss:$0 sm:$0xff] }
 0xb99   : > { %5417 = vmatmul.mubr.bf16.gmra.mxu0 %v3779_v63 }
 0xb9a   : > { %5420 = vmatprep.mubr.bf16.mxu0 %v3780_v2 }
 0xba1   : > { %5421 = vmatmul.mubr.bf16.gmra.mxu0 %v3781_v55 }
 0xba2   : > { %5424 = vmatprep.mubr.bf16.mxu0 %v3782_v29 }
 0xba9   : > { %5425 = vmatmul.mubr.bf16.gmra.mxu0 %v3783_v20 }
 0xc30   : > { %v5350_v23 = vpop.f32.mrf.mxu0 }
 0xc32   : > { %v3536_v34 = vpop.f32.mrf.mxu0 }
 0xc34   : > { %v5351_v58 = vpop.f32.mrf.mxu0 }
 0xc36   : > { %v3539_v12 = vpop.f32.mrf.mxu0 }
 0xc38   : > { %v5382_v27 = vpop.f32.mrf.mxu1 }
 0xc39   : > { %v5354_v45 = vpop.f32.mrf.mxu0  ;;  %v3690_v42 = vadd.f32 %v5382_v27, %v5350_v23 }
 0xc3a   : > { %v3681_v11 = vpop.f32.mrf.mxu1 }
 0xc3b   : > { %v3552_v18 = vpop.f32.mrf.mxu0  ;;  %v3682_v60 = vadd.f32 %v3681_v11, %v3536_v34 }
 0xc3c   : > { %v5383_v35 = vpop.f32.mrf.mxu1 }
 0xc3d   : > { %v5355_v8 = vpop.f32.mrf.mxu0  ;;  %v3693_v52 = vadd.f32 %v5383_v35, %v5351_v58 }
 0xc3e   : > { %v3684_v30 = vpop.f32.mrf.mxu1 }
 0xc3f   : > { %v3555_v21 = vpop.f32.mrf.mxu0  ;;  %v3685_v54 = vadd.f32 %v3684_v30, %v3539_v12 }
 0xc40   : > { %v5386_v62 = vpop.f32.mrf.mxu1 }
 0xc41   : > { %v5358_v0 = vpop.f32.mrf.mxu0  ;;  %v3706_v23 = vadd.f32 %v5386_v62, %v5354_v45 }
 0xc42   : > { %v3697_v40 = vpop.f32.mrf.mxu1 }
 0xc43   : > { %v3568_v19 = vpop.f32.mrf.mxu0  ;;  %v3698_v15 = vadd.f32 %v3697_v40, %v3552_v18 }
 0xc44   : > { %v5387_v32 = vpop.f32.mrf.mxu1 }
 0xc45   : > { %v8627_v53 = vpop.f32.mrf.mxu0  ;;  %v3709_v40 = vadd.f32 %v5387_v32, %v5355_v8 }
 0xc46   : > { %v3700_v38 = vpop.f32.mrf.mxu1 }
 0xc47   : > { %v3571_v46 = vpop.f32.mrf.mxu0  ;;  %v3701_v12 = vadd.f32 %v3700_v38, %v3555_v21 }
 0xc48   : > { %v5390_v39 = vpop.f32.mrf.mxu1 }
 0xc49   : > { %v8629_v5 = vpop.f32.mrf.mxu0 }
 0xc4a   : > { %v3713_v4 = vpop.f32.mrf.mxu1 }
 0xc4b   : > { %v8631_v44 = vpop.f32.mrf.mxu0  ;;  %v3714_v62 = vadd.f32 %v3713_v4, %v3568_v19 }
 0xc4c   : > { %v5391_v63 = vpop.f32.mrf.mxu1 }
 0xc4d   : > { %v8633_v59 = vpop.f32.mrf.mxu0 }
 0xc4e   : > { %v3716_v24 = vpop.f32.mrf.mxu1 }
 0xc4f   : > { %v8635_v25 = vpop.f32.mrf.mxu0  ;;  %v3717_v32 = vadd.f32 %v3716_v24, %v3571_v46 }
 0xc50   : > { %v5394_v35 = vpop.f32.mrf.mxu1 }
 0xc51   : > { %v5414_v61 = vpop.f32.mrf.mxu0 }
 0xc52   : > { %v3931_v13 = vadd.f32 %v5414_v61, %v3690_v42 }
 0xc53   : > { %v3866_v28 = vpop.f32.mrf.mxu0 }
 0xc54   : > { %v3929_v41 = vadd.f32 %v3866_v28, %v3682_v60  ;;  %v8645_v55 = vadd.f32 %v8638_v6, %v3931_v13  ;;  %v3729_v28 = vpop.f32.mrf.mxu1 }
 0xc55   : > { %v5415_v51 = vpop.f32.mrf.mxu0 }
 0xc56   : > { %v8641_v26 = vadd.f32 %v8638_v6, %v3929_v41  ;;  %v3932_v29 = vadd.f32 %v5415_v51, %v3693_v52  ;;  %v3722_v41 = vadd.f32 %v5390_v39, %v5358_v0  ;;  %v5395_v13 = vpop.f32.mrf.mxu1  ;;  %v3725_v52 = vadd.f32 %v5391_v63, %v8627_v53 }
 0xc57   : > { %v3869_v2 = vpop.f32.mrf.mxu0  ;;  %v3730_v39 = vadd.f32 %v3729_v28, %v8631_v44 }
 0xc58   : > { %v3930_v3 = vadd.f32 %v3869_v2, %v3685_v54  ;;  %3973 = vadd.xlane.f32.xlu0 %v8641_v26  ;;  %v8653_v27 = vadd.f32 %v8638_v6, %v3932_v29  ;;  %v3732_v29 = vpop.f32.mrf.mxu1 }
 0xc59   : > { %v5418_v1 = vpop.f32.mrf.mxu0 }
 0xc5a   : > { %v8648_v50 = vadd.f32 %v8638_v6, %v3930_v3  ;;  %v3935_v11 = vadd.f32 %v5418_v1, %v3706_v23  ;;  %v3733_v23 = vadd.f32 %v3732_v29, %v8635_v25 }
 0xc5b   : > { %v3882_v20 = vpop.f32.mrf.mxu0 }
 0xc5c   : > { %v3933_v34 = vadd.f32 %v3882_v20, %v3698_v15  ;;  %3977 = vadd.xlane.f32.xlu0 %v8645_v55  ;;  %3975 = vadd.xlane.f32.xlu1 %v8648_v50  ;;  %v8661_v60 = vadd.f32 %v8638_v6, %v3935_v11  ;;  %v3738_v20 = vadd.f32 %v5394_v35, %v8629_v5 }
 0xc5d   : > { %v5419_v58 = vpop.f32.mrf.mxu0  ;;  %v3741_v11 = vadd.f32 %v5395_v13, %v8633_v59 }
 0xc5e   : > { %v8656_v18 = vadd.f32 %v8638_v6, %v3933_v34  ;;  %v3936_v21 = vadd.f32 %v5419_v58, %v3709_v40 }
 0xc5f   : > { %v3885_v30 = vpop.f32.mrf.mxu0 }
 0xc60   : > { %v3934_v61 = vadd.f32 %v3885_v30, %v3701_v12  ;;  %3979 = vadd.xlane.f32.xlu1 %v8653_v27  ;;  %3981 = vadd.xlane.f32.xlu0 %v8656_v18  ;;  %v8669_v54 = vadd.f32 %v8638_v6, %v3936_v21 }
 0xc61   : > { %v5422_v45 = vpop.f32.mrf.mxu0 }
 0xc62   : > { %v8664_v38 = vadd.f32 %v8638_v6, %v3934_v61  ;;  %v3939_v19 = vadd.f32 %v5422_v45, %v3722_v41 }
 0xc63   : > { %v3898_v42 = vpop.f32.mrf.mxu0 }
 0xc64   : > { %v3937_v51 = vadd.f32 %v3898_v42, %v3714_v62  ;;  %3985 = vadd.xlane.f32.xlu0 %v8661_v60  ;;  %3983 = vadd.xlane.f32.xlu1 %v8664_v38  ;;  %v8679_v46 = vadd.f32 %v8638_v6, %v3939_v19 }
 0xc65   : > { %v5423_v8 = vpop.f32.mrf.mxu0 }
 0xc66   : > { %v8672_v4 = vadd.f32 %v8638_v6, %v3937_v51  ;;  %v3940_v1 = vadd.f32 %v5423_v8, %v3725_v52 }
 0xc67   : > { %v3901_v2 = vpop.f32.mrf.mxu0 }
 0xc68   : > { %v3938_v3 = vadd.f32 %v3901_v2, %v3717_v32  ;;  %3987 = vadd.xlane.f32.xlu1 %v8669_v54  ;;  %3989 = vadd.xlane.f32.xlu0 %v8672_v4  ;;  %v8689_v44 = vadd.f32 %v8638_v6, %v3940_v1 }
 0xc69   : > { %v5426_v0 = vpop.f32.mrf.mxu0 }
 0xc6a   : > { %v8682_v15 = vadd.f32 %v8638_v6, %v3938_v3  ;;  %v3943_v34 = vadd.f32 %v5426_v0, %v3738_v20 }
 0xc6b   : > { %v3914_v24 = vpop.f32.mrf.mxu0 }
 0xc6c   : > { %v3941_v53 = vadd.f32 %v3914_v24, %v3730_v39  ;;  %3993 = vadd.xlane.f32.xlu0 %v8679_v46  ;;  %3991 = vadd.xlane.f32.xlu1 %v8682_v15  ;;  %v8698_v5 = vadd.f32 %v8638_v6, %v3943_v34 }
 0xc6d   : > { %v5427_v63 = vpop.f32.mrf.mxu0 }
 0xc6e   : > { %v8692_v58 = vadd.f32 %v8638_v6, %v3941_v53  ;;  %v3944_v35 = vadd.f32 %v5427_v63, %v3741_v11 }
 0xc6f   : > { %v3917_v12 = vpop.f32.mrf.mxu0 }
 0xc70   : > { %v3942_v30 = vadd.f32 %v3917_v12, %v3733_v23  ;;  %3995 = vadd.xlane.f32.xlu1 %v8689_v44  ;;  %3997 = vadd.xlane.f32.xlu0 %v8692_v58  ;;  %v8706_v40 = vadd.f32 %v8638_v6, %v3944_v35 }
 0xc72   : > { %v8701_v25 = vadd.f32 %v8638_v6, %v3942_v30 }
 0xc74   : > { %3999 = vadd.xlane.f32.xlu1 %v8701_v25  ;;  %4001 = vadd.xlane.f32.xlu0 %v8698_v5 }
 0xc78   : > { %4003 = vadd.xlane.f32.xlu1 %v8706_v40 }
 0xce1   : > { %v3974_v59 = vpop.xlane.xlu0 %3973 }
 0xce2   : > { %v4005_v61 = vmul.f32 0.0625, %v3974_v59 }
 0xce4   : > { %v4021_v45 = vsub.f32 %v8641_v26, %v4005_v61 }
 0xce5   : > { %v3978_v62 = vpop.xlane.xlu0 %3977  ;;  %v3976_v21 = vpop.xlane.xlu1 %3975 }
 0xce6   : > { %v8711_v28 = vmul.f32 %v7516_v17, %v4021_v45  ;;  %v4007_v42 = vmul.f32 0.0625, %v3978_v62  ;;  %v4006_v41 = vmul.f32 0.0625, %v3976_v21 }
 0xce8   : > { %v4023_v51 = vsub.f32 %v8645_v55, %v4007_v42  ;;  %v4022_v8 = vsub.f32 %v8648_v50, %v4006_v41  ;;  %v4053_v6 = vmul.f32 %v8711_v28, %v8711_v28 }
 0xce9   : > { %v3980_v32 = vpop.xlane.xlu1 %3979  ;;  %v3982_v19 = vpop.xlane.xlu0 %3981 }
 0xcea   : > { %v8718_v13 = vmul.f32 %v7516_v17, %v4023_v51  ;;  %v8721_v26 = vmul.f32 %v7516_v17, %v4022_v8  ;;  %v4008_v2 = vmul.f32 0.0625, %v3980_v32  ;;  %v4009_v52 = vmul.f32 0.0625, %v3982_v19  ;;  %4069 = vadd.xlane.f32.xlu0 %v4053_v6 }
 0xcec   : > { %v4024_v3 = vsub.f32 %v8653_v27, %v4008_v2  ;;  %v4025_v55 = vsub.f32 %v8656_v18, %v4009_v52  ;;  %v4054_v50 = vmul.f32 %v8721_v26, %v8721_v26  ;;  %v4055_v0 = vmul.f32 %v8718_v13, %v8718_v13 }
 0xced   : > { %v3986_v39 = vpop.xlane.xlu0 %3985  ;;  %v3984_v1 = vpop.xlane.xlu1 %3983 }
 0xcee   : > { %v8730_v29 = vmul.f32 %v7516_v17, %v4024_v3  ;;  %v8733_v24 = vmul.f32 %v7516_v17, %v4025_v55  ;;  %v4011_v20 = vmul.f32 0.0625, %v3986_v39  ;;  %v4010_v53 = vmul.f32 0.0625, %v3984_v1  ;;  %4071 = vadd.xlane.f32.xlu1 %v4054_v50  ;;  %4073 = vadd.xlane.f32.xlu0 %v4055_v0 }
 0xcf0   : > { %v4027_v27 = vsub.f32 %v8661_v60, %v4011_v20  ;;  %v4026_v18 = vsub.f32 %v8664_v38, %v4010_v53  ;;  %v4056_v63 = vmul.f32 %v8730_v29, %v8730_v29  ;;  %v4057_v23 = vmul.f32 %v8733_v24, %v8733_v24 }
 0xcf1   : > { %v3988_v34 = vpop.xlane.xlu1 %3987  ;;  %v3990_v12 = vpop.xlane.xlu0 %3989 }
 0xcf2   : > { %v8742_v11 = vmul.f32 %v7516_v17, %v4027_v27  ;;  %v8745_v30 = vmul.f32 %v7516_v17, %v4026_v18  ;;  %v4012_v35 = vmul.f32 0.0625, %v3988_v34  ;;  %v4013_v59 = vmul.f32 0.0625, %v3990_v12  ;;  %4075 = vadd.xlane.f32.xlu1 %v4056_v63  ;;  %4077 = vadd.xlane.f32.xlu0 %v4057_v23 }
 0xcf4   : > { %v4028_v60 = vsub.f32 %v8669_v54, %v4012_v35  ;;  %v4029_v38 = vsub.f32 %v8672_v4, %v4013_v59  ;;  %v4058_v61 = vmul.f32 %v8745_v30, %v8745_v30  ;;  %v4059_v45 = vmul.f32 %v8742_v11, %v8742_v11  ;;  %v5822_v54 = vld [vmem:[%s7448_s0 + $0x78] sm:$0xff]  }
 0xcf5   : > { %v3994_v62 = vpop.xlane.xlu0 %3993  ;;  %v3992_v21 = vpop.xlane.xlu1 %3991  ;;  %5428 = vmatprep.subr.bf16.mxu1 %v5822_v54 }
 0xcf6   : > { %v8754_v42 = vmul.f32 %v7516_v17, %v4028_v60  ;;  %v8757_v41 = vmul.f32 %v7516_v17, %v4029_v38  ;;  %v4015_v51 = vmul.f32 0.0625, %v3994_v62  ;;  %v4014_v8 = vmul.f32 0.0625, %v3992_v21  ;;  %4079 = vadd.xlane.f32.xlu1 %v4058_v61  ;;  %4081 = vadd.xlane.f32.xlu0 %v4059_v45 }
 0xcf7   : > { %5429 = vmatpush3.bf16.msra.mxu1 %v5822_v54 }
 0xcf8   : > { %v4031_v4 = vsub.f32 %v8679_v46, %v4015_v51  ;;  %v4030_v6 = vsub.f32 %v8682_v15, %v4014_v8  ;;  %v4060_v32 = vmul.f32 %v8754_v42, %v8754_v42  ;;  %v4061_v19 = vmul.f32 %v8757_v41, %v8757_v41  ;;  %v5823_v46 = vld [vmem:[%s7448_s0 + $0x70] sm:$0xff]   ;;  %v5826_v8 = vld [vmem:[%s7448_s0 + $0x58] sm:$0xff]  }
 0xcf9   : > { %v3996_v2 = vpop.xlane.xlu1 %3995  ;;  %v3998_v52 = vpop.xlane.xlu0 %3997  ;;  %5430 = vmatprep.subr.bf16.mxu1 %v5823_v46 }
 0xcfa   : > { %v8767_v3 = vmul.f32 %v7516_v17, %v4031_v4  ;;  %v8770_v55 = vmul.f32 %v7516_v17, %v4030_v6  ;;  %v4016_v50 = vmul.f32 0.0625, %v3996_v2  ;;  %v4017_v0 = vmul.f32 0.0625, %v3998_v52  ;;  %4083 = vadd.xlane.f32.xlu1 %v4060_v32  ;;  %4085 = vadd.xlane.f32.xlu0 %v4061_v19  ;;  %v5828_v4 = vld [vmem:[%s7448_s0 + $0x48] sm:$0xff]   ;;  %v5829_v6 = vld [vmem:[%s7448_s0 + $0x40] sm:$0xff]  }
 0xcfb   : > { %5431 = vmatpush3.bf16.msra.mxu1 %v5823_v46 }
 0xcfc   : > { %v4032_v15 = vsub.f32 %v8689_v44, %v4016_v50  ;;  %v4033_v39 = vsub.f32 %v8692_v58, %v4017_v0  ;;  %v4062_v1 = vmul.f32 %v8770_v55, %v8770_v55  ;;  %v4063_v20 = vmul.f32 %v8767_v3, %v8767_v3  ;;  %v5824_v44 = vld [vmem:[%s7448_s0 + $0x68] sm:$0xff]  }
 0xcfd   : > { %v4000_v53 = vpop.xlane.xlu1 %3999  ;;  %v4002_v27 = vpop.xlane.xlu0 %4001  ;;  %5432 = vmatprep.subr.bf16.mxu1 %v5824_v44 }
 0xcfe   : > { %v8780_v18 = vmul.f32 %v7516_v17, %v4032_v15  ;;  %v8783_v63 = vmul.f32 %v7516_v17, %v4033_v39  ;;  %v4018_v23 = vmul.f32 0.0625, %v4000_v53  ;;  %v4019_v34 = vmul.f32 0.0625, %v4002_v27  ;;  %4087 = vadd.xlane.f32.xlu1 %v4062_v1  ;;  %4089 = vadd.xlane.f32.xlu0 %v4063_v20 }
 0xcff   : > { %5433 = vmatpush3.bf16.msra.mxu1 %v5824_v44 }
 0xd00   : > { %v4034_v58 = vsub.f32 %v8701_v25, %v4018_v23  ;;  %v4035_v12 = vsub.f32 %v8698_v5, %v4019_v34  ;;  %v4064_v35 = vmul.f32 %v8780_v18, %v8780_v18  ;;  %v4065_v59 = vmul.f32 %v8783_v63, %v8783_v63  ;;  %v5825_v5 = vld [vmem:[%s7448_s0 + $0x60] sm:$0xff]  }
 0xd01   : > { %v4004_v60 = vpop.xlane.xlu1 %4003  ;;  %5434 = vmatprep.subr.bf16.mxu1 %v5825_v5 }
 0xd02   : > { %v8793_v38 = vmul.f32 %v7516_v17, %v4034_v58  ;;  %v8796_v61 = vmul.f32 %v7516_v17, %v4035_v12  ;;  %v4020_v45 = vmul.f32 0.0625, %v4004_v60  ;;  %4091 = vadd.xlane.f32.xlu1 %v4064_v35  ;;  %4093 = vadd.xlane.f32.xlu0 %v4065_v59 }
 0xd03   : > { %5435 = vmatpush3.bf16.msra.mxu1 %v5825_v5 }
 0xd04   : > { %v4036_v25 = vsub.f32 %v8706_v40, %v4020_v45  ;;  %v4066_v62 = vmul.f32 %v8793_v38, %v8793_v38  ;;  %v4067_v21 = vmul.f32 %v8796_v61, %v8796_v61  ;;  %5436 = vmatprep.subr.bf16.mxu1 %v5826_v8  ;;  %v5827_v40 = vld [vmem:[%s7448_s0 + $0x50] sm:$0xff]  }
 0xd06   : > { %v8805_v51 = vmul.f32 %v7516_v17, %v4036_v25  ;;  %4095 = vadd.xlane.f32.xlu1 %v4066_v62  ;;  %4097 = vadd.xlane.f32.xlu0 %v4067_v21  ;;  %v8815_v21 = vld [vmem:[%s726_s18 + $0x1] ss:$0 sm:$0xff]  ;;  %s6550_s18 = smov [#allocation19]  }
 0xd07   : > { %5437 = vmatpush3.bf16.msra.mxu1 %v5826_v8  ;;  %s6274_s0 = sshll.u32 %s6550_s18, 4  ;;  %s6275_s0 = int_to_ptr.vmem [resolvable:$false] %s6274_s0 }
 0xd08   : > { %v4068_v54 = vmul.f32 %v8805_v51, %v8805_v51  ;;  %5438 = vmatprep.subr.bf16.mxu1 %v5827_v40  ;;  %s6276_s24 = scalar_lea.vmem %s6275_s0, 4096  ;;  %p6277_p1 = scmp.lt.s32.totalorder %s8928_s6, %s6275_s0 }
 0xd09   : > { %p6278_p10 = scmp.lt.s32.totalorder %s6276_s24, %s6270_s17 }
 0xd0a   : > { %4099 = vadd.xlane.f32.xlu1 %v4068_v54 }
 0xd0b   : > { %5439 = vmatpush3.bf16.msra.mxu1 %v5827_v40  ;;  %p6279_p6 = por %p6278_p10, %p6277_p1 }
 0xd0c   : > { %5440 = vmatprep.subr.bf16.mxu1 %v5828_v4 }
 0xd0d   : > { %p6280_p5 = pnand %p6279_p6, %p6273_p8 }
 0xd0f   : > { %5441 = vmatpush3.bf16.msra.mxu1 %v5828_v4 }
 0xd10   : > { %5442 = vmatprep.subr.bf16.mxu1 %v5829_v6 }
 0xd13   : > { %5443 = vmatpush3.bf16.msra.mxu1 %v5829_v6 }
 0xd73   : > { %v4070_v17 = vpop.xlane.xlu0 %4069 }
 0xd74   : > { %v4101_v32 = vmul.f32 0.0625, %v4070_v17 }
 0xd76   : > { %v4117_v19 = vadd.f32 1e-05, %v4101_v32 }
 0xd77   : > { %v4072_v2 = vpop.xlane.xlu1 %4071  ;;  %v4074_v52 = vpop.xlane.xlu0 %4073 }
 0xd78   : > { %5990 = vrsqrt.f32 %v4117_v19  ;;  %v4102_v50 = vmul.f32 0.0625, %v4072_v2  ;;  %v4103_v0 = vmul.f32 0.0625, %v4074_v52  ;;  %v8819_v19 = vld [vmem:[%s8119_s1 + $0x1] ss:$0 sm:$0xff] }
 0xd7a   : > { %v4118_v46 = vadd.f32 1e-05, %v4102_v50  ;;  %v4119_v15 = vadd.f32 1e-05, %v4103_v0 }
 0xd7b   : > { %v4076_v39 = vpop.xlane.xlu1 %4075  ;;  %v4078_v1 = vpop.xlane.xlu0 %4077 }
 0xd7c   : > { %5992 = vrsqrt.f32 %v4118_v46  ;;  %v4104_v20 = vmul.f32 0.0625, %v4076_v39  ;;  %v4105_v53 = vmul.f32 0.0625, %v4078_v1 }
 0xd7d   : > { %5994 = vrsqrt.f32 %v4119_v15 }
 0xd7e   : > { %v4120_v27 = vadd.f32 1e-05, %v4104_v20  ;;  %v4121_v23 = vadd.f32 1e-05, %v4105_v53 }
 0xd7f   : > { %v4080_v34 = vpop.xlane.xlu1 %4079  ;;  %v4082_v44 = vpop.xlane.xlu0 %4081 }
 0xd80   : > { %5996 = vrsqrt.f32 %v4120_v27  ;;  %v4106_v58 = vmul.f32 0.0625, %v4080_v34  ;;  %v4107_v12 = vmul.f32 0.0625, %v4082_v44 }
 0xd81   : > { %5998 = vrsqrt.f32 %v4121_v23 }
 0xd82   : > { %v4122_v35 = vadd.f32 1e-05, %v4106_v58  ;;  %v4123_v59 = vadd.f32 1e-05, %v4107_v12 }
 0xd83   : > { %v4084_v60 = vpop.xlane.xlu1 %4083  ;;  %v4086_v45 = vpop.xlane.xlu0 %4085 }
 0xd84   : > { %6000 = vrsqrt.f32 %v4122_v35  ;;  %v4108_v5 = vmul.f32 0.0625, %v4084_v60  ;;  %v4109_v25 = vmul.f32 0.0625, %v4086_v45 }
 0xd85   : > { %v5991_v62 = vpop.eup %5990  ;;  %6002 = vrsqrt.f32 %v4123_v59 }
 0xd86   : > { %v4124_v8 = vadd.f32 1e-05, %v4108_v5  ;;  %v4125_v54 = vadd.f32 1e-05, %v4109_v25  ;;  %v4149_v40 = vmul.f32 %v5991_v62, %v8711_v28 }
 0xd87   : > { %v4088_v4 = vpop.xlane.xlu1 %4087  ;;  %v4090_v6 = vpop.xlane.xlu0 %4089 }
 0xd88   : > { %6004 = vrsqrt.f32 %v4124_v8  ;;  %v4110_v17 = vmul.f32 0.0625, %v4088_v4  ;;  %v4111_v32 = vmul.f32 0.0625, %v4090_v6  ;;  %v4171_v2 = vmul.f32 %v8815_v21, %v4149_v40 }
 0xd89   : > { %v5993_v52 = vpop.eup %5992  ;;  %6006 = vrsqrt.f32 %v4125_v54 }
 0xd8a   : > { %v5995_v50 = vpop.eup %5994  ;;  %v4126_v0 = vadd.f32 1e-05, %v4110_v17  ;;  %v4127_v46 = vadd.f32 1e-05, %v4111_v32  ;;  %v4150_v15 = vmul.f32 %v5993_v52, %v8721_v26  ;;  %v4193_v20 = vadd.f32 %v8819_v19, %v4171_v2 }
 0xd8b   : > { %v4151_v39 = vmul.f32 %v5995_v50, %v8718_v13  ;;  %v4092_v1 = vpop.xlane.xlu1 %4091  ;;  %v4094_v28 = vpop.xlane.xlu0 %4093 }
 0xd8c   : > { %6008 = vrsqrt.f32 %v4126_v0  ;;  %v4112_v53 = vmul.f32 0.0625, %v4092_v1  ;;  %v4113_v27 = vmul.f32 0.0625, %v4094_v28  ;;  %v4172_v23 = vmul.f32 %v8815_v21, %v4150_v15 }
 0xd8d   : > { %v5997_v34 = vpop.eup %5996  ;;  %6010 = vrsqrt.f32 %v4127_v46  ;;  %v4173_v44 = vmul.f32 %v8815_v21, %v4151_v39  ;;  %v4209_v45 = vmax.f32 %v4193_v20, 0.0 }
 0xd8e   : > { %v5999_v58 = vpop.eup %5998  ;;  %v4152_v12 = vmul.f32 %v5997_v34, %v8730_v29  ;;  %v4128_v35 = vadd.f32 1e-05, %v4112_v53  ;;  %v4129_v26 = vadd.f32 1e-05, %v4113_v27  ;;  %v4194_v13 = vadd.f32 %v8819_v19, %v4172_v23 }
 0xd8f   : > { %v4096_v59 = vpop.xlane.xlu1 %4095  ;;  %v4098_v60 = vpop.xlane.xlu0 %4097  ;;  %v4153_v5 = vmul.f32 %v5999_v58, %v8733_v24  ;;  %v4195_v4 = vadd.f32 %v8819_v19, %v4173_v44 }
 0xd90   : > { %6012 = vrsqrt.f32 %v4128_v35  ;;  %v4114_v25 = vmul.f32 0.0625, %v4096_v59  ;;  %v4115_v62 = vmul.f32 0.0625, %v4098_v60  ;;  %v4210_v8 = vmax.f32 %v4194_v13, 0.0 }
 0xd91   : > { %v6001_v54 = vpop.eup %6000  ;;  %6014 = vrsqrt.f32 %v4129_v26  ;;  %v4174_v40 = vmul.f32 %v8815_v21, %v4152_v12  ;;  %v4175_v29 = vmul.f32 %v8815_v21, %v4153_v5  ;;  %v4211_v28 = vmax.f32 %v4195_v4, 0.0 }
 0xd92   : > { %v6003_v6 = vpop.eup %6002  ;;  %v4130_v17 = vadd.f32 1e-05, %v4114_v25  ;;  %v4131_v32 = vadd.f32 1e-05, %v4115_v62  ;;  %v4242_v2 = vpack.c.bf16 %v4210_v8, %v4209_v45  ;;  %v4154_v52 = vmul.f32 %v6001_v54, %v8745_v30 }
 0xd93   : > { %v4100_v50 = vpop.xlane.xlu1 %4099  ;;  %v4196_v24 = vadd.f32 %v8819_v19, %v4174_v40  ;;  %v4197_v0 = vadd.f32 %v8819_v19, %v4175_v29  ;;  %v4155_v46 = vmul.f32 %v6003_v6, %v8742_v11 }
 0xd94   : > { %6016 = vrsqrt.f32 %v4130_v17  ;;  %v4116_v15 = vmul.f32 0.0625, %v4100_v50  ;;  %5444 = vmatprep.mubr.bf16.mxu1 %v4242_v2  ;;  %v4176_v39 = vmul.f32 %v8815_v21, %v4154_v52 }
 0xd95   : > { %v6005_v1 = vpop.eup %6004  ;;  %6018 = vrsqrt.f32 %v4131_v32  ;;  %v4212_v20 = vmax.f32 %v4196_v24, 0.0  ;;  %v4177_v53 = vmul.f32 %v8815_v21, %v4155_v46  ;;  %v4213_v58 = vmax.f32 %v4197_v0, 0.0 }
 0xd96   : > { %v6007_v27 = vpop.eup %6006  ;;  %v4132_v30 = vadd.f32 1e-05, %v4116_v15  ;;  %v4198_v23 = vadd.f32 %v8819_v19, %v4176_v39  ;;  %v4156_v34 = vmul.f32 %v6005_v1, %v8754_v42 }
 0xd97   : > { %v4243_v44 = vpack.c.bf16 %v4212_v20, %v4211_v28  ;;  %v4157_v11 = vmul.f32 %v6007_v27, %v8757_v41  ;;  %v4199_v26 = vadd.f32 %v8819_v19, %v4177_v53 }
 0xd98   : > { %6020 = vrsqrt.f32 %v4132_v30  ;;  %v4214_v12 = vmax.f32 %v4198_v23, 0.0  ;;  %v4178_v35 = vmul.f32 %v8815_v21, %v4156_v34 }
 0xd99   : > { %v6009_v13 = vpop.eup %6008  ;;  %5445 = vmatmul.mubr.bf16.vlgmr.msra.gmra.mxu1 %v4243_v44  ;;  %v4179_v59 = vmul.f32 %v8815_v21, %v4157_v11  ;;  %v4215_v41 = vmax.f32 %v4199_v26, 0.0 }
 0xd9a   : > { %v6011_v60 = vpop.eup %6010  ;;  %v4244_v45 = vpack.c.bf16 %v4214_v12, %v4213_v58  ;;  %v4200_v5 = vadd.f32 %v8819_v19, %v4178_v35  ;;  %v4158_v42 = vmul.f32 %v6009_v13, %v8770_v55 }
 0xd9b   : > { %v4159_v25 = vmul.f32 %v6011_v60, %v8767_v3  ;;  %v4201_v54 = vadd.f32 %v8819_v19, %v4179_v59  ;;  %v8870_v60 = vld [vmem:[%s744_s15 + $0x1] ss:$0 sm:$0xff] }
 0xd9c   : > { %5448 = vmatprep.mubr.bf16.mxu1 %v4244_v45  ;;  %v4216_v62 = vmax.f32 %v4200_v5, 0.0  ;;  %v4180_v8 = vmul.f32 %v8815_v21, %v4158_v42 }
 0xd9d   : > { %v6013_v40 = vpop.eup %6012  ;;  %v4181_v4 = vmul.f32 %v8815_v21, %v4159_v25  ;;  %v4217_v2 = vmax.f32 %v4201_v54, 0.0 }
 0xd9e   : > { %v6015_v29 = vpop.eup %6014  ;;  %v4245_v6 = vpack.c.bf16 %v4216_v62, %v4215_v41  ;;  %v4202_v17 = vadd.f32 %v8819_v19, %v4180_v8  ;;  %v4160_v32 = vmul.f32 %v6013_v40, %v8780_v18 }
 0xd9f   : > { %v4161_v55 = vmul.f32 %v6015_v29, %v8783_v63  ;;  %v4203_v50 = vadd.f32 %v8819_v19, %v4181_v4 }
 0xda0   : > { %v4218_v3 = vmax.f32 %v4202_v17, 0.0  ;;  %v4182_v52 = vmul.f32 %v8815_v21, %v4160_v32 }
 0xda1   : > { %v6017_v24 = vpop.eup %6016  ;;  %5449 = vmatmul.mubr.bf16.gmra.mxu1 %v4245_v6  ;;  %v4183_v0 = vmul.f32 %v8815_v21, %v4161_v55  ;;  %v4219_v63 = vmax.f32 %v4203_v50, 0.0 }
 0xda2   : > { %v6019_v46 = vpop.eup %6018  ;;  %v4246_v15 = vpack.c.bf16 %v4218_v3, %v4217_v2  ;;  %v4204_v39 = vadd.f32 %v8819_v19, %v4182_v52  ;;  %v4162_v1 = vmul.f32 %v6017_v24, %v8793_v38 }
 0xda3   : > { %v4163_v18 = vmul.f32 %v6019_v46, %v8796_v61  ;;  %v4205_v53 = vadd.f32 %v8819_v19, %v4183_v0 }
 0xda4   : > { %5452 = vmatprep.mubr.bf16.mxu1 %v4246_v15  ;;  %v4220_v28 = vmax.f32 %v4204_v39, 0.0  ;;  %v4184_v20 = vmul.f32 %v8815_v21, %v4162_v1 }
 0xda5   : > { %v6021_v27 = vpop.eup %6020  ;;  %v4185_v30 = vmul.f32 %v8815_v21, %v4163_v18  ;;  %v4221_v58 = vmax.f32 %v4205_v53, 0.0 }
 0xda6   : > { %v4247_v23 = vpack.c.bf16 %v4220_v28, %v4219_v63  ;;  %v4206_v34 = vadd.f32 %v8819_v19, %v4184_v20  ;;  %v4164_v44 = vmul.f32 %v6021_v27, %v8805_v51 }
 0xda7   : > { %v4207_v11 = vadd.f32 %v8819_v19, %v4185_v30 }
 0xda8   : > { %v4222_v38 = vmax.f32 %v4206_v34, 0.0  ;;  %v4186_v61 = vmul.f32 %v8815_v21, %v4164_v44 }
 0xda9   : > { %5453 = vmatmul.mubr.bf16.gmra.mxu1 %v4247_v23  ;;  %v4223_v26 = vmax.f32 %v4207_v11, 0.0 }
 0xdaa   : > { %v4248_v12 = vpack.c.bf16 %v4222_v38, %v4221_v58  ;;  %v4208_v35 = vadd.f32 %v8819_v19, %v4186_v61 }
 0xdac   : > { %5456 = vmatprep.mubr.bf16.mxu1 %v4248_v12  ;;  %v4224_v13 = vmax.f32 %v4208_v35, 0.0 }
 0xdae   : > { %v4249_v59 = vpack.c.bf16 %v4224_v13, %v4223_v26 }
 0xdb1   : > { %5457 = vmatmul.mubr.bf16.gmra.mxu1 %v4249_v59 }
 0xe59   : > { %v5446_v51 = vpop.f32.mrf.mxu1 }
 0xe5a   : > { %v4349_v45 = vadd.f32 %v5446_v51, %v8870_v60 }
 0xe5b   : > { %v4340_v5 = vpop.f32.mrf.mxu1 }
 0xe5c   : > { %v4405_v21 = vadd.f32 %v4349_v45, %v8188_v49  ;;  %v4341_v42 = vadd.f32 %v8870_v60, %v4340_v5 }
 0xe5d   : > { %v5447_v25 = vpop.f32.mrf.mxu1 }
 0xe5e   : > { %4421 = vst [vmem:[%s8877_s22 + $0x10] sm:$0xff] %v4405_v21  ;;  %v4403_v19 = vadd.f32 %v4341_v42, %v8183_v37  ;;  %v4352_v41 = vadd.f32 %v5447_v25, %v8870_v60 }
 0xe5f   : > { %v4343_v62 = vpop.f32.mrf.mxu1 }
 0xe60   : > { %4419 = vst [vmem:[%s8877_s22] sm:$0xff] %v4403_v19  ;;  %v4406_v49 = vadd.f32 %v4352_v41, %v8198_v33  ;;  %v4344_v8 = vadd.f32 %v8870_v60, %v4343_v62 }
 0xe61   : > { %v5450_v54 = vpop.f32.mrf.mxu1 }
 0xe62   : > { %4422 = vst [vmem:[%s8877_s22 + $0x18] sm:$0xff] %v4406_v49  ;;  %v4404_v40 = vadd.f32 %v4344_v8, %v8192_v9  ;;  %v4365_v4 = vadd.f32 %v5450_v54, %v8870_v60 }
 0xe63   : > { %v4356_v29 = vpop.f32.mrf.mxu1 }
 0xe64   : > { %4420 = vst [vmem:[%s8877_s22 + $0x8] sm:$0xff] %v4404_v40  ;;  %v4409_v37 = vadd.f32 %v4365_v4, %v8208_v10  ;;  %v4357_v6 = vadd.f32 %v8870_v60, %v4356_v29 }
 0xe65   : > { %v5451_v17 = vpop.f32.mrf.mxu1 }
 0xe66   : > { %4425 = vst [vmem:[%s8877_s22 + $0x30] sm:$0xff] %v4409_v37  ;;  %v4407_v33 = vadd.f32 %v4357_v6, %v8202_v22  ;;  %v4368_v32 = vadd.f32 %v5451_v17, %v8870_v60 }
 0xe67   : > { %v4359_v55 = vpop.f32.mrf.mxu1 }
 0xe68   : > { %4423 = vst [vmem:[%s8877_s22 + $0x20] sm:$0xff] %v4407_v33  ;;  %v4410_v9 = vadd.f32 %v4368_v32, %v8218_v16  ;;  %v4360_v2 = vadd.f32 %v8870_v60, %v4359_v55 }
 0xe69   : > { %v5454_v3 = vpop.f32.mrf.mxu1 }
 0xe6a   : > { %4426 = vst [vmem:[%s8877_s22 + $0x38] sm:$0xff] %v4410_v9  ;;  %v4408_v10 = vadd.f32 %v4360_v2, %v8212_v14  ;;  %v4381_v52 = vadd.f32 %v5454_v3, %v8870_v60 }
 0xe6b   : > { %v4372_v50 = vpop.f32.mrf.mxu1 }
 0xe6c   : > { %4424 = vst [vmem:[%s8877_s22 + $0x28] sm:$0xff] %v4408_v10  ;;  %v4413_v22 = vadd.f32 %v4381_v52, %v8228_v47  ;;  %v4373_v24 = vadd.f32 %v8870_v60, %v4372_v50 }
 0xe6d   : > { %v5455_v0 = vpop.f32.mrf.mxu1 }
 0xe6e   : > { %4429 = vst [vmem:[%s8877_s22 + $0x50] sm:$0xff] %v4413_v22  ;;  %v4411_v16 = vadd.f32 %v4373_v24, %v8222_v43  ;;  %v4384_v46 = vadd.f32 %v5455_v0, %v8870_v60 }
 0xe6f   : > { %v4375_v15 = vpop.f32.mrf.mxu1 }
 0xe70   : > { %4427 = vst [vmem:[%s8877_s22 + $0x40] sm:$0xff] %v4411_v16  ;;  %v4414_v14 = vadd.f32 %v4384_v46, %v8238_v36  ;;  %v4376_v39 = vadd.f32 %v8870_v60, %v4375_v15 }
 0xe71   : > { %v5458_v1 = vpop.f32.mrf.mxu1 }
 0xe72   : > { %4430 = vst [vmem:[%s8877_s22 + $0x58] sm:$0xff] %v4414_v14  ;;  %v4412_v47 = vadd.f32 %v4376_v39, %v8232_v31  ;;  %v4397_v18 = vadd.f32 %v5458_v1, %v8870_v60 }
 0xe73   : > { %v4388_v63 = vpop.f32.mrf.mxu1 }
 0xe74   : > { %4428 = vst [vmem:[%s8877_s22 + $0x48] sm:$0xff] %v4412_v47  ;;  %v4417_v43 = vadd.f32 %v4397_v18, %v8248_v57  ;;  %v4389_v28 = vadd.f32 %v8870_v60, %v4388_v63 }
 0xe75   : > { %v5459_v20 = vpop.f32.mrf.mxu1 }
 0xe76   : > { %4433 = vst [vmem:[%s8877_s22 + $0x70] sm:$0xff] %v4417_v43  ;;  %v4415_v36 = vadd.f32 %v4389_v28, %v8242_v56  ;;  %v4400_v53 = vadd.f32 %v5459_v20, %v8870_v60 }
 0xe77   : > { %v4391_v31 = vpop.f32.mrf.mxu1 }
 0xe78   : > { %4431 = vst [vmem:[%s8877_s22 + $0x60] sm:$0xff] %v4415_v36  ;;  %v4418_v27 = vadd.f32 %v4400_v53, %v8257_v7  ;;  %v4392_v30 = vadd.f32 %v8870_v60, %v4391_v31 }
 0xe7a   : > { %4434 = vst [vmem:[%s8877_s22 + $0x78] sm:$0xff] %v4418_v27  ;;  %v4416_v56 = vadd.f32 %v4392_v30, %v8252_v48 }
 0xe7c   : > { %4432 = vst [vmem:[%s8877_s22 + $0x68] sm:$0xff] %v4416_v56 }
 0xe7d   : > { %6283 = shalt.err (!%p6280_p5)
}
 0xe7e   : > { %s6284_s15 = scalar_lea.hbm %s8926_s26, 2048  ;;  %s6288_s25 = scalar_lea.hbm %s9299_s8, 4096 }
 0xe7f   : > { %p6285_p9 = scmp.ne.s32.totalorder %s8926_s26, %s6284_s15  ;;  %p6289_p4 = scmp.lt.s32.totalorder %s8926_s26, %s9299_s8 }
 0xe80   : > { %p6290_p11 = scmp.lt.s32.totalorder %s6288_s25, %s6284_s15 }
 0xe81   : > { %p6286_p13 = pnand %p6285_p9, %p9300_p12 }
 0xe82   : > { %p6291_p2 = por %p6290_p11, %p6289_p4 }
 0xe83   : > { %p6287_p0 = pneg %p6286_p13 }
 0xe85   : > { %p6292_p7 = pnand %p6291_p2, %p6287_p0 }
 0xe87   : > { %6295 = shalt.err (!%p6292_p7)
}
 0xe88   : > { %s6551_s29 = smov 128   ;;  %s6552_s19 = smov 8  }
 0xe89   : > { %5493 = dma.vmem_to_hbm [thread:$0]  (%p9300_p12), %s8928_s6, 2048, %s8926_s26, %s4436_s16, %s6551_s29, %s6551_s29, %s6552_s19  }
 0xe8a PF: > { %s9301_s21 = sld [smem:[#allocation61_spill]]  ;;  %p9304_p8 = scmp.ge.s32.totalorder %s6532_s12, 2 }
 0xe8b   : > { %s9302_s1 = sld [smem:[#allocation73_spill]] }
 0xe90   : > { %s4465_s22 = sand.u32 1, %s9301_s21  }
 0xe91   : > { %p9303_p3 = scmp.ne.s32.totalorder %s9302_s1, 0  ;;  %s4466_s2 = scalar_lea.sflag [#allocation7], %s4465_s22 }
 0xe93   : > { %p5535_p1 = pnand %p9304_p8, %p9303_p3 }
 0xe95   : > { %p5536_p10 = pneg %p5535_p1 }
 0xe97   : > { %6431 = dma.done.wait (%p5536_p10), %s4466_s2, 2048  }
 0xe98   : > { %6433 = vsyncadd (%p5536_p10), %s4466_s2, 4294965248  ;;  %s9305_s12 = sld [smem:[#allocation63_spill]]  ;;  %s9322_s0 = smov %s7343_s5 }
 0xe99   : > { %s9306_s16 = sld [smem:[#allocation45_spill]]  ;;  %s9329_s27 = smov %s6488_s28 }
 0xe9a   : > { %s9307_s17 = sld [smem:[#allocation46_spill]]  ;;  %s9331_s5 = smov %s6524_s3 }
 0xe9b   : > { %s9308_s18 = sld [smem:[#allocation48_spill]] }
 0xe9c   : > { %s9309_s19 = sld [smem:[#allocation49_spill]] }
 0xe9d   : > { %s9310_s20 = sld [smem:[#allocation76_spill]] }
 0xe9e   : > { %s9311_s21 = sld [smem:[#allocation50_spill]]  ;;  %p43_p12 = scmp.ge.s32.totalorder %s9305_s12, 4  }
 0xe9f   : > { %s9312_s22 = sld [smem:[#allocation51_spill]] }
 0xea0   : > { %s9313_s23 = sld [smem:[#allocation70_spill]] }
 0xea1   : > { %s9314_s24 = sld [smem:[#allocation53_spill]] }
 0xea2   : > { %s9315_s25 = sld [smem:[#allocation54_spill]] }
 0xea3   : > { %s9316_s26 = sld [smem:[#allocation75_spill]] }
 0xea4   : > { %s9317_s13 = sld [smem:[#allocation55_spill]] }
 0xea5   : > { %s9318_s29 = sld [smem:[#allocation68_spill]] }
 0xea6   : > { %s9319_s30 = sld [smem:[#allocation57_spill]] }
 0xea7   : > { %s9320_s15 = sld [smem:[#allocation58_spill]] }
 0xea8   : > { %s9321_s14 = sld [smem:[#allocation74_spill]] }
 0xea9   : > { %s9323_s11 = sld [smem:[#allocation59_spill]] }
 0xeaa   : > { %s9324_s9 = sld [smem:[#allocation60_spill]]  ;;  %s9330_s28 = smov %s9317_s13 }
 0xeab   : > { %s9325_s7 = sld [smem:[#allocation66_spill]] }
 0xeac   : > { %s9326_s6 = sld [smem:[#allocation62_spill]] }
 0xead   : > { %s9327_s1 = sld [smem:[#allocation71_spill]] }
 0xeaf   :  { %45 = sbr.rel (!%p43_p12) target bundleno = 43 (0x2b), region = 229 }
 0xeb2   : > { %s9332_s3 = smov %s9326_s6 }
 0xeb3   : > { %s9333_s13 = smov %s9327_s1 }
 0xeb4   :  { %4471 = vsyncpa [#allocation6], 1 }
 0xeb5   :  { %4473 = vsyncpa [#allocation6 + $0x1], 1 }
 0xeb6   :  { %4474 = vsyncpa [#allocation9], 1 }
 0xeb7   :  { %4476 = vsyncpa [#allocation9 + $0x1], 1 }
 0xeb8   :  { %4477 = vsyncpa [#allocation12], 1 }
 0xeb9   :  { %4479 = vsyncpa [#allocation12 + $0x1], 1 }
 0xeba   :  { %4480 = vsyncpa [#allocation15], 1 }
 0xebb   :  { %4482 = vsyncpa [#allocation15 + $0x1], 1 }
 0xebc   :  { %4483 = vsyncpa [#allocation18], 1 }
 0xebd   :  { %4485 = vsyncpa [#allocation18 + $0x1], 1 }
 0xebe   :  { %4486 = vsyncpa [#allocation7], 1 }
 0xebf   :  { %4488 = vsyncpa [#allocation7 + $0x1], 1 }

</bundles_post_ra>
